<compile_context>
chip_gen: v6e
topology: v6e:2x2x1
jax: 0.10.0
libtpu: 0.0.40
codegen_flags: <defaults>
</compile_context>

<pallas_src>
import jax
import jax.numpy as jnp
from jax.experimental import pallas as pl
from jax.experimental.pallas import tpu as pltpu  # noqa: F401  (grid-free kernel; kept for parity with the template)

# ---- model dims (small, consistent with the module) ----
BATCH = 2
SEQ_LEN = 8
D_MODEL = 32
N_HEADS = 4
D_HEAD = D_MODEL // N_HEADS
D_FF = 64
N_LAYERS = 2
EPS = 1e-5  # nn.LayerNorm default

QKV_BLOCK = 128                                  # lane-aligned block per q/k/v
ATTN_DATA_LANES = N_LAYERS * N_HEADS * SEQ_LEN   # 64 real lanes of probabilities
ATTN_LANES = 128                                 # padded to a full vreg width


def _layer_norm(x, gamma, beta):
    # x: [N, D], gamma/beta: [1, D]; biased variance (matches nn.LayerNorm)
    mu = jnp.mean(x, axis=-1, keepdims=True)
    var = jnp.mean((x - mu) ** 2, axis=-1, keepdims=True)
    return (x - mu) * jax.lax.rsqrt(var + EPS) * gamma + beta


def encoder_kernel(
    x_ref,
    wqkv_ref, bqkv_ref, wo_ref, bo_ref,
    g1_ref, be1_ref,
    w1_ref, b1_ref, w2_ref, b2_ref,
    g2_ref, be2_ref,
    gf_ref, bf_ref,
    out_ref, attn_ref,
):
    """Fully fused Encoder: N_LAYERS x (MHSA + res + LN + FFN + res + LN) + LN."""
    _, D = x_ref.shape                      # x_ref: [B*L, D]
    B, L, H, dk = BATCH, SEQ_LEN, N_HEADS, D_HEAD

    x = x_ref[...].astype(jnp.float32)      # [B*L, D]

    prob_slabs = []                         # per-layer [B*L, H*L], kept in registers
    for li in range(N_LAYERS):              # static layer loop (N_LAYERS = 2)
        # --- fused QKV projection; q/k/v live on their own 128-lane blocks,
        #     1/sqrt(dk) already folded into the q columns/bias wrapper-side ---
        qkv = (jnp.dot(x, wqkv_ref[li], preferred_element_type=jnp.float32)
               + bqkv_ref[li])                                  # [B*L, 3*128]
        q = qkv[:, 0:D]                                          # vreg-aligned views
        k = qkv[:, QKV_BLOCK:QKV_BLOCK + D]
        v = qkv[:, 2 * QKV_BLOCK:2 * QKV_BLOCK + D]

        # --- one relayout each -> head-batched [B*H, L, dk] ---
        q4 = q.reshape(B, L, H, dk).transpose(0, 2, 1, 3).reshape(B * H, L, dk)
        k4 = k.reshape(B, L, H, dk).transpose(0, 2, 1, 3).reshape(B * H, L, dk)
        v4 = v.reshape(B, L, H, dk).transpose(0, 2, 1, 3).reshape(B * H, L, dk)

        # --- single batched score einsum + one slab-wide softmax (exact divide) ---
        s = jnp.einsum('bld,bmd->blm', q4, k4,
                       preferred_element_type=jnp.float32)       # [B*H, L, L]
        s = s - jnp.max(s, axis=-1, keepdims=True)
        e = jnp.exp(s)
        p = e / jnp.sum(e, axis=-1, keepdims=True)               # exact softmax

        # probs in registers, rows=(b,l), lanes=(h,m); stored once after the loop
        prob_slabs.append(
            p.reshape(B, H, L, L).transpose(0, 2, 1, 3).reshape(B * L, H * L))

        # --- context + output projection (no lane concat; one transpose) ---
        ctx = jnp.einsum('blm,bmd->bld', p, v4,
                         preferred_element_type=jnp.float32)     # [B*H, L, dk]
        ctx = ctx.reshape(B, H, L, dk).transpose(0, 2, 1, 3).reshape(B * L, D)
        new_x = (jnp.dot(ctx, wo_ref[li], preferred_element_type=jnp.float32)
                 + bo_ref[li])

        # --- residual + norm1 ---
        x = _layer_norm(x + new_x, g1_ref[li], be1_ref[li])

        # --- FFN: 1x1 conv -> relu -> 1x1 conv (per-token matmuls) ---
        y = jnp.maximum(
            jnp.dot(x, w1_ref[li], preferred_element_type=jnp.float32) + b1_ref[li],
            0.0)
        y = jnp.dot(y, w2_ref[li], preferred_element_type=jnp.float32) + b2_ref[li]

        # --- residual + norm2 ---
        x = _layer_norm(x + y, g2_ref[li], be2_ref[li])

    # --- final Encoder norm: single [B*L, D] slab store ---
    out_ref[...] = _layer_norm(x, gf_ref[...], bf_ref[...]).astype(out_ref.dtype)

    # --- single lane-dense, full-128-lane (unmasked) attention-prob store ---
    pad = jnp.zeros((B * L, ATTN_LANES - ATTN_DATA_LANES), jnp.float32)
    attn_ref[...] = jnp.concatenate(prob_slabs + [pad], axis=-1)


def encoder_forward(x, packed, attn_mask=None, tau=None, delta=None, N=None):
    """Encoder.forward (conv_layers=None branch), fully fused in one kernel."""
    B, L, D = x.shape
    H = N_HEADS
    out_flat, attn_pad = pl.pallas_call(
        encoder_kernel,
        out_shape=(
            jax.ShapeDtypeStruct((B * L, D), x.dtype),
            jax.ShapeDtypeStruct((B * L, ATTN_LANES), jnp.float32),
        ),
    )(
        x.reshape(B * L, D),
        packed["wqkv"], packed["bqkv"], packed["wo"], packed["bo"],
        packed["g1"], packed["be1"],
        packed["w1"], packed["b1"], packed["w2"], packed["b2"],
        packed["g2"], packed["be2"],
        packed["gf"], packed["bf"],
    )
    out = out_flat.reshape(B, L, D)
    # [B*L, NL*H*L] -> [NL, B, H, L, L]  (free XLA-level layout ops)
    attn = (attn_pad[:, :N_LAYERS * H * L]
            .reshape(B, L, N_LAYERS, H, L)
            .transpose(2, 0, 3, 1, 4))
    attns = [attn[i] for i in range(N_LAYERS)]
    return out, attns


# ---------------- parameter construction & packing (wrapper side) ----------------

def init_raw_params(key):
    """Deterministic synthetic parameters in natural (PyTorch-like) layout."""
    keys = iter(jax.random.split(key, 64))

    def nrm(shape, s=0.05):
        return s * jax.random.normal(next(keys), shape, dtype=jnp.float32)

    layers = []
    for _ in range(N_LAYERS):
        layers.append(dict(
            wq=nrm((D_MODEL, D_MODEL)), bq=nrm((D_MODEL,)),
            wk=nrm((D_MODEL, D_MODEL)), bk=nrm((D_MODEL,)),
            wv=nrm((D_MODEL, D_MODEL)), bv=nrm((D_MODEL,)),
            wo=nrm((D_MODEL, D_MODEL)), bo=nrm((D_MODEL,)),
            g1=1.0 + nrm((D_MODEL,)), be1=nrm((D_MODEL,)),
            w1=nrm((D_MODEL, D_FF)),  b1=nrm((D_FF,)),      # conv1 (1x1) weight
            w2=nrm((D_FF, D_MODEL)),  b2=nrm((D_MODEL,)),   # conv2 (1x1) weight
            g2=1.0 + nrm((D_MODEL,)), be2=nrm((D_MODEL,)),
        ))
    gf = 1.0 + nrm((D_MODEL,))
    bf = nrm((D_MODEL,))
    return layers, gf, bf


def pack_params(layers, gf, bf):
    """Zero-runtime-cost repacking: stack layers, pad q/k/v to 128-lane blocks,
    fold the 1/sqrt(dk) softmax scale into the q projection."""
    scale = 1.0 / (D_HEAD ** 0.5)
    wqkv = jnp.zeros((N_LAYERS, D_MODEL, 3 * QKV_BLOCK), jnp.float32)
    bqkv = jnp.zeros((N_LAYERS, 1, 3 * QKV_BLOCK), jnp.float32)
    for li, p in enumerate(layers):
        wqkv = wqkv.at[li, :, 0:D_MODEL].set(p["wq"] * scale)
        wqkv = wqkv.at[li, :, QKV_BLOCK:QKV_BLOCK + D_MODEL].set(p["wk"])
        wqkv = wqkv.at[li, :, 2 * QKV_BLOCK:2 * QKV_BLOCK + D_MODEL].set(p["wv"])
        bqkv = bqkv.at[li, 0, 0:D_MODEL].set(p["bq"] * scale)
        bqkv = bqkv.at[li, 0, QKV_BLOCK:QKV_BLOCK + D_MODEL].set(p["bk"])
        bqkv = bqkv.at[li, 0, 2 * QKV_BLOCK:2 * QKV_BLOCK + D_MODEL].set(p["bv"])

    def stack_mat(name):
        return jnp.stack([p[name] for p in layers])

    def stack_row(name):
        return jnp.stack([p[name][None, :] for p in layers])

    return dict(
        wqkv=wqkv, bqkv=bqkv,
        wo=stack_mat("wo"), bo=stack_row("bo"),
        g1=stack_row("g1"), be1=stack_row("be1"),
        w1=stack_mat("w1"), b1=stack_row("b1"),
        w2=stack_mat("w2"), b2=stack_row("b2"),
        g2=stack_row("g2"), be2=stack_row("be2"),
        gf=gf[None, :], bf=bf[None, :],
    )


# ---------------- pure-JAX reference (for correctness check) ----------------

def encoder_reference(x, layers, gf, bf):
    hp = jax.lax.Precision.HIGHEST
    B, L, D = x.shape
    H, dk = N_HEADS, D_HEAD
    scale = 1.0 / (dk ** 0.5)

    def ln(v, g, b):
        mu = v.mean(-1, keepdims=True)
        var = ((v - mu) ** 2).mean(-1, keepdims=True)
        return (v - mu) / jnp.sqrt(var + EPS) * g + b

    attns = []
    for p in layers:
        q = jnp.dot(x, p["wq"], precision=hp) + p["bq"]
        k = jnp.dot(x, p["wk"], precision=hp) + p["bk"]
        v = jnp.dot(x, p["wv"], precision=hp) + p["bv"]
        q = q.reshape(B, L, H, dk).transpose(0, 2, 1, 3)
        k = k.reshape(B, L, H, dk).transpose(0, 2, 1, 3)
        v = v.reshape(B, L, H, dk).transpose(0, 2, 1, 3)
        s = jnp.einsum('bhld,bhmd->bhlm', q, k, precision=hp) * scale
        a = jax.nn.softmax(s, axis=-1)
        attns.append(a)
        ctx = jnp.einsum('bhlm,bhmd->bhld', a, v, precision=hp)
        ctx = ctx.transpose(0, 2, 1, 3).reshape(B, L, D)
        new_x = jnp.dot(ctx, p["wo"], precision=hp) + p["bo"]
        x = ln(x + new_x, p["g1"], p["be1"])
        y = jnp.maximum(jnp.dot(x, p["w1"], precision=hp) + p["b1"], 0.0)
        y = jnp.dot(y, p["w2"], precision=hp) + p["b2"]
        x = ln(x + y, p["g2"], p["be2"])
    return ln(x, gf, bf), attns


if __name__ == "__main__":
    key = jax.random.PRNGKey(0)
    k_x, k_p = jax.random.split(key)
    x = jax.random.normal(k_x, (BATCH, SEQ_LEN, D_MODEL), dtype=jnp.float32)
    layers, gf, bf = init_raw_params(k_p)
    packed = pack_params(layers, gf, bf)

    out, attns = encoder_forward(x, packed)
    out = jax.block_until_ready(out)
    attns = [jax.block_until_ready(a) for a in attns]

    assert out.shape == (BATCH, SEQ_LEN, D_MODEL)
    assert len(attns) == N_LAYERS
    assert all(a.shape == (BATCH, N_HEADS, SEQ_LEN, SEQ_LEN) for a in attns)
    assert bool(jnp.all(jnp.isfinite(out)))
    # exact softmax: rows sum to 1 tightly
    assert jnp.allclose(attns[0].sum(-1), 1.0, atol=1e-3)
    assert jnp.allclose(attns[1].sum(-1), 1.0, atol=1e-3)

    # compare against the pure-JAX reference
    ref_out, ref_attns = encoder_reference(x, layers, gf, bf)
    assert jnp.allclose(out, ref_out, atol=5e-3, rtol=5e-3)
    for a, r in zip(attns, ref_attns):
        assert jnp.allclose(a, r, atol=5e-3)

    print("KERNEL_OK")
</pallas_src>

<mosaic_0001>
module attributes {stable_mosaic.version = 11 : i64} {
  func.func @encoder_kernel(%arg0: memref<16x32xf32, #tpu.memory_space<vmem>>, %arg1: memref<2x32x384xf32, #tpu.memory_space<vmem>>, %arg2: memref<2x1x384xf32, #tpu.memory_space<vmem>>, %arg3: memref<2x32x32xf32, #tpu.memory_space<vmem>>, %arg4: memref<2x1x32xf32, #tpu.memory_space<vmem>>, %arg5: memref<2x1x32xf32, #tpu.memory_space<vmem>>, %arg6: memref<2x1x32xf32, #tpu.memory_space<vmem>>, %arg7: memref<2x32x64xf32, #tpu.memory_space<vmem>>, %arg8: memref<2x1x64xf32, #tpu.memory_space<vmem>>, %arg9: memref<2x64x32xf32, #tpu.memory_space<vmem>>, %arg10: memref<2x1x32xf32, #tpu.memory_space<vmem>>, %arg11: memref<2x1x32xf32, #tpu.memory_space<vmem>>, %arg12: memref<2x1x32xf32, #tpu.memory_space<vmem>>, %arg13: memref<1x32xf32, #tpu.memory_space<vmem>>, %arg14: memref<1x32xf32, #tpu.memory_space<vmem>>, %arg15: memref<16x32xf32, #tpu.memory_space<vmem>>, %arg16: memref<16x128xf32, #tpu.memory_space<vmem>>) attributes {dimension_semantics = [], scalar_prefetch = 0 : i64, scratch_operands = 0 : i64, tpu.core_type = #tpu.core_type<tc>} {
    %c0 = arith.constant 0 : index
    %c0_0 = arith.constant 0 : index
    %0 = vector.load %arg0[%c0, %c0_0] : memref<16x32xf32, #tpu.memory_space<vmem>>, vector<16x32xf32>
    %c0_1 = arith.constant 0 : index
    %c0_2 = arith.constant 0 : index
    %c0_3 = arith.constant 0 : index
    %1 = vector.load %arg1[%c0_1, %c0_2, %c0_3] : memref<2x32x384xf32, #tpu.memory_space<vmem>>, vector<1x32x384xf32>
    %2 = vector.shape_cast %1 : vector<1x32x384xf32> to vector<32x384xf32>
    %cst = arith.constant dense<0.000000e+00> : vector<16x384xf32>
    %3 = tpu.matmul %0, %2, %cst {dimension_numbers = #tpu.dot_dimension_numbers<[1], [0], [0], [1], [0, 0, 1, 1], [], []>} : vector<16x32xf32>, vector<32x384xf32>, vector<16x384xf32> -> vector<16x384xf32>
    %c0_4 = arith.constant 0 : index
    %c0_5 = arith.constant 0 : index
    %c0_6 = arith.constant 0 : index
    %4 = vector.load %arg2[%c0_4, %c0_5, %c0_6] : memref<2x1x384xf32, #tpu.memory_space<vmem>>, vector<1x1x384xf32>
    %5 = vector.shape_cast %4 : vector<1x1x384xf32> to vector<1x384xf32>
    %6 = vector.broadcast %5 : vector<1x384xf32> to vector<16x384xf32>
    %7 = arith.addf %3, %6 : vector<16x384xf32>
    %8 = vector.extract_strided_slice %7 {offsets = [0, 0], sizes = [16, 32], strides = [1, 1]} : vector<16x384xf32> to vector<16x32xf32>
    %9 = vector.extract_strided_slice %7 {offsets = [0, 128], sizes = [16, 32], strides = [1, 1]} : vector<16x384xf32> to vector<16x32xf32>
    %10 = vector.extract_strided_slice %7 {offsets = [0, 256], sizes = [16, 32], strides = [1, 1]} : vector<16x384xf32> to vector<16x32xf32>
    %11 = vector.shape_cast %8 : vector<16x32xf32> to vector<2x8x4x8xf32>
    %12 = tpu.transpose %11, [0, 2, 1, 3] : vector<2x8x4x8xf32> -> vector<2x4x8x8xf32>
    %13 = vector.shape_cast %12 : vector<2x4x8x8xf32> to vector<8x8x8xf32>
    %14 = vector.shape_cast %9 : vector<16x32xf32> to vector<2x8x4x8xf32>
    %15 = tpu.transpose %14, [0, 2, 1, 3] : vector<2x8x4x8xf32> -> vector<2x4x8x8xf32>
    %16 = vector.shape_cast %15 : vector<2x4x8x8xf32> to vector<8x8x8xf32>
    %17 = vector.shape_cast %10 : vector<16x32xf32> to vector<2x8x4x8xf32>
    %18 = tpu.transpose %17, [0, 2, 1, 3] : vector<2x8x4x8xf32> -> vector<2x4x8x8xf32>
    %19 = vector.shape_cast %18 : vector<2x4x8x8xf32> to vector<8x8x8xf32>
    "tpu.trace_start"() <{level = 10 : i32, message = "bld,bmd->blm"}> : () -> ()
    %cst_7 = arith.constant dense<0.000000e+00> : vector<8x8x8xf32>
    %20 = tpu.matmul %13, %16, %cst_7 {dimension_numbers = #tpu.dot_dimension_numbers<[2], [2], [1], [1], [0, 0, 0, 1, 1, 1], [0], [0]>} : vector<8x8x8xf32>, vector<8x8x8xf32>, vector<8x8x8xf32> -> vector<8x8x8xf32>
    "tpu.trace_stop"() : () -> ()
    %cst_8 = arith.constant dense<0xFF800000> : vector<8x8xf32>
    %21 = vector.multi_reduction <maximumf>, %20, %cst_8 [2] : vector<8x8x8xf32> to vector<8x8xf32>
    %22 = vector.shape_cast %21 : vector<8x8xf32> to vector<8x8x1xf32>
    %23 = vector.broadcast %22 : vector<8x8x1xf32> to vector<8x8x8xf32>
    %24 = arith.subf %20, %23 : vector<8x8x8xf32>
    %25 = math.exp %24 : vector<8x8x8xf32>
    %cst_9 = arith.constant dense<0.000000e+00> : vector<8x8xf32>
    %26 = vector.multi_reduction <add>, %25, %cst_9 [2] : vector<8x8x8xf32> to vector<8x8xf32>
    %27 = vector.shape_cast %26 : vector<8x8xf32> to vector<8x8x1xf32>
    %28 = vector.broadcast %27 : vector<8x8x1xf32> to vector<8x8x8xf32>
    %29 = arith.divf %25, %28 : vector<8x8x8xf32>
    %30 = vector.shape_cast %29 : vector<8x8x8xf32> to vector<2x4x8x8xf32>
    %31 = tpu.transpose %30, [0, 2, 1, 3] : vector<2x4x8x8xf32> -> vector<2x8x4x8xf32>
    %32 = vector.shape_cast %31 : vector<2x8x4x8xf32> to vector<16x32xf32>
    "tpu.trace_start"() <{level = 10 : i32, message = "blm,bmd->bld"}> : () -> ()
    %cst_10 = arith.constant dense<0.000000e+00> : vector<8x8x8xf32>
    %33 = tpu.matmul %29, %19, %cst_10 {dimension_numbers = #tpu.dot_dimension_numbers<[2], [1], [1], [2], [0, 0, 0, 1, 1, 2], [0], [0]>} : vector<8x8x8xf32>, vector<8x8x8xf32>, vector<8x8x8xf32> -> vector<8x8x8xf32>
    "tpu.trace_stop"() : () -> ()
    %34 = vector.shape_cast %33 : vector<8x8x8xf32> to vector<2x4x8x8xf32>
    %35 = tpu.transpose %34, [0, 2, 1, 3] : vector<2x4x8x8xf32> -> vector<2x8x4x8xf32>
    %36 = vector.shape_cast %35 : vector<2x8x4x8xf32> to vector<16x32xf32>
    %c0_11 = arith.constant 0 : index
    %c0_12 = arith.constant 0 : index
    %c0_13 = arith.constant 0 : index
    %37 = vector.load %arg3[%c0_11, %c0_12, %c0_13] : memref<2x32x32xf32, #tpu.memory_space<vmem>>, vector<1x32x32xf32>
    %38 = vector.shape_cast %37 : vector<1x32x32xf32> to vector<32x32xf32>
    %cst_14 = arith.constant dense<0.000000e+00> : vector<16x32xf32>
    %39 = tpu.matmul %36, %38, %cst_14 {dimension_numbers = #tpu.dot_dimension_numbers<[1], [0], [0], [1], [0, 0, 1, 1], [], []>} : vector<16x32xf32>, vector<32x32xf32>, vector<16x32xf32> -> vector<16x32xf32>
    %c0_15 = arith.constant 0 : index
    %c0_16 = arith.constant 0 : index
    %c0_17 = arith.constant 0 : index
    %40 = vector.load %arg4[%c0_15, %c0_16, %c0_17] : memref<2x1x32xf32, #tpu.memory_space<vmem>>, vector<1x1x32xf32>
    %41 = vector.shape_cast %40 : vector<1x1x32xf32> to vector<1x32xf32>
    %42 = vector.broadcast %41 : vector<1x32xf32> to vector<16x32xf32>
    %43 = arith.addf %39, %42 : vector<16x32xf32>
    %44 = arith.addf %0, %43 : vector<16x32xf32>
    %c0_18 = arith.constant 0 : index
    %c0_19 = arith.constant 0 : index
    %c0_20 = arith.constant 0 : index
    %45 = vector.load %arg5[%c0_18, %c0_19, %c0_20] : memref<2x1x32xf32, #tpu.memory_space<vmem>>, vector<1x1x32xf32>
    %46 = vector.shape_cast %45 : vector<1x1x32xf32> to vector<1x32xf32>
    %c0_21 = arith.constant 0 : index
    %c0_22 = arith.constant 0 : index
    %c0_23 = arith.constant 0 : index
    %47 = vector.load %arg6[%c0_21, %c0_22, %c0_23] : memref<2x1x32xf32, #tpu.memory_space<vmem>>, vector<1x1x32xf32>
    %48 = vector.shape_cast %47 : vector<1x1x32xf32> to vector<1x32xf32>
    %cst_24 = arith.constant dense<0.000000e+00> : vector<16xf32>
    %49 = vector.multi_reduction <add>, %44, %cst_24 [1] : vector<16x32xf32> to vector<16xf32>
    %50 = vector.shape_cast %49 : vector<16xf32> to vector<16x1xf32>
    %cst_25 = arith.constant 3.200000e+01 : f32
    %51 = vector.broadcast %cst_25 : f32 to vector<16x1xf32>
    %52 = arith.divf %50, %51 : vector<16x1xf32>
    %53 = vector.broadcast %52 : vector<16x1xf32> to vector<16x32xf32>
    %54 = arith.subf %44, %53 : vector<16x32xf32>
    %55 = arith.mulf %54, %54 : vector<16x32xf32>
    %cst_26 = arith.constant dense<0.000000e+00> : vector<16xf32>
    %56 = vector.multi_reduction <add>, %55, %cst_26 [1] : vector<16x32xf32> to vector<16xf32>
    %57 = vector.shape_cast %56 : vector<16xf32> to vector<16x1xf32>
    %cst_27 = arith.constant 3.200000e+01 : f32
    %58 = vector.broadcast %cst_27 : f32 to vector<16x1xf32>
    %59 = arith.divf %57, %58 : vector<16x1xf32>
    %60 = vector.broadcast %52 : vector<16x1xf32> to vector<16x32xf32>
    %61 = arith.subf %44, %60 : vector<16x32xf32>
    %cst_28 = arith.constant 9.99999974E-6 : f32
    %62 = vector.broadcast %cst_28 : f32 to vector<16x1xf32>
    %63 = arith.addf %59, %62 : vector<16x1xf32>
    %64 = math.rsqrt %63 : vector<16x1xf32>
    %65 = vector.broadcast %64 : vector<16x1xf32> to vector<16x32xf32>
    %66 = arith.mulf %61, %65 : vector<16x32xf32>
    %67 = vector.broadcast %46 : vector<1x32xf32> to vector<16x32xf32>
    %68 = arith.mulf %66, %67 : vector<16x32xf32>
    %69 = vector.broadcast %48 : vector<1x32xf32> to vector<16x32xf32>
    %70 = arith.addf %68, %69 : vector<16x32xf32>
    %c0_29 = arith.constant 0 : index
    %c0_30 = arith.constant 0 : index
    %c0_31 = arith.constant 0 : index
    %71 = vector.load %arg7[%c0_29, %c0_30, %c0_31] : memref<2x32x64xf32, #tpu.memory_space<vmem>>, vector<1x32x64xf32>
    %72 = vector.shape_cast %71 : vector<1x32x64xf32> to vector<32x64xf32>
    %cst_32 = arith.constant dense<0.000000e+00> : vector<16x64xf32>
    %73 = tpu.matmul %70, %72, %cst_32 {dimension_numbers = #tpu.dot_dimension_numbers<[1], [0], [0], [1], [0, 0, 1, 1], [], []>} : vector<16x32xf32>, vector<32x64xf32>, vector<16x64xf32> -> vector<16x64xf32>
    %c0_33 = arith.constant 0 : index
    %c0_34 = arith.constant 0 : index
    %c0_35 = arith.constant 0 : index
    %74 = vector.load %arg8[%c0_33, %c0_34, %c0_35] : memref<2x1x64xf32, #tpu.memory_space<vmem>>, vector<1x1x64xf32>
    %75 = vector.shape_cast %74 : vector<1x1x64xf32> to vector<1x64xf32>
    %76 = vector.broadcast %75 : vector<1x64xf32> to vector<16x64xf32>
    %77 = arith.addf %73, %76 : vector<16x64xf32>
    %cst_36 = arith.constant 0.000000e+00 : f32
    %78 = vector.broadcast %cst_36 : f32 to vector<16x64xf32>
    %79 = arith.maximumf %77, %78 : vector<16x64xf32>
    %c0_37 = arith.constant 0 : index
    %c0_38 = arith.constant 0 : index
    %c0_39 = arith.constant 0 : index
    %80 = vector.load %arg9[%c0_37, %c0_38, %c0_39] : memref<2x64x32xf32, #tpu.memory_space<vmem>>, vector<1x64x32xf32>
    %81 = vector.shape_cast %80 : vector<1x64x32xf32> to vector<64x32xf32>
    %cst_40 = arith.constant dense<0.000000e+00> : vector<16x32xf32>
    %82 = tpu.matmul %79, %81, %cst_40 {dimension_numbers = #tpu.dot_dimension_numbers<[1], [0], [0], [1], [0, 0, 1, 1], [], []>} : vector<16x64xf32>, vector<64x32xf32>, vector<16x32xf32> -> vector<16x32xf32>
    %c0_41 = arith.constant 0 : index
    %c0_42 = arith.constant 0 : index
    %c0_43 = arith.constant 0 : index
    %83 = vector.load %arg10[%c0_41, %c0_42, %c0_43] : memref<2x1x32xf32, #tpu.memory_space<vmem>>, vector<1x1x32xf32>
    %84 = vector.shape_cast %83 : vector<1x1x32xf32> to vector<1x32xf32>
    %85 = vector.broadcast %84 : vector<1x32xf32> to vector<16x32xf32>
    %86 = arith.addf %82, %85 : vector<16x32xf32>
    %87 = arith.addf %70, %86 : vector<16x32xf32>
    %c0_44 = arith.constant 0 : index
    %c0_45 = arith.constant 0 : index
    %c0_46 = arith.constant 0 : index
    %88 = vector.load %arg11[%c0_44, %c0_45, %c0_46] : memref<2x1x32xf32, #tpu.memory_space<vmem>>, vector<1x1x32xf32>
    %89 = vector.shape_cast %88 : vector<1x1x32xf32> to vector<1x32xf32>
    %c0_47 = arith.constant 0 : index
    %c0_48 = arith.constant 0 : index
    %c0_49 = arith.constant 0 : index
    %90 = vector.load %arg12[%c0_47, %c0_48, %c0_49] : memref<2x1x32xf32, #tpu.memory_space<vmem>>, vector<1x1x32xf32>
    %91 = vector.shape_cast %90 : vector<1x1x32xf32> to vector<1x32xf32>
    %cst_50 = arith.constant dense<0.000000e+00> : vector<16xf32>
    %92 = vector.multi_reduction <add>, %87, %cst_50 [1] : vector<16x32xf32> to vector<16xf32>
    %93 = vector.shape_cast %92 : vector<16xf32> to vector<16x1xf32>
    %cst_51 = arith.constant 3.200000e+01 : f32
    %94 = vector.broadcast %cst_51 : f32 to vector<16x1xf32>
    %95 = arith.divf %93, %94 : vector<16x1xf32>
    %96 = vector.broadcast %95 : vector<16x1xf32> to vector<16x32xf32>
    %97 = arith.subf %87, %96 : vector<16x32xf32>
    %98 = arith.mulf %97, %97 : vector<16x32xf32>
    %cst_52 = arith.constant dense<0.000000e+00> : vector<16xf32>
    %99 = vector.multi_reduction <add>, %98, %cst_52 [1] : vector<16x32xf32> to vector<16xf32>
    %100 = vector.shape_cast %99 : vector<16xf32> to vector<16x1xf32>
    %cst_53 = arith.constant 3.200000e+01 : f32
    %101 = vector.broadcast %cst_53 : f32 to vector<16x1xf32>
    %102 = arith.divf %100, %101 : vector<16x1xf32>
    %103 = vector.broadcast %95 : vector<16x1xf32> to vector<16x32xf32>
    %104 = arith.subf %87, %103 : vector<16x32xf32>
    %cst_54 = arith.constant 9.99999974E-6 : f32
    %105 = vector.broadcast %cst_54 : f32 to vector<16x1xf32>
    %106 = arith.addf %102, %105 : vector<16x1xf32>
    %107 = math.rsqrt %106 : vector<16x1xf32>
    %108 = vector.broadcast %107 : vector<16x1xf32> to vector<16x32xf32>
    %109 = arith.mulf %104, %108 : vector<16x32xf32>
    %110 = vector.broadcast %89 : vector<1x32xf32> to vector<16x32xf32>
    %111 = arith.mulf %109, %110 : vector<16x32xf32>
    %112 = vector.broadcast %91 : vector<1x32xf32> to vector<16x32xf32>
    %113 = arith.addf %111, %112 : vector<16x32xf32>
    %c1 = arith.constant 1 : index
    %c0_55 = arith.constant 0 : index
    %c0_56 = arith.constant 0 : index
    %114 = vector.load %arg1[%c1, %c0_55, %c0_56] : memref<2x32x384xf32, #tpu.memory_space<vmem>>, vector<1x32x384xf32>
    %115 = vector.shape_cast %114 : vector<1x32x384xf32> to vector<32x384xf32>
    %cst_57 = arith.constant dense<0.000000e+00> : vector<16x384xf32>
    %116 = tpu.matmul %113, %115, %cst_57 {dimension_numbers = #tpu.dot_dimension_numbers<[1], [0], [0], [1], [0, 0, 1, 1], [], []>} : vector<16x32xf32>, vector<32x384xf32>, vector<16x384xf32> -> vector<16x384xf32>
    %c1_58 = arith.constant 1 : index
    %c0_59 = arith.constant 0 : index
    %c0_60 = arith.constant 0 : index
    %117 = vector.load %arg2[%c1_58, %c0_59, %c0_60] : memref<2x1x384xf32, #tpu.memory_space<vmem>>, vector<1x1x384xf32>
    %118 = vector.shape_cast %117 : vector<1x1x384xf32> to vector<1x384xf32>
    %119 = vector.broadcast %118 : vector<1x384xf32> to vector<16x384xf32>
    %120 = arith.addf %116, %119 : vector<16x384xf32>
    %121 = vector.extract_strided_slice %120 {offsets = [0, 0], sizes = [16, 32], strides = [1, 1]} : vector<16x384xf32> to vector<16x32xf32>
    %122 = vector.extract_strided_slice %120 {offsets = [0, 128], sizes = [16, 32], strides = [1, 1]} : vector<16x384xf32> to vector<16x32xf32>
    %123 = vector.extract_strided_slice %120 {offsets = [0, 256], sizes = [16, 32], strides = [1, 1]} : vector<16x384xf32> to vector<16x32xf32>
    %124 = vector.shape_cast %121 : vector<16x32xf32> to vector<2x8x4x8xf32>
    %125 = tpu.transpose %124, [0, 2, 1, 3] : vector<2x8x4x8xf32> -> vector<2x4x8x8xf32>
    %126 = vector.shape_cast %125 : vector<2x4x8x8xf32> to vector<8x8x8xf32>
    %127 = vector.shape_cast %122 : vector<16x32xf32> to vector<2x8x4x8xf32>
    %128 = tpu.transpose %127, [0, 2, 1, 3] : vector<2x8x4x8xf32> -> vector<2x4x8x8xf32>
    %129 = vector.shape_cast %128 : vector<2x4x8x8xf32> to vector<8x8x8xf32>
    %130 = vector.shape_cast %123 : vector<16x32xf32> to vector<2x8x4x8xf32>
    %131 = tpu.transpose %130, [0, 2, 1, 3] : vector<2x8x4x8xf32> -> vector<2x4x8x8xf32>
    %132 = vector.shape_cast %131 : vector<2x4x8x8xf32> to vector<8x8x8xf32>
    "tpu.trace_start"() <{level = 10 : i32, message = "bld,bmd->blm"}> : () -> ()
    %cst_61 = arith.constant dense<0.000000e+00> : vector<8x8x8xf32>
    %133 = tpu.matmul %126, %129, %cst_61 {dimension_numbers = #tpu.dot_dimension_numbers<[2], [2], [1], [1], [0, 0, 0, 1, 1, 1], [0], [0]>} : vector<8x8x8xf32>, vector<8x8x8xf32>, vector<8x8x8xf32> -> vector<8x8x8xf32>
    "tpu.trace_stop"() : () -> ()
    %cst_62 = arith.constant dense<0xFF800000> : vector<8x8xf32>
    %134 = vector.multi_reduction <maximumf>, %133, %cst_62 [2] : vector<8x8x8xf32> to vector<8x8xf32>
    %135 = vector.shape_cast %134 : vector<8x8xf32> to vector<8x8x1xf32>
    %136 = vector.broadcast %135 : vector<8x8x1xf32> to vector<8x8x8xf32>
    %137 = arith.subf %133, %136 : vector<8x8x8xf32>
    %138 = math.exp %137 : vector<8x8x8xf32>
    %cst_63 = arith.constant dense<0.000000e+00> : vector<8x8xf32>
    %139 = vector.multi_reduction <add>, %138, %cst_63 [2] : vector<8x8x8xf32> to vector<8x8xf32>
    %140 = vector.shape_cast %139 : vector<8x8xf32> to vector<8x8x1xf32>
    %141 = vector.broadcast %140 : vector<8x8x1xf32> to vector<8x8x8xf32>
    %142 = arith.divf %138, %141 : vector<8x8x8xf32>
    %143 = vector.shape_cast %142 : vector<8x8x8xf32> to vector<2x4x8x8xf32>
    %144 = tpu.transpose %143, [0, 2, 1, 3] : vector<2x4x8x8xf32> -> vector<2x8x4x8xf32>
    %145 = vector.shape_cast %144 : vector<2x8x4x8xf32> to vector<16x32xf32>
    "tpu.trace_start"() <{level = 10 : i32, message = "blm,bmd->bld"}> : () -> ()
    %cst_64 = arith.constant dense<0.000000e+00> : vector<8x8x8xf32>
    %146 = tpu.matmul %142, %132, %cst_64 {dimension_numbers = #tpu.dot_dimension_numbers<[2], [1], [1], [2], [0, 0, 0, 1, 1, 2], [0], [0]>} : vector<8x8x8xf32>, vector<8x8x8xf32>, vector<8x8x8xf32> -> vector<8x8x8xf32>
    "tpu.trace_stop"() : () -> ()
    %147 = vector.shape_cast %146 : vector<8x8x8xf32> to vector<2x4x8x8xf32>
    %148 = tpu.transpose %147, [0, 2, 1, 3] : vector<2x4x8x8xf32> -> vector<2x8x4x8xf32>
    %149 = vector.shape_cast %148 : vector<2x8x4x8xf32> to vector<16x32xf32>
    %c1_65 = arith.constant 1 : index
    %c0_66 = arith.constant 0 : index
    %c0_67 = arith.constant 0 : index
    %150 = vector.load %arg3[%c1_65, %c0_66, %c0_67] : memref<2x32x32xf32, #tpu.memory_space<vmem>>, vector<1x32x32xf32>
    %151 = vector.shape_cast %150 : vector<1x32x32xf32> to vector<32x32xf32>
    %cst_68 = arith.constant dense<0.000000e+00> : vector<16x32xf32>
    %152 = tpu.matmul %149, %151, %cst_68 {dimension_numbers = #tpu.dot_dimension_numbers<[1], [0], [0], [1], [0, 0, 1, 1], [], []>} : vector<16x32xf32>, vector<32x32xf32>, vector<16x32xf32> -> vector<16x32xf32>
    %c1_69 = arith.constant 1 : index
    %c0_70 = arith.constant 0 : index
    %c0_71 = arith.constant 0 : index
    %153 = vector.load %arg4[%c1_69, %c0_70, %c0_71] : memref<2x1x32xf32, #tpu.memory_space<vmem>>, vector<1x1x32xf32>
    %154 = vector.shape_cast %153 : vector<1x1x32xf32> to vector<1x32xf32>
    %155 = vector.broadcast %154 : vector<1x32xf32> to vector<16x32xf32>
    %156 = arith.addf %152, %155 : vector<16x32xf32>
    %157 = arith.addf %113, %156 : vector<16x32xf32>
    %c1_72 = arith.constant 1 : index
    %c0_73 = arith.constant 0 : index
    %c0_74 = arith.constant 0 : index
    %158 = vector.load %arg5[%c1_72, %c0_73, %c0_74] : memref<2x1x32xf32, #tpu.memory_space<vmem>>, vector<1x1x32xf32>
    %159 = vector.shape_cast %158 : vector<1x1x32xf32> to vector<1x32xf32>
    %c1_75 = arith.constant 1 : index
    %c0_76 = arith.constant 0 : index
    %c0_77 = arith.constant 0 : index
    %160 = vector.load %arg6[%c1_75, %c0_76, %c0_77] : memref<2x1x32xf32, #tpu.memory_space<vmem>>, vector<1x1x32xf32>
    %161 = vector.shape_cast %160 : vector<1x1x32xf32> to vector<1x32xf32>
    %cst_78 = arith.constant dense<0.000000e+00> : vector<16xf32>
    %162 = vector.multi_reduction <add>, %157, %cst_78 [1] : vector<16x32xf32> to vector<16xf32>
    %163 = vector.shape_cast %162 : vector<16xf32> to vector<16x1xf32>
    %cst_79 = arith.constant 3.200000e+01 : f32
    %164 = vector.broadcast %cst_79 : f32 to vector<16x1xf32>
    %165 = arith.divf %163, %164 : vector<16x1xf32>
    %166 = vector.broadcast %165 : vector<16x1xf32> to vector<16x32xf32>
    %167 = arith.subf %157, %166 : vector<16x32xf32>
    %168 = arith.mulf %167, %167 : vector<16x32xf32>
    %cst_80 = arith.constant dense<0.000000e+00> : vector<16xf32>
    %169 = vector.multi_reduction <add>, %168, %cst_80 [1] : vector<16x32xf32> to vector<16xf32>
    %170 = vector.shape_cast %169 : vector<16xf32> to vector<16x1xf32>
    %cst_81 = arith.constant 3.200000e+01 : f32
    %171 = vector.broadcast %cst_81 : f32 to vector<16x1xf32>
    %172 = arith.divf %170, %171 : vector<16x1xf32>
    %173 = vector.broadcast %165 : vector<16x1xf32> to vector<16x32xf32>
    %174 = arith.subf %157, %173 : vector<16x32xf32>
    %cst_82 = arith.constant 9.99999974E-6 : f32
    %175 = vector.broadcast %cst_82 : f32 to vector<16x1xf32>
    %176 = arith.addf %172, %175 : vector<16x1xf32>
    %177 = math.rsqrt %176 : vector<16x1xf32>
    %178 = vector.broadcast %177 : vector<16x1xf32> to vector<16x32xf32>
    %179 = arith.mulf %174, %178 : vector<16x32xf32>
    %180 = vector.broadcast %159 : vector<1x32xf32> to vector<16x32xf32>
    %181 = arith.mulf %179, %180 : vector<16x32xf32>
    %182 = vector.broadcast %161 : vector<1x32xf32> to vector<16x32xf32>
    %183 = arith.addf %181, %182 : vector<16x32xf32>
    %c1_83 = arith.constant 1 : index
    %c0_84 = arith.constant 0 : index
    %c0_85 = arith.constant 0 : index
    %184 = vector.load %arg7[%c1_83, %c0_84, %c0_85] : memref<2x32x64xf32, #tpu.memory_space<vmem>>, vector<1x32x64xf32>
    %185 = vector.shape_cast %184 : vector<1x32x64xf32> to vector<32x64xf32>
    %cst_86 = arith.constant dense<0.000000e+00> : vector<16x64xf32>
    %186 = tpu.matmul %183, %185, %cst_86 {dimension_numbers = #tpu.dot_dimension_numbers<[1], [0], [0], [1], [0, 0, 1, 1], [], []>} : vector<16x32xf32>, vector<32x64xf32>, vector<16x64xf32> -> vector<16x64xf32>
    %c1_87 = arith.constant 1 : index
    %c0_88 = arith.constant 0 : index
    %c0_89 = arith.constant 0 : index
    %187 = vector.load %arg8[%c1_87, %c0_88, %c0_89] : memref<2x1x64xf32, #tpu.memory_space<vmem>>, vector<1x1x64xf32>
    %188 = vector.shape_cast %187 : vector<1x1x64xf32> to vector<1x64xf32>
    %189 = vector.broadcast %188 : vector<1x64xf32> to vector<16x64xf32>
    %190 = arith.addf %186, %189 : vector<16x64xf32>
    %cst_90 = arith.constant 0.000000e+00 : f32
    %191 = vector.broadcast %cst_90 : f32 to vector<16x64xf32>
    %192 = arith.maximumf %190, %191 : vector<16x64xf32>
    %c1_91 = arith.constant 1 : index
    %c0_92 = arith.constant 0 : index
    %c0_93 = arith.constant 0 : index
    %193 = vector.load %arg9[%c1_91, %c0_92, %c0_93] : memref<2x64x32xf32, #tpu.memory_space<vmem>>, vector<1x64x32xf32>
    %194 = vector.shape_cast %193 : vector<1x64x32xf32> to vector<64x32xf32>
    %cst_94 = arith.constant dense<0.000000e+00> : vector<16x32xf32>
    %195 = tpu.matmul %192, %194, %cst_94 {dimension_numbers = #tpu.dot_dimension_numbers<[1], [0], [0], [1], [0, 0, 1, 1], [], []>} : vector<16x64xf32>, vector<64x32xf32>, vector<16x32xf32> -> vector<16x32xf32>
    %c1_95 = arith.constant 1 : index
    %c0_96 = arith.constant 0 : index
    %c0_97 = arith.constant 0 : index
    %196 = vector.load %arg10[%c1_95, %c0_96, %c0_97] : memref<2x1x32xf32, #tpu.memory_space<vmem>>, vector<1x1x32xf32>
    %197 = vector.shape_cast %196 : vector<1x1x32xf32> to vector<1x32xf32>
    %198 = vector.broadcast %197 : vector<1x32xf32> to vector<16x32xf32>
    %199 = arith.addf %195, %198 : vector<16x32xf32>
    %200 = arith.addf %183, %199 : vector<16x32xf32>
    %c1_98 = arith.constant 1 : index
    %c0_99 = arith.constant 0 : index
    %c0_100 = arith.constant 0 : index
    %201 = vector.load %arg11[%c1_98, %c0_99, %c0_100] : memref<2x1x32xf32, #tpu.memory_space<vmem>>, vector<1x1x32xf32>
    %202 = vector.shape_cast %201 : vector<1x1x32xf32> to vector<1x32xf32>
    %c1_101 = arith.constant 1 : index
    %c0_102 = arith.constant 0 : index
    %c0_103 = arith.constant 0 : index
    %203 = vector.load %arg12[%c1_101, %c0_102, %c0_103] : memref<2x1x32xf32, #tpu.memory_space<vmem>>, vector<1x1x32xf32>
    %204 = vector.shape_cast %203 : vector<1x1x32xf32> to vector<1x32xf32>
    %cst_104 = arith.constant dense<0.000000e+00> : vector<16xf32>
    %205 = vector.multi_reduction <add>, %200, %cst_104 [1] : vector<16x32xf32> to vector<16xf32>
    %206 = vector.shape_cast %205 : vector<16xf32> to vector<16x1xf32>
    %cst_105 = arith.constant 3.200000e+01 : f32
    %207 = vector.broadcast %cst_105 : f32 to vector<16x1xf32>
    %208 = arith.divf %206, %207 : vector<16x1xf32>
    %209 = vector.broadcast %208 : vector<16x1xf32> to vector<16x32xf32>
    %210 = arith.subf %200, %209 : vector<16x32xf32>
    %211 = arith.mulf %210, %210 : vector<16x32xf32>
    %cst_106 = arith.constant dense<0.000000e+00> : vector<16xf32>
    %212 = vector.multi_reduction <add>, %211, %cst_106 [1] : vector<16x32xf32> to vector<16xf32>
    %213 = vector.shape_cast %212 : vector<16xf32> to vector<16x1xf32>
    %cst_107 = arith.constant 3.200000e+01 : f32
    %214 = vector.broadcast %cst_107 : f32 to vector<16x1xf32>
    %215 = arith.divf %213, %214 : vector<16x1xf32>
    %216 = vector.broadcast %208 : vector<16x1xf32> to vector<16x32xf32>
    %217 = arith.subf %200, %216 : vector<16x32xf32>
    %cst_108 = arith.constant 9.99999974E-6 : f32
    %218 = vector.broadcast %cst_108 : f32 to vector<16x1xf32>
    %219 = arith.addf %215, %218 : vector<16x1xf32>
    %220 = math.rsqrt %219 : vector<16x1xf32>
    %221 = vector.broadcast %220 : vector<16x1xf32> to vector<16x32xf32>
    %222 = arith.mulf %217, %221 : vector<16x32xf32>
    %223 = vector.broadcast %202 : vector<1x32xf32> to vector<16x32xf32>
    %224 = arith.mulf %222, %223 : vector<16x32xf32>
    %225 = vector.broadcast %204 : vector<1x32xf32> to vector<16x32xf32>
    %226 = arith.addf %224, %225 : vector<16x32xf32>
    %c0_109 = arith.constant 0 : index
    %c0_110 = arith.constant 0 : index
    %227 = vector.load %arg13[%c0_109, %c0_110] : memref<1x32xf32, #tpu.memory_space<vmem>>, vector<1x32xf32>
    %c0_111 = arith.constant 0 : index
    %c0_112 = arith.constant 0 : index
    %228 = vector.load %arg14[%c0_111, %c0_112] : memref<1x32xf32, #tpu.memory_space<vmem>>, vector<1x32xf32>
    %cst_113 = arith.constant dense<0.000000e+00> : vector<16xf32>
    %229 = vector.multi_reduction <add>, %226, %cst_113 [1] : vector<16x32xf32> to vector<16xf32>
    %230 = vector.shape_cast %229 : vector<16xf32> to vector<16x1xf32>
    %cst_114 = arith.constant 3.200000e+01 : f32
    %231 = vector.broadcast %cst_114 : f32 to vector<16x1xf32>
    %232 = arith.divf %230, %231 : vector<16x1xf32>
    %233 = vector.broadcast %232 : vector<16x1xf32> to vector<16x32xf32>
    %234 = arith.subf %226, %233 : vector<16x32xf32>
    %235 = arith.mulf %234, %234 : vector<16x32xf32>
    %cst_115 = arith.constant dense<0.000000e+00> : vector<16xf32>
    %236 = vector.multi_reduction <add>, %235, %cst_115 [1] : vector<16x32xf32> to vector<16xf32>
    %237 = vector.shape_cast %236 : vector<16xf32> to vector<16x1xf32>
    %cst_116 = arith.constant 3.200000e+01 : f32
    %238 = vector.broadcast %cst_116 : f32 to vector<16x1xf32>
    %239 = arith.divf %237, %238 : vector<16x1xf32>
    %240 = vector.broadcast %232 : vector<16x1xf32> to vector<16x32xf32>
    %241 = arith.subf %226, %240 : vector<16x32xf32>
    %cst_117 = arith.constant 9.99999974E-6 : f32
    %242 = vector.broadcast %cst_117 : f32 to vector<16x1xf32>
    %243 = arith.addf %239, %242 : vector<16x1xf32>
    %244 = math.rsqrt %243 : vector<16x1xf32>
    %245 = vector.broadcast %244 : vector<16x1xf32> to vector<16x32xf32>
    %246 = arith.mulf %241, %245 : vector<16x32xf32>
    %247 = vector.broadcast %227 : vector<1x32xf32> to vector<16x32xf32>
    %248 = arith.mulf %246, %247 : vector<16x32xf32>
    %249 = vector.broadcast %228 : vector<1x32xf32> to vector<16x32xf32>
    %250 = arith.addf %248, %249 : vector<16x32xf32>
    %c0_118 = arith.constant 0 : index
    %c0_119 = arith.constant 0 : index
    %251 = vector.load %arg15[%c0_118, %c0_119] : memref<16x32xf32, #tpu.memory_space<vmem>>, vector<16x32xf32>
    tpu.vector_store %arg15[%c0_118, %c0_119], %250 {strides = array<i32>} : memref<16x32xf32, #tpu.memory_space<vmem>>, vector<16x32xf32>,
    %cst_120 = arith.constant 0.000000e+00 : f32
    %252 = vector.broadcast %cst_120 : f32 to vector<16x64xf32>
    %253 = tpu.concatenate %32, %145, %252 in 1 : vector<16x32xf32>, vector<16x32xf32>, vector<16x64xf32> -> vector<16x128xf32>
    %c0_121 = arith.constant 0 : index
    %c0_122 = arith.constant 0 : index
    %254 = vector.load %arg16[%c0_121, %c0_122] : memref<16x128xf32, #tpu.memory_space<vmem>>, vector<16x128xf32>
    tpu.vector_store %arg16[%c0_121, %c0_122], %253 {strides = array<i32>} : memref<16x128xf32, #tpu.memory_space<vmem>>, vector<16x128xf32>,
    return
  }
}

</mosaic_0001>

<bundles_post_ra>
// kernel: tpu_custom_call.1
= control target key start
LH: loop header
LB: loop body
LE: loop exit
PB: predicated region body
PF: predicated region fallthrough
CT: control target
= control target key end

     0   :  { %s8960_s0 = inlined_call_operand.hbm [shape: f32[16,32], index: 0, kind: input, shape index: {}]   ;;  %s8961_s1 = inlined_call_operand.vmem [shape: f32[2,32,384], index: 1, kind: input, shape index: {}]   ;;  %s8962_s2 = inlined_call_operand.hbm [shape: f32[2,1,384], index: 2, kind: input, shape index: {}]   ;;  %s8963_s3 = inlined_call_operand.hbm [shape: f32[2,32,32], index: 3, kind: input, shape index: {}]   ;;  %s8964_s4 = inlined_call_operand.vmem [shape: f32[2,1,32], index: 4, kind: input, shape index: {}]   ;;  %s8965_s5 = inlined_call_operand.vmem [shape: f32[2,1,32], index: 5, kind: input, shape index: {}]   ;;  %s8966_s6 = inlined_call_operand.vmem [shape: f32[2,1,32], index: 6, kind: input, shape index: {}]   ;;  %s8967_s7 = inlined_call_operand.hbm [shape: f32[2,32,64], index: 7, kind: input, shape index: {}]   ;;  %s8968_s8 = inlined_call_operand.vmem [shape: f32[2,1,64], index: 8, kind: input, shape index: {}]   ;;  %s8969_s9 = inlined_call_operand.vmem [shape: f32[2,64,32], index: 9, kind: input, shape index: {}]   ;;  %s8970_s10 = inlined_call_operand.vmem [shape: f32[2,1,32], index: 10, kind: input, shape index: {}]   ;;  %s8971_s11 = inlined_call_operand.vmem [shape: f32[2,1,32], index: 11, kind: input, shape index: {}]   ;;  %s8972_s12 = inlined_call_operand.vmem [shape: f32[2,1,32], index: 12, kind: input, shape index: {}]   ;;  %s8973_s13 = inlined_call_operand.vmem [shape: f32[1,32], index: 13, kind: input, shape index: {}]   ;;  %s8974_s14 = inlined_call_operand.vmem [shape: f32[1,32], index: 14, kind: input, shape index: {}]   ;;  %s8975_s15 = inlined_call_operand.hbm [shape: f32[16,32], index: 15, kind: output, shape index: {0}]   ;;  %s8976_s16 = inlined_call_operand.hbm [shape: f32[16,128], index: 16, kind: output, shape index: {1}]  }
   0x1   :  { %8977 = sst [smem:[#allocation18_spill]] %s8960_s0 }
   0x2   :  { %22 = vsyncpa [#allocation3], 0 }
   0x3   :  { %23 = vsyncpa [#allocation6], 0 }
   0x4   :  { %24 = vsyncpa [#allocation9], 0 }
   0x5   :  { %25 = vsyncpa [#allocation4], 0 }
   0x6   :  { %26 = vsyncpa [#allocation12], 0  ;;  %s7637_s21 = smov [#allocation5]  }
   0x7   :  { %s46_s22 = sshll.u32 %s7637_s21, 4  ;;  %s47_s22 = int_to_ptr.vmem [resolvable:$true] %s46_s22 }
   0x8   :  { %s7515_s23 = scalar_lea.vmem %s47_s22, 96  ;;  %p7520_p1 = scmp.lt.s32.totalorder %s47_s22, %s47_s22 }
   0x9   :  { %p7516_p0 = scmp.ne.s32.totalorder %s47_s22, %s7515_s23  ;;  %p7521_p2 = scmp.lt.s32.totalorder %s7515_s23, %s7515_s23 }
   0xb   :  { %p7522_p3 = por %p7521_p2, %p7520_p1 }
   0xd   :  { %p7523_p4 = pnand %p7522_p3, %p7516_p0 }
   0xf   :  { %7526 = shalt.err (!%p7523_p4)
}
  0x10   :  { %s7638_s24 = smov 48   ;;  %s7639_s25 = smov 3  }
  0x11   :  { %52 = dma.hbm_to_vmem [thread:$0]  %s8962_s2, 96, %s47_s22, [#allocation6], %s7638_s24, %s7638_s24, %s7639_s25  }
  0x12   :  { %s7640_s28 = smov [#allocation2]  }
  0x13   :  { %s32_s29 = sshll.u32 %s7640_s28, 4  ;;  %s33_s29 = int_to_ptr.vmem [resolvable:$true] %s32_s29 }
  0x14   :  { %s7535_s30 = scalar_lea.vmem %s33_s29, 256  ;;  %p7540_p6 = scmp.lt.s32.totalorder %s33_s29, %s33_s29 }
  0x15   :  { %p7536_p5 = scmp.ne.s32.totalorder %s33_s29, %s7535_s30  ;;  %p7541_p7 = scmp.lt.s32.totalorder %s7535_s30, %s7535_s30 }
  0x17   :  { %p7542_p8 = por %p7541_p7, %p7540_p6 }
  0x19   :  { %p7543_p9 = pnand %p7542_p8, %p7536_p5 }
  0x1b   :  { %7546 = shalt.err (!%p7543_p9)
}
  0x1c   :  { %s7641_s0 = smov 128   ;;  %s7642_s17 = smov 8  }
  0x1d   :  { %s8978_s20 = sld [smem:[#allocation18_spill]]  ;;  %s7643_s2 = smov [#allocation7]  }
  0x1e   :  { %s58_s21 = sshll.u32 %s7643_s2, 4  ;;  %s7644_s22 = smov [#allocation8]   ;;  %s59_s21 = int_to_ptr.vmem [resolvable:$true] %s58_s21 }
  0x1f   :  { %s76_s23 = sshll.u32 %s7644_s22, 4  ;;  %s7555_s24 = scalar_lea.vmem %s59_s21, 1024  ;;  %s77_s23 = int_to_ptr.vmem [resolvable:$true] %s76_s23 }
  0x20   :  { %p7556_p10 = scmp.ne.s32.totalorder %s59_s21, %s7555_s24  ;;  %p7560_p11 = scmp.lt.s32.totalorder %s59_s21, %s59_s21 }
  0x21   :  { %p7561_p12 = scmp.lt.s32.totalorder %s7555_s24, %s7555_s24 }
  0x23   :  { %38 = dma.hbm_to_vmem [thread:$0]  %s8978_s20, 256, %s33_s29, [#allocation3], %s7641_s0, %s7641_s0, %s7642_s17  }
  0x24   :  { %p7562_p13 = por %p7561_p12, %p7560_p11 }
  0x26   :  { %p7563_p0 = pnand %p7562_p13, %p7556_p10 }
  0x28   :  { %7566 = shalt.err (!%p7563_p0)
}
  0x29   :  { %64 = dma.hbm_to_vmem [thread:$0]  %s8963_s3, 1024, %s59_s21, [#allocation6], %s7641_s0, %s7641_s0, %s7642_s17  }
  0x2a   :  { %s7575_s27 = scalar_lea.vmem %s77_s23, 1024  ;;  %p7580_p2 = scmp.lt.s32.totalorder %s77_s23, %s77_s23 }
  0x2b   :  { %p7576_p1 = scmp.ne.s32.totalorder %s77_s23, %s7575_s27  ;;  %p7581_p3 = scmp.lt.s32.totalorder %s7575_s27, %s7575_s27 }
  0x2d   :  { %p7582_p4 = por %p7581_p3, %p7580_p2 }
  0x2f   :  { %p7583_p5 = pnand %p7582_p4, %p7576_p1 }
  0x31   :  { %7586 = shalt.err (!%p7583_p5)
}
  0x32   :  { %82 = dma.hbm_to_vmem [thread:$0]  %s8967_s7, 1024, %s77_s23, [#allocation9], %s7641_s0, %s7641_s0, %s7642_s17  }
  0x33   :  { %7627 = dma.done.wait [#allocation3], 256  }
  0x34   :  { %7628 = vsyncadd [#allocation3], 4294967040 }
  0x35   :  { %7629 = dma.done.wait [#allocation6], 1120  }
  0x36   :  { %7630 = vsyncadd [#allocation6], 4294966176 }
  0x37   :  { %7631 = dma.done.wait [#allocation9], 1024  }
  0x38   :  { %7632 = vsyncadd [#allocation9], 4294966272  ;;  %v7645_v0 = vmov 0.0   ;;  %v121_v1 = vld [vmem:[%s8961_s1 + $0x50] sm:$0xff]  ;;  %v120_v2 = vld [vmem:[%s8961_s1 + $0x48] sm:$0xff]  ;;  %vm140_vm0 = vcmask 261120   ;;  %v125_v15 = vlaneseq }
  0x39   :  { %211 = vmatprep.mubr.f32.mxu0 %v7645_v0  ;;  %7148 = vmatprep.subr.mxu1 %v7645_v0  ;;  %v118_v3 = vld [vmem:[%s8961_s1 + $0x38] sm:$0xff]  ;;  %v117_v4 = vld [vmem:[%s8961_s1 + $0x30] sm:$0xff]  ;;  %v115_v5 = vld [vmem:[%s8961_s1 + $0x20] sm:$0xff]  ;;  %s7646_s22 = smov 112   ;;  %s7647_s23 = smov 120   ;;  %vm7649_vm1 = vmmov 0  }
  0x3a   :  { %171 = vmatprep.subr.mxu0 %v121_v1  ;;  %v114_v6 = vld [vmem:[%s8961_s1 + $0x18] sm:$0xff]  ;;  %v112_v7 = vld [vmem:[%s8961_s1 + $0x8] sm:$0xff]  ;;  %v111_v8 = vld [vmem:[%s8961_s1] sm:$0xff]  ;;  %v7807_v16 = vshrl.u32 %v125_v15, 7  ;;  %s7648_s24 = smov 104   ;;  %7150 = vmatprep.mubr.msk.f32.mxu1 %vm7649_vm1, %v7645_v0  ;;  %vm1175_vm2 = vcmask 64512  }
  0x3b   :  { %172 = vmatpush1.msra.mxu0 %v120_v2  ;;  %v109_v9 = vld [vmem:[#allocation2] sm:$0xff]  ;;  %v110_v10 = vld [vmem:[#allocation2 + $0x8] sm:$0xff]  ;;  %v122_v11 = vld [vmem:[%s8961_s1 + $0x58] sm:$0xff]  ;;  %v7650_v36 = vmov 1983009808   ;;  %s7652_s25 = smov 16  }
  0x3c   :  { %173 = vmatprep.subr.mxu0 %v118_v3  ;;  %v119_v12 = vld [vmem:[%s8961_s1 + $0x40] sm:$0xff]  ;;  %v116_v13 = vld [vmem:[%s8961_s1 + $0x28] sm:$0xff]  ;;  %v113_v14 = vld [vmem:[%s8961_s1 + $0x10] sm:$0xff]  ;;  %v127_v17 = vsub.s32 0, %v7807_v16  ;;  %v131_v20 = vsub.s32 1, %v7807_v16  ;;  %v135_v30 = vsub.s32 2, %v7807_v16  ;;  %v322_v37 = vunpack.c.l.s4 %v7650_v36 }
  0x3d   :  { %174 = vmatpush1.msra.mxu0 %v117_v4  ;;  %v123_v18 = vld [vmem:[#allocation5] sm:$0x7]  ;;  %v7651_v38 = vmov 1934713408   ;;  %s7653_s26 = smov 24   ;;  %vm2170_vm3 = vcmask 130048  }
  0x3e   :  { %175 = vmatprep.subr.mxu0 %v115_v5  ;;  %v128_v19 = vrot.slane %v123_v18, %v127_v17  ;;  %v132_v23 = vrot.slane %v123_v18, %v131_v20  ;;  %v136_v31 = vrot.slane %v123_v18, %v135_v30  ;;  %v354_v39 = vunpack.c.l.s4 %v7651_v38 }
  0x3f   :  { %176 = vmatpush1.msra.mxu0 %v114_v6  ;;  %v323_v40 = vunpack.c.0.s8 %v322_v37  ;;  %vm2173_vm4 = vcmask 195584   ;;  %vm3310_vm5 = vcmask 523264  }
  0x40   :  { %177 = vmatprep.subr.mxu0 %v112_v7  ;;  %v355_v43 = vunpack.c.0.s8 %v354_v39 }
  0x41   :  { %178 = vmatpush1.msra.mxu0 %v111_v8  ;;  %v7851_v44 = vsub.s32 %v323_v40, %v7807_v16 }
  0x42   :  { %6866 = vmatmul.mubr.msk.f32.vlgmr.msra.gmra.mxu0 %vm140_vm0, %v109_v9  ;;  %7137 = vmatprep.subr.mxu0 %v122_v11  ;;  %v7854_v51 = vsub.s32 %v355_v43, %v7807_v16 }
  0x43   :  { %217 = vmatprep.mubr.f32.mxu0 %v7645_v0  ;;  %7138 = vmatpush3.msra.mxu0 %v122_v11 }
  0x44   :  { %7139 = vmatprep.subr.mxu0 %v119_v12 }
  0x45   :  { %7140 = vmatpush3.msra.mxu0 %v119_v12 }
  0x46   :  { %6867 = vmatmul.mubr.msk.f32.gmra.mxu0 %vm140_vm0, %v110_v10  ;;  %7141 = vmatprep.subr.mxu0 %v116_v13 }
  0x47   :  { %7145 = vmatprep.mubr.msk.f32.mxu0 %vm140_vm0, %v109_v9  ;;  %7142 = vmatpush3.msra.mxu0 %v116_v13 }
  0x48   :  { %7143 = vmatprep.subr.mxu0 %v113_v14 }
  0x49   :  { %7144 = vmatpush3.msra.mxu0 %v113_v14 }
  0x4a   :  { %7146 = vmatmul.mubr.msk.f32.vlgmr.msra.gmra.mxu0 %vm140_vm0, %v110_v10  ;;  %7153 = vmatprep.subr.mxu0 %v7645_v0 }
  0x4b   :  { %7155 = vmatprep.mubr.msk.f32.mxu0 %vm7649_vm1, %v7645_v0 }
 0x102   :  { %v213_v21 = vpop.f32.mrf.mxu0 }
 0x103   :  { %v214_v22 = vadd.f32 %v213_v21, %v128_v19 }
 0x104   :  { %v215_v24 = vpop.f32.mrf.mxu0 }
 0x105   :  { %307 = vrot.lane.b32.xlu0 %v214_v22, %s7646_s22  ;;  %301 = vrot.lane.b32.xlu1 %v214_v22, %s7647_s23  ;;  %v216_v25 = vadd.f32 %v215_v24, %v132_v23 }
 0x106   :  { %v219_v26 = vpop.f32.mrf.mxu0 }
 0x107   :  { %v7821_v28 = vadd.f32 %v219_v26, %v128_v19 }
 0x108   :  { %v221_v27 = vpop.f32.mrf.mxu0 }
 0x109   :  { %593 = vrot.lane.b32.xlu0 %v216_v25, %s7647_s23  ;;  %313 = vrot.lane.b32.xlu1 %v214_v22, %s7648_s24  ;;  %v7823_v29 = vadd.f32 %v221_v27, %v132_v23 }
 0x10a   :  { %v7147_v32 = vpop.f32.mrf.mxu0 }
 0x10b   :  { %v7844_v33 = vadd.f32 %v7147_v32, %v136_v31 }
 0x10c   :  { %v290_v34 = vpop.f32.mrf.mxu0 }
 0x10d   :  { %599 = vrot.lane.b32.xlu0 %v216_v25, %s7646_s22  ;;  %605 = vrot.lane.b32.xlu1 %v216_v25, %s7648_s24  ;;  %v7846_v35 = vadd.f32 %v290_v34, %v136_v31 }
 0x111   :  { %595 = vrot.lane.b32.xlu0 %v7823_v29, %s7647_s23  ;;  %303 = vrot.lane.b32.xlu1 %v7821_v28, %s7647_s23 }
 0x115   :  { %607 = vrot.lane.b32.xlu0 %v7823_v29, %s7648_s24  ;;  %601 = vrot.lane.b32.xlu1 %v7823_v29, %s7646_s22 }
 0x119   :  { %309 = vrot.lane.b32.xlu0 %v7821_v28, %s7646_s22  ;;  %315 = vrot.lane.b32.xlu1 %v7821_v28, %s7648_s24 }
 0x11d   :  { %885 = vrot.lane.b32.xlu1 %v7846_v35, %s7647_s23 }
 0x177   :  { %v308_v41 = vpop.permute.xlu0 %307  ;;  %v302_v42 = vpop.permute.xlu1 %301 }
 0x178   :  { %v319_v45 = vcombine.low %v214_v22, %v308_v41  ;;  %v320_v46 = vcombine.high %v214_v22, %v308_v41 }
 0x17a   :  { %v327_v52 = vrot.slane %v319_v45, %v7851_v44  ;;  %v334_v53 = vrot.slane %v320_v46, %v7851_v44 }
 0x17b   :  { %v594_v47 = vpop.permute.xlu0 %593  ;;  %v314_v48 = vpop.permute.xlu1 %313 }
 0x17c   :  { %v335_v49 = vcombine.low %v302_v42, %v314_v48  ;;  %v336_v50 = vcombine.high %v302_v42, %v314_v48 }
 0x17e   :  { %v343_v54 = vrot.slane %v335_v49, %v7851_v44  ;;  %v350_v55 = vrot.slane %v336_v50, %v7851_v44 }
 0x17f   :  { %v600_v56 = vpop.permute.xlu0 %599  ;;  %v606_v57 = vpop.permute.xlu1 %605 }
 0x180   :  { %v351_v58 = vcombine.low %v327_v52, %v343_v54  ;;  %v352_v59 = vcombine.high %v327_v52, %v343_v54  ;;  %v367_v60 = vcombine.low %v334_v53, %v350_v55  ;;  %v368_v61 = vcombine.high %v334_v53, %v350_v55 }
 0x181   :  { %v611_v62 = vcombine.low %v216_v25, %v600_v56  ;;  %v612_v63 = vcombine.high %v216_v25, %v600_v56  ;;  %v627_v1 = vcombine.low %v594_v47, %v606_v57  ;;  %v628_v2 = vcombine.high %v594_v47, %v606_v57 }
 0x182   :  { %v359_v3 = vrot.slane %v351_v58, %v7854_v51  ;;  %v366_v4 = vrot.slane %v352_v59, %v7854_v51  ;;  %v7863_v5 = vrot.slane %v367_v60, %v7854_v51  ;;  %v7866_v6 = vrot.slane %v368_v61, %v7854_v51 }
 0x183   :  { %v619_v7 = vrot.slane %v611_v62, %v7851_v44  ;;  %v626_v8 = vrot.slane %v612_v63, %v7851_v44  ;;  %v635_v9 = vrot.slane %v627_v1, %v7851_v44  ;;  %v642_v10 = vrot.slane %v628_v2, %v7851_v44  ;;  %v596_v11 = vpop.permute.xlu0 %595  ;;  %v304_v12 = vpop.permute.xlu1 %303 }
 0x184   :  { %v455_v13 = vcombine.low %v359_v3, %v366_v4  ;;  %v6870_v14 = vcombine.high %v359_v3, %v366_v4  ;;  %v471_v15 = vcombine.low %v7863_v5, %v7866_v6  ;;  %v6871_v38 = vcombine.high %v7863_v5, %v7866_v6 }
 0x185   :  { %v643_v18 = vcombine.low %v619_v7, %v635_v9  ;;  %v644_v19 = vcombine.high %v619_v7, %v635_v9  ;;  %v659_v21 = vcombine.low %v626_v8, %v642_v10  ;;  %v660_v22 = vcombine.high %v626_v8, %v642_v10 }
 0x186   :  { %v7883_v39 = vrot.slane %v455_v13, %v7851_v44  ;;  %v7886_v40 = vrot.slane %v6870_v14, %v7851_v44  ;;  %v7889_v41 = vrot.slane %v471_v15, %v7851_v44 }
 0x187   :  { %v651_v23 = vrot.slane %v643_v18, %v7854_v51  ;;  %v658_v24 = vrot.slane %v644_v19, %v7854_v51  ;;  %v667_v25 = vrot.slane %v659_v21, %v7854_v51  ;;  %v674_v26 = vrot.slane %v660_v22, %v7854_v51  ;;  %v608_v27 = vpop.permute.xlu0 %607  ;;  %v602_v31 = vpop.permute.xlu1 %601 }
 0x188   :  { %v695_v32 = vcombine.low %v596_v11, %v608_v27  ;;  %v696_v34 = vcombine.high %v596_v11, %v608_v27  ;;  %v679_v36 = vcombine.low %v7823_v29, %v602_v31  ;;  %v680_v37 = vcombine.high %v7823_v29, %v602_v31 }
 0x189   :  { %v747_v46 = vcombine.low %v651_v23, %v658_v24  ;;  %v6874_v47 = vcombine.high %v651_v23, %v658_v24  ;;  %v763_v48 = vcombine.low %v667_v25, %v674_v26  ;;  %v6875_v49 = vcombine.high %v667_v25, %v674_v26 }
 0x18a   :  { %v703_v42 = vrot.slane %v695_v32, %v7851_v44  ;;  %v710_v43 = vrot.slane %v696_v34, %v7851_v44  ;;  %v687_v45 = vrot.slane %v679_v36, %v7851_v44  ;;  %v694_v29 = vrot.slane %v680_v37, %v7851_v44 }
 0x18b   :  { %v310_v50 = vpop.permute.xlu0 %309  ;;  %v316_v52 = vpop.permute.xlu1 %315  ;;  %v754_v13 = vrot.slane %v747_v46, %v7851_v44  ;;  %v762_v14 = vrot.slane %v6874_v47, %v7851_v44  ;;  %v770_v15 = vrot.slane %v763_v48, %v7851_v44  ;;  %v778_v18 = vrot.slane %v6875_v49, %v7851_v44 }
 0x18c   :  { %v711_v53 = vcombine.low %v687_v45, %v703_v42  ;;  %v712_v54 = vcombine.high %v687_v45, %v703_v42  ;;  %v727_v55 = vcombine.low %v694_v29, %v710_v43  ;;  %v728_v56 = vcombine.high %v694_v29, %v710_v43 }
 0x18d   :  { %v387_v57 = vcombine.low %v7821_v28, %v310_v50  ;;  %v388_v58 = vcombine.high %v7821_v28, %v310_v50  ;;  %v403_v59 = vcombine.low %v304_v12, %v316_v52  ;;  %v404_v60 = vcombine.high %v304_v12, %v316_v52 }
 0x18e   :  { %v719_v61 = vrot.slane %v711_v53, %v7854_v51  ;;  %v726_v62 = vrot.slane %v712_v54, %v7854_v51  ;;  %v735_v63 = vrot.slane %v727_v55, %v7854_v51  ;;  %v742_v1 = vrot.slane %v728_v56, %v7854_v51 }
 0x18f   :  { %v395_v2 = vrot.slane %v387_v57, %v7851_v44  ;;  %v402_v3 = vrot.slane %v388_v58, %v7851_v44  ;;  %v411_v4 = vrot.slane %v403_v59, %v7851_v44  ;;  %v418_v5 = vrot.slane %v404_v60, %v7851_v44 }
 0x190   :  { %v815_v6 = vcombine.low %v719_v61, %v726_v62  ;;  %v6876_v28 = vcombine.high %v719_v61, %v726_v62  ;;  %v831_v7 = vcombine.low %v735_v63, %v742_v1  ;;  %v6877_v8 = vcombine.high %v735_v63, %v742_v1 }
 0x191   :  { %v419_v9 = vcombine.low %v395_v2, %v411_v4  ;;  %v420_v10 = vcombine.high %v395_v2, %v411_v4  ;;  %v435_v11 = vcombine.low %v402_v3, %v418_v5  ;;  %v436_v12 = vcombine.high %v402_v3, %v418_v5 }
 0x192   :  { %v7914_v24 = vrot.slane %v815_v6, %v7851_v44  ;;  %v7917_v25 = vrot.slane %v6876_v28, %v7851_v44  ;;  %v7920_v26 = vrot.slane %v831_v7, %v7851_v44  ;;  %v7923_v27 = vrot.slane %v6877_v8, %v7851_v44 }
 0x193   :  { %v427_v19 = vrot.slane %v419_v9, %v7854_v51  ;;  %v434_v21 = vrot.slane %v420_v10, %v7854_v51  ;;  %v443_v22 = vrot.slane %v435_v11, %v7854_v51  ;;  %v450_v23 = vrot.slane %v436_v12, %v7854_v51 }
 0x194   :  { %v779_v37 = vcombine.low %v754_v13, %v762_v14  ;;  %v780_v42 = vcombine.high %v754_v13, %v762_v14  ;;  %v795_v43 = vcombine.low %v770_v15, %v778_v18  ;;  %v486_v45 = vrot.slane %v6871_v38, %v7851_v44 }
 0x195   :  { %v523_v31 = vcombine.low %v427_v19, %v434_v21  ;;  %v6872_v32 = vcombine.high %v427_v19, %v434_v21  ;;  %v539_v34 = vcombine.low %v443_v22, %v450_v23  ;;  %v6873_v36 = vcombine.high %v443_v22, %v450_v23 }
 0x196   :  { %v796_v48 = vcombine.high %v770_v15, %v778_v18  ;;  %v787_v50 = vrot.slane %v779_v37, %v7854_v51  ;;  %v803_v52 = vrot.slane %v795_v43, %v7854_v51  ;;  %v487_v53 = vcombine.low %v7883_v39, %v7886_v40 }
 0x197   :  { %v7927_v29 = vrot.slane %v523_v31, %v7851_v44  ;;  %v538_v46 = vrot.slane %v6872_v32, %v7851_v44  ;;  %v546_v47 = vrot.slane %v539_v34, %v7851_v44  ;;  %v554_v49 = vrot.slane %v6873_v36, %v7851_v44 }
 0x198   :  { %v847_v38 = vcombine.low %v7914_v24, %v7917_v25  ;;  %v863_v54 = vcombine.low %v7920_v26, %v7923_v27  ;;  %v488_v55 = vcombine.high %v7883_v39, %v7886_v40  ;;  %v811_v56 = vcombine.low %v787_v50, %v803_v52 }
 0x199   :  { %v812_v57 = vcombine.high %v787_v50, %v803_v52  ;;  %v495_v58 = vrot.slane %v487_v53, %v7854_v51  ;;  %v503_v59 = vcombine.low %v7889_v41, %v486_v45  ;;  %v504_v60 = vcombine.high %v7889_v41, %v486_v45 }
 0x19a   :  { %v794_v61 = vrot.slane %v780_v42, %v7854_v51  ;;  %v810_v62 = vrot.slane %v796_v48, %v7854_v51  ;;  %v555_v63 = vcombine.low %v7927_v29, %v538_v46  ;;  %v571_v1 = vcombine.low %v546_v47, %v554_v49  ;;  %7149 = vmatpush3.xpose.msk.msra.mxu1 %vm1175_vm2, %v811_v56 }
 0x19b   :  { %7154 = vmatpush3.xpose.msk.msra.mxu0 %vm1175_vm2, %v812_v57  ;;  %v511_v39 = vrot.slane %v503_v59, %v7854_v51  ;;  %7158 = vmatprep.subr.mxu1 %v7645_v0  ;;  %v855_v40 = vrot.slane %v847_v38, %v7854_v51  ;;  %v871_v41 = vrot.slane %v863_v54, %v7854_v51 }
 0x19c   :  { %7163 = vmatprep.subr.mxu0 %v7645_v0  ;;  %v502_v4 = vrot.slane %v488_v55, %v7854_v51  ;;  %v518_v5 = vrot.slane %v504_v60, %v7854_v51  ;;  %v848_v6 = vcombine.high %v7914_v24, %v7917_v25  ;;  %v864_v28 = vcombine.high %v7920_v26, %v7923_v27 }
 0x19d   :  { %v519_v2 = vcombine.low %v495_v58, %v511_v39  ;;  %v520_v3 = vcombine.high %v495_v58, %v511_v39  ;;  %v813_v7 = vcombine.low %v794_v61, %v810_v62  ;;  %v814_v8 = vcombine.high %v794_v61, %v810_v62 }
 0x19e   :  { %v563_v9 = vrot.slane %v555_v63, %v7854_v51  ;;  %v579_v10 = vrot.slane %v571_v1, %v7854_v51  ;;  %v556_v11 = vcombine.high %v7927_v29, %v538_v46  ;;  %v879_v12 = vcombine.low %v855_v40, %v871_v41  ;;  %v886_v63 = vpop.permute.xlu1 %885 }
 0x19f   :  { %7151 = vmatmul.mubr.msk.f32.vlgmr.msra.gmra.mxu1 %vm1175_vm2, %v519_v2  ;;  %7156 = vmatmul.mubr.msk.f32.vlgmr.msra.gmra.mxu0 %vm1175_vm2, %v520_v3  ;;  %v880_v13 = vcombine.high %v855_v40, %v871_v41  ;;  %v572_v14 = vcombine.high %v546_v47, %v554_v49  ;;  %v521_v15 = vcombine.low %v502_v4, %v518_v5 }
 0x1a0   :  { %7159 = vmatpush3.xpose.msk.msra.mxu1 %vm1175_vm2, %v813_v7  ;;  %7164 = vmatpush3.xpose.msk.msra.mxu0 %vm1175_vm2, %v814_v8  ;;  %v522_v18 = vcombine.high %v502_v4, %v518_v5  ;;  %v862_v19 = vrot.slane %v848_v6, %v7854_v51  ;;  %v878_v21 = vrot.slane %v864_v28, %v7854_v51 }
 0x1a1   :  { %7160 = vmatprep.mubr.msk.f32.mxu1 %vm7649_vm1, %v7645_v0  ;;  %7165 = vmatprep.mubr.msk.f32.mxu0 %vm7649_vm1, %v7645_v0  ;;  %v587_v22 = vcombine.low %v563_v9, %v579_v10  ;;  %v588_v23 = vcombine.high %v563_v9, %v579_v10  ;;  %v570_v24 = vrot.slane %v556_v11, %v7854_v51 }
 0x1a2   :  { %7168 = vmatprep.subr.mxu1 %v7645_v0  ;;  %7173 = vmatprep.subr.mxu0 %v7645_v0  ;;  %v586_v25 = vrot.slane %v572_v14, %v7854_v51  ;;  %v881_v26 = vcombine.low %v862_v19, %v878_v21  ;;  %v882_v27 = vcombine.high %v862_v19, %v878_v21 }
 0x1a3   :  { %7161 = vmatmul.mubr.msk.f32.vlgmr.msra.gmra.mxu1 %vm1175_vm2, %v521_v15  ;;  %7166 = vmatmul.mubr.msk.f32.vlgmr.msra.gmra.mxu0 %vm1175_vm2, %v522_v18 }
 0x1a4   :  { %7169 = vmatpush3.xpose.msk.msra.mxu1 %vm1175_vm2, %v879_v12  ;;  %7174 = vmatpush3.xpose.msk.msra.mxu0 %vm1175_vm2, %v880_v13  ;;  %v589_v31 = vcombine.low %v570_v24, %v586_v25  ;;  %v590_v32 = vcombine.high %v570_v24, %v586_v25 }
 0x1a5   :  { %7170 = vmatprep.mubr.msk.f32.mxu1 %vm7649_vm1, %v7645_v0  ;;  %7175 = vmatprep.mubr.msk.f32.mxu0 %vm7649_vm1, %v7645_v0 }
 0x1a6   :  { %7178 = vmatprep.subr.mxu1 %v7645_v0  ;;  %7183 = vmatprep.subr.mxu0 %v7645_v0 }
 0x1a7   :  { %7171 = vmatmul.mubr.msk.f32.vlgmr.msra.gmra.mxu1 %vm1175_vm2, %v587_v22  ;;  %7176 = vmatmul.mubr.msk.f32.vlgmr.msra.gmra.mxu0 %vm1175_vm2, %v588_v23 }
 0x1a8   :  { %7179 = vmatpush3.xpose.msk.msra.mxu1 %vm1175_vm2, %v881_v26  ;;  %7184 = vmatpush3.xpose.msk.msra.mxu0 %vm1175_vm2, %v882_v27 }
 0x1a9   :  { %7180 = vmatprep.mubr.msk.f32.mxu1 %vm7649_vm1, %v7645_v0  ;;  %7185 = vmatprep.mubr.msk.f32.mxu0 %vm7649_vm1, %v7645_v0 }
 0x1aa   :  { %7188 = vmatprep.subr.mxu1 %v7645_v0  ;;  %7193 = vmatprep.subr.mxu0 %v7645_v0 }
 0x1ab   :  { %7181 = vmatmul.mubr.msk.f32.vlgmr.msra.gmra.mxu1 %vm1175_vm2, %v589_v31  ;;  %7186 = vmatmul.mubr.msk.f32.vlgmr.msra.gmra.mxu0 %vm1175_vm2, %v590_v32 }
 0x1ac   :  { %7190 = vmatprep.mubr.msk.f32.mxu1 %vm7649_vm1, %v7645_v0  ;;  %7195 = vmatprep.mubr.msk.f32.mxu0 %vm7649_vm1, %v7645_v0 }
 0x25f   :  { %v1248_v34 = vpop.f32.mrf.mxu1  ;;  %v1324_v36 = vpop.f32.mrf.mxu0 }
 0x260   :  { %v1787_v37 = vsel %vm1175_vm2, %v1324_v36, -inf  ;;  %v1784_v42 = vsel %vm1175_vm2, %v1248_v34, -inf }
 0x261   :  { %1788 = vmax.xlane.f32.xlu1 %v1787_v37  ;;  %v7157_v43 = vpop.f32.mrf.mxu0  ;;  %1785 = vmax.xlane.f32.xlu0 %v1784_v42  ;;  %v7152_v45 = vpop.f32.mrf.mxu1 }
 0x263   :  { %v1400_v29 = vpop.f32.mrf.mxu1  ;;  %v1476_v46 = vpop.f32.mrf.mxu0 }
 0x264   :  { %v1790_v47 = vsel %vm1175_vm2, %v1400_v29, -inf  ;;  %v1793_v53 = vsel %vm1175_vm2, %v1476_v46, -inf }
 0x265   :  { %v7167_v48 = vpop.f32.mrf.mxu0  ;;  %1791 = vmax.xlane.f32.xlu0 %v1790_v47  ;;  %v7162_v49 = vpop.f32.mrf.mxu1 }
 0x267   :  { %v1552_v50 = vpop.f32.mrf.mxu1  ;;  %v1628_v52 = vpop.f32.mrf.mxu0 }
 0x268   :  { %v1796_v38 = vsel %vm1175_vm2, %v1552_v50, -inf  ;;  %v1799_v58 = vsel %vm1175_vm2, %v1628_v52, -inf }
 0x269   :  { %1794 = vmax.xlane.f32.xlu0 %v1793_v53  ;;  %v7177_v54 = vpop.f32.mrf.mxu0  ;;  %1797 = vmax.xlane.f32.xlu1 %v1796_v38  ;;  %v7172_v55 = vpop.f32.mrf.mxu1 }
 0x26b   :  { %v1704_v56 = vpop.f32.mrf.mxu1  ;;  %v1780_v57 = vpop.f32.mrf.mxu0 }
 0x26c   :  { %v1802_v59 = vsel %vm1175_vm2, %v1704_v56, -inf  ;;  %v1805_v62 = vsel %vm1175_vm2, %v1780_v57, -inf }
 0x26d   :  { %1800 = vmax.xlane.f32.xlu0 %v1799_v58  ;;  %v7187_v60 = vpop.f32.mrf.mxu0  ;;  %1803 = vmax.xlane.f32.xlu1 %v1802_v59  ;;  %v7182_v61 = vpop.f32.mrf.mxu1 }
 0x271   :  { %1806 = vmax.xlane.f32.xlu0 %v1805_v62 }
 0x27e   :  { %897 = vrot.lane.b32.xlu1 %v7846_v35, %s7648_s24 }
 0x287   :  { %891 = vrot.lane.b32.xlu0 %v7846_v35, %s7646_s22 }
 0x2ea   :  { %v1786_v1 = vpop.xlane.xlu0 %1785  ;;  %v1789_v39 = vpop.xlane.xlu1 %1788 }
 0x2eb   :  { %v1808_v40 = vsub.f32 %v1248_v34, %v1786_v1  ;;  %v1809_v41 = vsub.f32 %v1324_v36, %v1789_v39 }
 0x2ed   :  { %v1816_v2 = vmul.f32 1.442695, %v1808_v40  ;;  %v1818_v3 = vmul.f32 1.442695, %v1809_v41 }
 0x2ee   :  { %v1792_v4 = vpop.xlane.xlu0 %1791 }
 0x2ef   :  { %7421 = vpow2.f32 %v1816_v2  ;;  %v1810_v5 = vsub.f32 %v1400_v29, %v1792_v4 }
 0x2f0   :  { %7423 = vpow2.f32 %v1818_v3 }
 0x2f1   :  { %v1820_v6 = vmul.f32 1.442695, %v1810_v5 }
 0x2f2   :  { %v1795_v28 = vpop.xlane.xlu0 %1794  ;;  %v1798_v7 = vpop.xlane.xlu1 %1797 }
 0x2f3   :  { %7425 = vpow2.f32 %v1820_v6  ;;  %v1811_v8 = vsub.f32 %v1476_v46, %v1795_v28  ;;  %v1812_v9 = vsub.f32 %v1552_v50, %v1798_v7 }
 0x2f5   :  { %v1822_v10 = vmul.f32 1.442695, %v1811_v8  ;;  %v1824_v11 = vmul.f32 1.442695, %v1812_v9 }
 0x2f6   :  { %v1801_v12 = vpop.xlane.xlu0 %1800  ;;  %v1804_v13 = vpop.xlane.xlu1 %1803 }
 0x2f7   :  { %7427 = vpow2.f32 %v1822_v10  ;;  %v1813_v14 = vsub.f32 %v1628_v52, %v1801_v12  ;;  %v1814_v15 = vsub.f32 %v1704_v56, %v1804_v13 }
 0x2f8   :  { %7429 = vpow2.f32 %v1824_v11 }
 0x2f9   :  { %v1826_v18 = vmul.f32 1.442695, %v1813_v14  ;;  %v1828_v19 = vmul.f32 1.442695, %v1814_v15 }
 0x2fa   :  { %v1807_v21 = vpop.xlane.xlu0 %1806  ;;  %v898_v22 = vpop.permute.xlu1 %897 }
 0x2fb   :  { %7431 = vpow2.f32 %v1826_v18  ;;  %v1815_v23 = vsub.f32 %v1780_v57, %v1807_v21  ;;  %v919_v25 = vcombine.low %v886_v63, %v898_v22  ;;  %v920_v31 = vcombine.high %v886_v63, %v898_v22 }
 0x2fc   :  { %v8016_v24 = vpop.eup %7421  ;;  %7433 = vpow2.f32 %v1828_v19 }
 0x2fd   :  { %v8018_v26 = vpop.eup %7423  ;;  %v1830_v27 = vmul.f32 1.442695, %v1815_v23  ;;  %v1832_v32 = vsel %vm1175_vm2, %v8016_v24, 0.0  ;;  %v927_v45 = vrot.slane %v919_v25, %v7851_v44  ;;  %v934_v29 = vrot.slane %v920_v31, %v7851_v44 }
 0x2fe   :  { %v892_v34 = vpop.permute.xlu0 %891  ;;  %1833 = vadd.xlane.f32.xlu1 %v1832_v32  ;;  %v1835_v36 = vsel %vm1175_vm2, %v8018_v26, 0.0 }
 0x2ff   :  { %7435 = vpow2.f32 %v1830_v27  ;;  %v903_v37 = vcombine.low %v7846_v35, %v892_v34  ;;  %v904_v42 = vcombine.high %v7846_v35, %v892_v34  ;;  %1836 = vadd.xlane.f32.xlu0 %v1835_v36 }
 0x300   :  { %v8026_v43 = vpop.eup %7425 }
 0x301   :  { %v911_v46 = vrot.slane %v903_v37, %v7851_v44  ;;  %v918_v47 = vrot.slane %v904_v42, %v7851_v44  ;;  %v1838_v48 = vsel %vm1175_vm2, %v8026_v43, 0.0 }
 0x302   :  { %1839 = vadd.xlane.f32.xlu1 %v1838_v48 }
 0x303   :  { %v935_v49 = vcombine.low %v911_v46, %v927_v45  ;;  %v936_v50 = vcombine.high %v911_v46, %v927_v45  ;;  %v951_v52 = vcombine.low %v918_v47, %v934_v29  ;;  %v952_v53 = vcombine.high %v918_v47, %v934_v29 }
 0x304   :  { %v8034_v35 = vpop.eup %7427 }
 0x305   :  { %v8036_v38 = vpop.eup %7429  ;;  %v943_v54 = vrot.slane %v935_v49, %v7854_v51  ;;  %v950_v55 = vrot.slane %v936_v50, %v7854_v51  ;;  %v959_v56 = vrot.slane %v951_v52, %v7854_v51  ;;  %v966_v57 = vrot.slane %v952_v53, %v7854_v51 }
 0x306   :  { %v1841_v58 = vsel %vm1175_vm2, %v8034_v35, 0.0  ;;  %v1844_v59 = vsel %vm1175_vm2, %v8036_v38, 0.0 }
 0x307   :  { %v1039_v60 = vcombine.low %v943_v54, %v950_v55  ;;  %v6878_v61 = vcombine.high %v943_v54, %v950_v55  ;;  %v1055_v62 = vcombine.low %v959_v56, %v966_v57  ;;  %v6879_v63 = vcombine.high %v959_v56, %v966_v57  ;;  %1842 = vadd.xlane.f32.xlu0 %v1841_v58 }
 0x308   :  { %v8046_v1 = vpop.eup %7431  ;;  %1845 = vadd.xlane.f32.xlu1 %v1844_v59 }
 0x309   :  { %v8048_v39 = vpop.eup %7433  ;;  %v1046_v40 = vrot.slane %v1039_v60, %v7851_v44  ;;  %v1054_v41 = vrot.slane %v6878_v61, %v7851_v44  ;;  %v1062_v2 = vrot.slane %v1055_v62, %v7851_v44  ;;  %v1070_v3 = vrot.slane %v6879_v63, %v7851_v44 }
 0x30a   :  { %v1847_v4 = vsel %vm1175_vm2, %v8046_v1, 0.0  ;;  %v1850_v5 = vsel %vm1175_vm2, %v8048_v39, 0.0 }
 0x30b   :  { %1848 = vadd.xlane.f32.xlu0 %v1847_v4  ;;  %v1071_v6 = vcombine.low %v1046_v40, %v1054_v41  ;;  %v1087_v28 = vcombine.low %v1062_v2, %v1070_v3  ;;  %v1072_v7 = vcombine.high %v1046_v40, %v1054_v41  ;;  %v1088_v8 = vcombine.high %v1062_v2, %v1070_v3 }
 0x30c   :  { %v8058_v9 = vpop.eup %7435  ;;  %1851 = vadd.xlane.f32.xlu1 %v1850_v5 }
 0x30d   :  { %v1853_v10 = vsel %vm1175_vm2, %v8058_v9, 0.0  ;;  %v1079_v11 = vrot.slane %v1071_v6, %v7854_v51  ;;  %v1095_v12 = vrot.slane %v1087_v28, %v7854_v51  ;;  %v1086_v13 = vrot.slane %v1072_v7, %v7854_v51 }
 0x30e   :  { %v1102_v14 = vrot.slane %v1088_v8, %v7854_v51 }
 0x30f   :  { %1854 = vadd.xlane.f32.xlu0 %v1853_v10  ;;  %v1103_v15 = vcombine.low %v1079_v11, %v1095_v12  ;;  %v1104_v18 = vcombine.high %v1079_v11, %v1095_v12 }
 0x310   :  { %v1105_v19 = vcombine.low %v1086_v13, %v1102_v14  ;;  %v1106_v21 = vcombine.high %v1086_v13, %v1102_v14 }
 0x311   :  { %7189 = vmatpush3.msra.mxu1 %v1103_v15  ;;  %7194 = vmatpush3.msra.mxu0 %v1104_v18 }
 0x312   :  { %7198 = vmatprep.subr.mxu1 %v7645_v0  ;;  %7203 = vmatprep.subr.mxu0 %v7645_v0 }
 0x31d   :  { %893 = vrot.lane.b32.xlu1 %v7844_v33, %s7646_s22 }
 0x321   :  { %899 = vrot.lane.b32.xlu1 %v7844_v33, %s7648_s24 }
 0x325   :  { %887 = vrot.lane.b32.xlu0 %v7844_v33, %s7647_s23 }
 0x387   :  { %v1834_v22 = vpop.xlane.xlu1 %1833 }
 0x388   :  { %v1837_v23 = vpop.xlane.xlu0 %1836  ;;  %7437 = vrcp.f32 %v1834_v22 }
 0x389   :  { %7439 = vrcp.f32 %v1837_v23 }
 0x38b   :  { %v1840_v25 = vpop.xlane.xlu1 %1839 }
 0x38c   :  { %7441 = vrcp.f32 %v1840_v25 }
 0x390   :  { %v1843_v27 = vpop.xlane.xlu0 %1842 }
 0x391   :  { %7443 = vrcp.f32 %v1843_v27  ;;  %v1846_v31 = vpop.xlane.xlu1 %1845 }
 0x392   :  { %7445 = vrcp.f32 %v1846_v31 }
 0x394   :  { %v1849_v32 = vpop.xlane.xlu0 %1848 }
 0x395   :  { %v7438_v34 = vpop.eup %7437  ;;  %7447 = vrcp.f32 %v1849_v32  ;;  %v1852_v36 = vpop.xlane.xlu1 %1851 }
 0x396   :  { %v7440_v37 = vpop.eup %7439  ;;  %7449 = vrcp.f32 %v1852_v36  ;;  %v1857_v42 = vmul.f32 %v7438_v34, %v8016_v24 }
 0x397   :  { %v1859_v45 = vmul.f32 %v7440_v37, %v8018_v26 }
 0x398   :  { %v1855_v29 = vpop.xlane.xlu0 %1854  ;;  %7191 = vmatmul.mubr.msk.f32.vlgmr.msra.gmra.mxu1 %vm1175_vm2, %v1857_v42 }
 0x399   :  { %v7442_v46 = vpop.eup %7441  ;;  %7451 = vrcp.f32 %v1855_v29  ;;  %7196 = vmatmul.mubr.msk.f32.vlgmr.msra.gmra.mxu0 %vm1175_vm2, %v1859_v45  ;;  %7199 = vmatpush3.msra.mxu1 %v1105_v19  ;;  %v894_v47 = vpop.permute.xlu1 %893 }
 0x39a   :  { %7204 = vmatpush3.msra.mxu0 %v1106_v21  ;;  %7200 = vmatprep.mubr.msk.f32.mxu1 %vm7649_vm1, %v7645_v0  ;;  %v1861_v48 = vmul.f32 %v7442_v46, %v8026_v43  ;;  %v971_v24 = vcombine.low %v7844_v33, %v894_v47  ;;  %v972_v26 = vcombine.high %v7844_v33, %v894_v47 }
 0x39b   :  { %7205 = vmatprep.mubr.msk.f32.mxu0 %vm7649_vm1, %v7645_v0  ;;  %7208 = vmatprep.subr.mxu1 %v7645_v0 }
 0x39c   :  { %v888_v49 = vpop.permute.xlu0 %887  ;;  %v1872_v50 = vcombine.low %v1857_v42, %v1861_v48  ;;  %v1873_v52 = vcombine.high %v1857_v42, %v1861_v48  ;;  %7201 = vmatmul.mubr.msk.f32.vlgmr.msra.gmra.mxu1 %vm1175_vm2, %v1861_v48  ;;  %7213 = vmatprep.subr.mxu0 %v7645_v0  ;;  %v979_v58 = vrot.slane %v971_v24, %v7851_v44 }
 0x39d   :  { %v900_v53 = vpop.permute.xlu1 %899  ;;  %7210 = vmatprep.mubr.msk.f32.mxu1 %vm7649_vm1, %v7645_v0  ;;  %v986_v33 = vrot.slane %v972_v26, %v7851_v44 }
 0x39e   :  { %v7444_v43 = vpop.eup %7443  ;;  %v987_v54 = vcombine.low %v888_v49, %v900_v53  ;;  %v988_v55 = vcombine.high %v888_v49, %v900_v53  ;;  %v1880_v63 = vrot.slane %v1872_v50, %v7851_v44  ;;  %v1887_v40 = vrot.slane %v1873_v52, %v7851_v44 }
 0x39f   :  { %v1863_v56 = vmul.f32 %v7444_v43, %v8034_v35  ;;  %v7446_v57 = vpop.eup %7445 }
 0x3a0   :  { %v995_v59 = vrot.slane %v987_v54, %v7851_v44  ;;  %v1002_v60 = vrot.slane %v988_v55, %v7851_v44  ;;  %v1865_v6 = vmul.f32 %v7446_v57, %v8036_v38 }
 0x3a1   :  { %v1888_v61 = vcombine.low %v1859_v45, %v1863_v56  ;;  %v1889_v62 = vcombine.high %v1859_v45, %v1863_v56  ;;  %7206 = vmatmul.mubr.msk.f32.vlgmr.msra.gmra.mxu0 %vm1175_vm2, %v1863_v56 }
 0x3a2   :  { %v7448_v41 = vpop.eup %7447  ;;  %v1003_v2 = vcombine.low %v979_v58, %v995_v59  ;;  %v1004_v35 = vcombine.high %v979_v58, %v995_v59  ;;  %v1019_v3 = vcombine.low %v986_v33, %v1002_v60  ;;  %v1020_v4 = vcombine.high %v986_v33, %v1002_v60  ;;  %7215 = vmatprep.mubr.msk.f32.mxu0 %vm7649_vm1, %v7645_v0 }
 0x3a3   :  { %v7450_v5 = vpop.eup %7449  ;;  %v8102_v28 = vmul.f32 %v7448_v41, %v8046_v1  ;;  %v1896_v7 = vrot.slane %v1888_v61, %v7851_v44  ;;  %v1903_v8 = vrot.slane %v1889_v62, %v7851_v44 }
 0x3a4   :  { %v1011_v10 = vrot.slane %v1003_v2, %v7854_v51  ;;  %v1018_v11 = vrot.slane %v1004_v35, %v7854_v51  ;;  %v1027_v12 = vrot.slane %v1019_v3, %v7854_v51  ;;  %v1034_v13 = vrot.slane %v1020_v4, %v7854_v51 }
 0x3a5   :  { %v8111_v14 = vmul.f32 %v7450_v5, %v8048_v39  ;;  %v1904_v15 = vcombine.low %v1880_v63, %v1896_v7  ;;  %v1905_v38 = vcombine.high %v1880_v63, %v1896_v7  ;;  %v1920_v18 = vcombine.low %v1887_v40, %v1903_v8 }
 0x3a6   :  { %v7452_v1 = vpop.eup %7451  ;;  %v1107_v19 = vcombine.low %v1011_v10, %v1018_v11  ;;  %v6880_v21 = vcombine.high %v1011_v10, %v1018_v11  ;;  %v1123_v22 = vcombine.low %v1027_v12, %v1034_v13  ;;  %v6881_v23 = vcombine.high %v1027_v12, %v1034_v13 }
 0x3a7   :  { %v1940_v25 = vcombine.low %v1865_v6, %v8111_v14  ;;  %v1941_v27 = vcombine.high %v1865_v6, %v8111_v14  ;;  %v1871_v31 = vmul.f32 %v7452_v1, %v8058_v9  ;;  %v1912_v32 = vrot.slane %v1904_v15, %v7854_v51 }
 0x3a8   :  { %v1114_v34 = vrot.slane %v1107_v19, %v7851_v44  ;;  %v1122_v39 = vrot.slane %v6880_v21, %v7851_v44  ;;  %v1130_v36 = vrot.slane %v1123_v22, %v7851_v44  ;;  %v1138_v37 = vrot.slane %v6881_v23, %v7851_v44 }
 0x3a9   :  { %v1956_v42 = vcombine.low %v8102_v28, %v1871_v31  ;;  %v1957_v45 = vcombine.high %v8102_v28, %v1871_v31  ;;  %v1919_v29 = vrot.slane %v1905_v38, %v7854_v51  ;;  %v1921_v46 = vcombine.high %v1887_v40, %v1903_v8 }
 0x3aa   :  { %v1139_v47 = vcombine.low %v1114_v34, %v1122_v39  ;;  %v1155_v48 = vcombine.low %v1130_v36, %v1138_v37  ;;  %v1140_v9 = vcombine.high %v1114_v34, %v1122_v39  ;;  %v1156_v24 = vcombine.high %v1130_v36, %v1138_v37 }
 0x3ab   :  { %v1928_v26 = vrot.slane %v1920_v18, %v7854_v51  ;;  %v1935_v49 = vrot.slane %v1921_v46, %v7854_v51  ;;  %v2008_v50 = vcombine.low %v1912_v32, %v1919_v29  ;;  %v6898_v52 = vcombine.high %v1912_v32, %v1919_v29 }
 0x3ac   :  { %v1147_v53 = vrot.slane %v1139_v47, %v7854_v51  ;;  %v1163_v43 = vrot.slane %v1155_v48, %v7854_v51  ;;  %v1154_v54 = vrot.slane %v1140_v9, %v7854_v51  ;;  %v1170_v55 = vrot.slane %v1156_v24, %v7854_v51 }
 0x3ad   :  { %v2015_v56 = vrot.slane %v2008_v50, %v7851_v44  ;;  %v2023_v57 = vrot.slane %v6898_v52, %v7851_v44  ;;  %v2024_v58 = vcombine.low %v1928_v26, %v1935_v49  ;;  %v6899_v33 = vcombine.high %v1928_v26, %v1935_v49 }
 0x3ae   :  { %v1171_v59 = vcombine.low %v1147_v53, %v1163_v43  ;;  %v1172_v60 = vcombine.high %v1147_v53, %v1163_v43  ;;  %v1173_v61 = vcombine.low %v1154_v54, %v1170_v55  ;;  %v1174_v62 = vcombine.high %v1154_v54, %v1170_v55 }
 0x3af   :  { %v2031_v63 = vrot.slane %v2024_v58, %v7851_v44  ;;  %v2039_v40 = vrot.slane %v6899_v33, %v7851_v44  ;;  %v2040_v41 = vcombine.low %v2015_v56, %v2023_v57  ;;  %v2041_v2 = vcombine.high %v2015_v56, %v2023_v57 }
 0x3b0   :  { %7209 = vmatpush3.msra.mxu1 %v1171_v59  ;;  %7214 = vmatpush3.msra.mxu0 %v1172_v60  ;;  %v1948_v35 = vrot.slane %v1940_v25, %v7851_v44  ;;  %v1955_v3 = vrot.slane %v1941_v27, %v7851_v44  ;;  %v1964_v4 = vrot.slane %v1956_v42, %v7851_v44 }
 0x3b1   :  { %7211 = vmatmul.mubr.msk.f32.vlgmr.msra.gmra.mxu1 %vm1175_vm2, %v1865_v6  ;;  %7216 = vmatmul.mubr.msk.f32.vlgmr.msra.gmra.mxu0 %vm1175_vm2, %v8102_v28  ;;  %v8141_v5 = vrot.slane %v2040_v41, %v7854_v51  ;;  %v2056_v7 = vcombine.low %v2031_v63, %v2039_v40  ;;  %v8144_v8 = vrot.slane %v2041_v2, %v7854_v51 }
 0x3b2   :  { %7218 = vmatprep.subr.mxu1 %v7645_v0  ;;  %7223 = vmatprep.subr.mxu0 %v7645_v0  ;;  %v2057_v10 = vcombine.high %v2031_v63, %v2039_v40  ;;  %v1971_v11 = vrot.slane %v1957_v45, %v7851_v44  ;;  %v1972_v12 = vcombine.low %v1948_v35, %v1964_v4 }
 0x3b3   :  { %7219 = vmatpush3.msra.mxu1 %v1173_v61  ;;  %7224 = vmatpush3.msra.mxu0 %v1174_v62  ;;  %v8150_v6 = vrot.slane %v2056_v7, %v7854_v51  ;;  %v1973_v28 = vcombine.high %v1948_v35, %v1964_v4 }
 0x3b4   :  { %7220 = vmatprep.mubr.msk.f32.mxu1 %vm7649_vm1, %v7645_v0  ;;  %7225 = vmatprep.mubr.msk.f32.mxu0 %vm7649_vm1, %v7645_v0  ;;  %v8157_v13 = vrot.slane %v2057_v10, %v7854_v51  ;;  %v1980_v15 = vrot.slane %v1972_v12, %v7854_v51  ;;  %v1988_v38 = vcombine.low %v1955_v3, %v1971_v11 }
 0x3b5   :  { %7221 = vmatmul.mubr.msk.f32.vlgmr.msra.gmra.mxu1 %vm1175_vm2, %v8111_v14  ;;  %7226 = vmatmul.mubr.msk.f32.vlgmr.msra.gmra.mxu0 %vm1175_vm2, %v1871_v31  ;;  %v2073_v18 = vcombine.high %v8141_v5, %v8150_v6  ;;  %v1987_v1 = vrot.slane %v1973_v28, %v7854_v51  ;;  %v1989_v19 = vcombine.high %v1955_v3, %v1971_v11 }
 0x3b6   :  { %v2074_v21 = vcombine.low %v8144_v8, %v8157_v13  ;;  %v1996_v22 = vrot.slane %v1988_v38, %v7854_v51  ;;  %v2072_v23 = vcombine.low %v8141_v5, %v8150_v6  ;;  %v2075_v25 = vcombine.high %v8144_v8, %v8157_v13 }
 0x3b7   :  { %v2003_v14 = vrot.slane %v1989_v19, %v7854_v51  ;;  %v2076_v27 = vcombine.low %v1980_v15, %v1987_v1  ;;  %v6900_v31 = vcombine.high %v1980_v15, %v1987_v1 }
 0x3b9   :  { %v2083_v32 = vrot.slane %v2076_v27, %v7851_v44  ;;  %v2091_v34 = vrot.slane %v6900_v31, %v7851_v44  ;;  %v2092_v39 = vcombine.low %v1996_v22, %v2003_v14  ;;  %v6901_v36 = vcombine.high %v1996_v22, %v2003_v14 }
 0x3bb   :  { %v2099_v37 = vrot.slane %v2092_v39, %v7851_v44  ;;  %v2107_v42 = vrot.slane %v6901_v36, %v7851_v44  ;;  %v2108_v45 = vcombine.low %v2083_v32, %v2091_v34  ;;  %v2109_v29 = vcombine.high %v2083_v32, %v2091_v34 }
 0x3bd   :  { %v8179_v46 = vrot.slane %v2108_v45, %v7854_v51  ;;  %v2124_v47 = vcombine.low %v2099_v37, %v2107_v42  ;;  %v8182_v48 = vrot.slane %v2109_v29, %v7854_v51  ;;  %v2125_v9 = vcombine.high %v2099_v37, %v2107_v42 }
 0x3bf   :  { %v8185_v24 = vrot.slane %v2124_v47, %v7854_v51  ;;  %v8188_v26 = vrot.slane %v2125_v9, %v7854_v51 }
 0x3c1   :  { %v2141_v49 = vcombine.high %v8179_v46, %v8185_v24  ;;  %v2142_v50 = vcombine.low %v8182_v48, %v8188_v26  ;;  %v2140_v52 = vcombine.low %v8179_v46, %v8185_v24  ;;  %v2143_v53 = vcombine.high %v8182_v48, %v8188_v26 }
 0x458   :  { %v2245_v43 = vpop.f32.mrf.mxu1 }
 0x459   :  { %v2318_v54 = vpop.f32.mrf.mxu0 }
 0x45a   :  { %v7192_v55 = vpop.f32.mrf.mxu1 }
 0x45b   :  { %v7197_v56 = vpop.f32.mrf.mxu0 }
 0x45c   :  { %v2391_v57 = vpop.f32.mrf.mxu1 }
 0x45d   :  { %v2760_v33 = vcombine.low %v2245_v43, %v2391_v57  ;;  %v2761_v59 = vcombine.high %v2245_v43, %v2391_v57 }
 0x45e   :  { %v7202_v58 = vpop.f32.mrf.mxu1 }
 0x45f   :  { %v2768_v40 = vrot.slane %v2760_v33, %v7851_v44  ;;  %v2775_v41 = vrot.slane %v2761_v59, %v7851_v44 }
 0x461   :  { %v2464_v60 = vpop.f32.mrf.mxu0 }
 0x462   :  { %v2776_v61 = vcombine.low %v2318_v54, %v2464_v60  ;;  %v2777_v62 = vcombine.high %v2318_v54, %v2464_v60 }
 0x463   :  { %v7207_v63 = vpop.f32.mrf.mxu0 }
 0x464   :  { %v2784_v2 = vrot.slane %v2776_v61, %v7851_v44  ;;  %v2791_v35 = vrot.slane %v2777_v62, %v7851_v44 }
 0x466   :  { %v2792_v3 = vcombine.low %v2768_v40, %v2784_v2  ;;  %v2793_v4 = vcombine.high %v2768_v40, %v2784_v2  ;;  %v2808_v7 = vcombine.low %v2775_v41, %v2791_v35  ;;  %v2809_v10 = vcombine.high %v2775_v41, %v2791_v35 }
 0x468   :  { %v2800_v11 = vrot.slane %v2792_v3, %v7854_v51  ;;  %v2807_v12 = vrot.slane %v2793_v4, %v7854_v51  ;;  %v2816_v28 = vrot.slane %v2808_v7, %v7854_v51  ;;  %v2823_v15 = vrot.slane %v2809_v10, %v7854_v51 }
 0x46a   :  { %v2896_v38 = vcombine.low %v2800_v11, %v2807_v12  ;;  %v6910_v1 = vcombine.high %v2800_v11, %v2807_v12  ;;  %v2912_v19 = vcombine.low %v2816_v28, %v2823_v15  ;;  %v6911_v22 = vcombine.high %v2816_v28, %v2823_v15  ;;  %v3065_v15 = vld [vmem:[#allocation7 + $0x18] sm:$0xff] }
 0x46b   :  { %7228 = vmatprep.subr.mxu1 %v3065_v15 }
 0x46c   :  { %v2903_v14 = vrot.slane %v2896_v38, %v7851_v44  ;;  %v2911_v27 = vrot.slane %v6910_v1, %v7851_v44  ;;  %v2919_v31 = vrot.slane %v2912_v19, %v7851_v44  ;;  %v2927_v32 = vrot.slane %v6911_v22, %v7851_v44  ;;  %7229 = vmatpush3.msra.mxu1 %v3065_v15 }
 0x46e   :  { %v2928_v34 = vcombine.low %v2903_v14, %v2911_v27  ;;  %v2944_v39 = vcombine.low %v2919_v31, %v2927_v32  ;;  %v2929_v36 = vcombine.high %v2903_v14, %v2911_v27  ;;  %v2945_v37 = vcombine.high %v2919_v31, %v2927_v32  ;;  %v3064_v14 = vld [vmem:[#allocation7 + $0x10] sm:$0xff] }
 0x46f   :  { %7230 = vmatprep.subr.mxu1 %v3064_v14 }
 0x470   :  { %v8211_v42 = vrot.slane %v2928_v34, %v7854_v51  ;;  %v8214_v45 = vrot.slane %v2944_v39, %v7854_v51  ;;  %v2943_v9 = vrot.slane %v2929_v36, %v7854_v51  ;;  %v2959_v43 = vrot.slane %v2945_v37, %v7854_v51  ;;  %v3063_v39 = vld [vmem:[#allocation7 + $0x8] sm:$0xff]  ;;  %7231 = vmatpush3.msra.mxu1 %v3064_v14 }
 0x471   :  { %v2537_v29 = vpop.f32.mrf.mxu1  ;;  %v2610_v47 = vpop.f32.mrf.mxu0  ;;  %7232 = vmatprep.subr.mxu1 %v3063_v39 }
 0x472   :  { %v2961_v54 = vcombine.high %v8211_v42, %v8214_v45  ;;  %v2960_v55 = vcombine.low %v8211_v42, %v8214_v45  ;;  %v2962_v59 = vcombine.low %v2943_v9, %v2959_v43  ;;  %v2963_v7 = vcombine.high %v2943_v9, %v2959_v43  ;;  %v3062_v9 = vld [vmem:[#allocation7] sm:$0xff]  ;;  %7233 = vmatpush3.msra.mxu1 %v3063_v39  ;;  %v6914_v42 = vld [vmem:[%s8964_s4] ss:$0 sm:$0xff] }
 0x473   :  { %v7212_v56 = vpop.f32.mrf.mxu1  ;;  %v7217_v57 = vpop.f32.mrf.mxu0  ;;  %7234 = vmatprep.subr.mxu1 %v3062_v9 }
 0x474   :  { %3034 = vrot.lane.b32.xlu0 %v2961_v54, %s7642_s17  ;;  %7235 = vmatpush3.msra.mxu1 %v3062_v9 }
 0x475   :  { %v2683_v58 = vpop.f32.mrf.mxu1  ;;  %v2756_v33 = vpop.f32.mrf.mxu0 }
 0x476   :  { %v2828_v60 = vcombine.low %v2537_v29, %v2683_v58  ;;  %v2829_v61 = vcombine.high %v2537_v29, %v2683_v58  ;;  %v2844_v62 = vcombine.low %v2610_v47, %v2756_v33  ;;  %v2845_v63 = vcombine.high %v2610_v47, %v2756_v33 }
 0x477   :  { %v7222_v40 = vpop.f32.mrf.mxu1  ;;  %v7227_v41 = vpop.f32.mrf.mxu0 }
 0x478   :  { %v2836_v2 = vrot.slane %v2828_v60, %v7851_v44  ;;  %v2843_v35 = vrot.slane %v2829_v61, %v7851_v44  ;;  %v2852_v3 = vrot.slane %v2844_v62, %v7851_v44  ;;  %v2859_v4 = vrot.slane %v2845_v63, %v7851_v44  ;;  %3042 = vrot.lane.b32.xlu0 %v2962_v59, %s7652_s25 }
 0x47a   :  { %v2860_v10 = vcombine.low %v2836_v2, %v2852_v3  ;;  %v2861_v11 = vcombine.high %v2836_v2, %v2852_v3  ;;  %v2876_v12 = vcombine.low %v2843_v35, %v2859_v4  ;;  %v2877_v28 = vcombine.high %v2843_v35, %v2859_v4 }
 0x47c   :  { %v2868_v38 = vrot.slane %v2860_v10, %v7854_v51  ;;  %v2875_v1 = vrot.slane %v2861_v11, %v7854_v51  ;;  %v2884_v19 = vrot.slane %v2876_v12, %v7854_v51  ;;  %v2891_v22 = vrot.slane %v2877_v28, %v7854_v51  ;;  %3050 = vrot.lane.b32.xlu0 %v2963_v7, %s7653_s26 }
 0x47e   :  { %v2964_v27 = vcombine.low %v2868_v38, %v2875_v1  ;;  %v6912_v31 = vcombine.high %v2868_v38, %v2875_v1  ;;  %v2980_v32 = vcombine.low %v2884_v19, %v2891_v22  ;;  %v6913_v34 = vcombine.high %v2884_v19, %v2891_v22  ;;  %v7505_v22 = vld [vmem:[#allocation2 + $0x8] sm:$0xff] }
 0x480   :  { %v2971_v36 = vrot.slane %v2964_v27, %v7851_v44  ;;  %v2979_v37 = vrot.slane %v6912_v31, %v7851_v44  ;;  %v2987_v29 = vrot.slane %v2980_v32, %v7851_v44  ;;  %v2995_v47 = vrot.slane %v6913_v34, %v7851_v44  ;;  %v7506_v31 = vld [vmem:[#allocation2] sm:$0xff] }
 0x482   :  { %v2996_v43 = vcombine.low %v2971_v36, %v2979_v37  ;;  %v3012_v54 = vcombine.low %v2987_v29, %v2995_v47  ;;  %v2997_v56 = vcombine.high %v2971_v36, %v2979_v37  ;;  %v3013_v57 = vcombine.high %v2987_v29, %v2995_v47 }
 0x484   :  { %v3004_v58 = vrot.slane %v2996_v43, %v7854_v51  ;;  %v3020_v33 = vrot.slane %v3012_v54, %v7854_v51  ;;  %v3011_v61 = vrot.slane %v2997_v56, %v7854_v51  ;;  %v3027_v62 = vrot.slane %v3013_v57, %v7854_v51 }
 0x486   :  { %v3029_v59 = vcombine.high %v3004_v58, %v3020_v33  ;;  %v3028_v60 = vcombine.low %v3004_v58, %v3020_v33  ;;  %v3030_v63 = vcombine.low %v3011_v61, %v3027_v62  ;;  %v3031_v40 = vcombine.high %v3011_v61, %v3027_v62  ;;  %v3204_v58 = vld [vmem:[#allocation8 + $0x18] sm:$0xff]  ;;  %v3203_v33 = vld [vmem:[#allocation8 + $0x10] sm:$0xff]  ;;  %v3302_v61 = vld [vmem:[%s8969_s9 + $0x38] sm:$0xff] }
 0x487   :  { %7239 = vmatprep.subr.mxu0 %v3204_v58  ;;  %v3301_v62 = vld [vmem:[%s8969_s9 + $0x30] sm:$0xff]  ;;  %7250 = vmatprep.subr.mxu1 %v3302_v61 }
 0x488   :  { %3036 = vrot.lane.b32.xlu1 %v3029_v59, %s7642_s17  ;;  %7240 = vmatpush3.msra.mxu0 %v3204_v58  ;;  %v3202_v59 = vld [vmem:[#allocation8 + $0x8] sm:$0xff] }
 0x489   :  { %7241 = vmatprep.subr.mxu0 %v3203_v33 }
 0x48a   :  { %7242 = vmatpush3.msra.mxu0 %v3203_v33 }
 0x48b   :  { %7243 = vmatprep.subr.mxu0 %v3202_v59 }
 0x48c   :  { %3044 = vrot.lane.b32.xlu1 %v3030_v63, %s7652_s25  ;;  %7244 = vmatpush3.msra.mxu0 %v3202_v59  ;;  %v3300_v63 = vld [vmem:[%s8969_s9 + $0x28] sm:$0xff] }
 0x490   :  { %3052 = vrot.lane.b32.xlu1 %v3031_v40, %s7653_s26  ;;  %v3299_v40 = vld [vmem:[%s8969_s9 + $0x20] sm:$0xff] }
 0x4e6   :  { %v3035_v41 = vpop.permute.xlu0 %3034 }
 0x4e7   :  { %v3056_v35 = vsel %vm1175_vm2, %v2960_v55, %v3035_v41 }
 0x4ea   :  { %v3043_v2 = vpop.permute.xlu0 %3042 }
 0x4eb   :  { %v3058_v3 = vsel %vm2170_vm3, %v3056_v35, %v3043_v2 }
 0x4ee   :  { %v3051_v4 = vpop.permute.xlu0 %3050 }
 0x4ef   :  { %v3060_v7 = vsel %vm2173_vm4, %v3058_v3, %v3051_v4 }
 0x4f0   :  { %7236 = vmatprep.mubr.msk.f32.mxu1 %vm140_vm0, %v3060_v7 }
 0x4fa   :  { %v3037_v10 = vpop.permute.xlu1 %3036 }
 0x4fb   :  { %v3057_v12 = vsel %vm1175_vm2, %v3028_v60, %v3037_v10  ;;  %v3201_v60 = vld [vmem:[#allocation8] sm:$0xff] }
 0x4fc   :  { %7245 = vmatprep.subr.mxu0 %v3201_v60 }
 0x4fd   :  { %7246 = vmatpush3.msra.mxu0 %v3201_v60 }
 0x4fe   :  { %v3045_v11 = vpop.permute.xlu1 %3044 }
 0x4ff   :  { %v3059_v28 = vsel %vm2170_vm3, %v3057_v12, %v3045_v11  ;;  %v6917_v11 = vld [vmem:[%s8965_s5] ss:$0 sm:$0xff] }
 0x502   :  { %v3053_v15 = vpop.permute.xlu1 %3052 }
 0x503   :  { %v3061_v38 = vsel %vm2173_vm4, %v3059_v28, %v3053_v15  ;;  %v6918_v28 = vld [vmem:[%s8966_s6] ss:$0 sm:$0xff] }
 0x504   :  { %7237 = vmatmul.mubr.msk.f32.vlgmr.msra.gmra.mxu1 %vm140_vm0, %v3061_v38 }
 0x505   :  { %7251 = vmatpush3.msra.mxu1 %v3302_v61 }
 0x506   :  { %7252 = vmatprep.subr.mxu1 %v3301_v62 }
 0x507   :  { %7253 = vmatpush3.msra.mxu1 %v3301_v62 }
 0x508   :  { %7254 = vmatprep.subr.mxu1 %v3300_v63 }
 0x509   :  { %7255 = vmatpush3.msra.mxu1 %v3300_v63 }
 0x50a   :  { %7256 = vmatprep.subr.mxu1 %v3299_v40 }
 0x50b   :  { %7257 = vmatpush3.msra.mxu1 %v3299_v40 }
 0x5c4   :  { %v7238_v45 = vpop.f32.mrf.mxu1 }
 0x5c5   :  { %v3151_v55 = vadd.f32 %v7238_v45, %v6914_v42 }
 0x5c6   :  { %v3145_v1 = vpop.f32.mrf.mxu1 }
 0x5c7   :  { %v3146_v19 = vadd.f32 %v6914_v42, %v3145_v1  ;;  %v3155_v14 = vadd.f32 %v7505_v22, %v3151_v55  ;;  %v3297_v22 = vld [vmem:[%s8969_s9 + $0x10] sm:$0xff] }
 0x5c9   :  { %v3161_v27 = vsel %vm140_vm0, %v3155_v14, 0.0  ;;  %v3154_v32 = vadd.f32 %v7506_v31, %v3146_v19  ;;  %v3298_v19 = vld [vmem:[%s8969_s9 + $0x18] sm:$0xff]  ;;  %v6919_v31 = vld [vmem:[%s8968_s8] ss:$0 sm:$0xff] }
 0x5ca   :  { %3162 = vadd.xlane.f32.xlu1 %v3161_v27  ;;  %7258 = vmatprep.subr.mxu1 %v3298_v19  ;;  %v3295_v27 = vld [vmem:[%s8969_s9] sm:$0xff] }
 0x5cb   :  { %v3158_v34 = vsel %vm140_vm0, %v3154_v32, 0.0  ;;  %7259 = vmatpush3.msra.mxu1 %v3298_v19 }
 0x5cc   :  { %3159 = vadd.xlane.f32.xlu0 %v3158_v34  ;;  %7260 = vmatprep.subr.mxu1 %v3297_v22 }
 0x5cd   :  { %7261 = vmatpush3.msra.mxu1 %v3297_v22 }
 0x653   :  { %v3163_v39 = vpop.xlane.xlu1 %3162 }
 0x654   :  { %v3166_v36 = vmul.f32 0.03125, %v3163_v39 }
 0x655   :  { %v3160_v37 = vpop.xlane.xlu0 %3159 }
 0x656   :  { %v3165_v29 = vmul.f32 0.03125, %v3160_v37  ;;  %v3168_v47 = vsub.f32 %v3155_v14, %v3166_v36  ;;  %v3296_v14 = vld [vmem:[%s8969_s9 + $0x8] sm:$0xff] }
 0x657   :  { %7262 = vmatprep.subr.mxu1 %v3296_v14 }
 0x658   :  { %v3167_v9 = vsub.f32 %v3154_v32, %v3165_v29  ;;  %v3170_v56 = vmul.f32 %v3168_v47, %v3168_v47  ;;  %7263 = vmatpush3.msra.mxu1 %v3296_v14 }
 0x659   :  { %7264 = vmatprep.subr.mxu1 %v3295_v27 }
 0x65a   :  { %v3169_v43 = vmul.f32 %v3167_v9, %v3167_v9  ;;  %v3174_v57 = vsel %vm140_vm0, %v3170_v56, 0.0  ;;  %7265 = vmatpush3.msra.mxu1 %v3295_v27 }
 0x65b   :  { %7280 = vmatprep.subr.mxu1 %v7645_v0 }
 0x65c   :  { %v3171_v54 = vsel %vm140_vm0, %v3169_v43, 0.0 }
 0x65d   :  { %3172 = vadd.xlane.f32.xlu0 %v3171_v54 }
 0x661   :  { %3175 = vadd.xlane.f32.xlu0 %v3174_v57 }
 0x6e6   :  { %v3173_v41 = vpop.xlane.xlu0 %3172 }
 0x6e7   :  { %v3177_v2 = vmul.f32 0.03125, %v3173_v41 }
 0x6e9   :  { %v3179_v35 = vadd.f32 1e-05, %v3177_v2 }
 0x6ea   :  { %v3176_v3 = vpop.xlane.xlu0 %3175 }
 0x6eb   :  { %7453 = vrsqrt.f32 %v3179_v35  ;;  %v3178_v4 = vmul.f32 0.03125, %v3176_v3 }
 0x6ed   :  { %v3180_v7 = vadd.f32 1e-05, %v3178_v4 }
 0x6ef   :  { %7455 = vrsqrt.f32 %v3180_v7  ;;  %v6937_v7 = vld [vmem:[%s8961_s1 + $0xb0] sm:$0xff] }
 0x6f0   :  { %3499 = vmatprep.subr.mxu0 %v6937_v7 }
 0x6f8   :  { %v7454_v10 = vpop.eup %7453 }
 0x6f9   :  { %v3183_v12 = vmul.f32 %v7454_v10, %v3167_v9  ;;  %v6936_v10 = vld [vmem:[%s8961_s1 + $0xa8] sm:$0xff] }
 0x6fb   :  { %v3191_v15 = vmul.f32 %v6917_v11, %v3183_v12  ;;  %v6933_v12 = vld [vmem:[%s8961_s1 + $0x90] sm:$0xff] }
 0x6fc   :  { %v7456_v38 = vpop.eup %7455 }
 0x6fd   :  { %v3184_v42 = vmul.f32 %v7456_v38, %v3168_v47  ;;  %v3199_v45 = vadd.f32 %v6918_v28, %v3191_v15  ;;  %v6922_v47 = vld [vmem:[%s8970_s10] ss:$0 sm:$0xff]  ;;  %v6930_v15 = vld [vmem:[%s8961_s1 + $0x78] sm:$0xff]  ;;  %v6928_v38 = vld [vmem:[%s8961_s1 + $0x68] sm:$0xff] }
 0x6ff   :  { %v3192_v55 = vmul.f32 %v6917_v11, %v3184_v42  ;;  %7247 = vmatprep.mubr.msk.f32.mxu0 %vm140_vm0, %v3199_v45  ;;  %v6934_v11 = vld [vmem:[%s8961_s1 + $0x98] sm:$0xff]  ;;  %v6927_v42 = vld [vmem:[%s8961_s1 + $0x60] sm:$0xff] }
 0x701   :  { %v3200_v1 = vadd.f32 %v6918_v28, %v3192_v55  ;;  %v6931_v28 = vld [vmem:[%s8961_s1 + $0x80] sm:$0xff] }
 0x703   :  { %7248 = vmatmul.mubr.msk.f32.vlgmr.msra.gmra.mxu0 %vm140_vm0, %v3200_v1 }
 0x704   :  { %3539 = vmatprep.mubr.f32.mxu0 %v7645_v0  ;;  %3500 = vmatpush1.msra.mxu0 %v6936_v10 }
 0x705   :  { %3501 = vmatprep.subr.mxu0 %v6934_v11 }
 0x706   :  { %3502 = vmatpush1.msra.mxu0 %v6933_v12 }
 0x707   :  { %3503 = vmatprep.subr.mxu0 %v6931_v28 }
 0x708   :  { %3504 = vmatpush1.msra.mxu0 %v6930_v15 }
 0x709   :  { %3505 = vmatprep.subr.mxu0 %v6928_v38 }
 0x70a   :  { %3506 = vmatpush1.msra.mxu0 %v6927_v42 }
 0x7c3   :  { %v7249_v32 = vpop.f32.mrf.mxu0 }
 0x7c4   :  { %v3290_v34 = vadd.f32 %v7249_v32, %v6919_v31 }
 0x7c5   :  { %v3284_v39 = vpop.f32.mrf.mxu0 }
 0x7c6   :  { %v3285_v36 = vadd.f32 %v6919_v31, %v3284_v39  ;;  %v3294_v29 = vmax.f32 %v3290_v34, 0.0 }
 0x7c8   :  { %v3293_v37 = vmax.f32 %v3285_v36, 0.0  ;;  %v6925_v36 = vld [vmem:[%s8971_s11] ss:$0 sm:$0xff] }
 0x7ca   :  { %7266 = vmatprep.mubr.msk.f32.mxu1 %vm3310_vm5, %v3293_v37 }
 0x7cb   :  { %7267 = vmatmul.mubr.msk.f32.vlgmr.msra.gmra.mxu1 %vm3310_vm5, %v3294_v29  ;;  %v6926_v29 = vld [vmem:[%s8972_s12] ss:$0 sm:$0xff] }
 0x7cc   :  { %7282 = vmatprep.mubr.msk.f32.mxu1 %vm7649_vm1, %v7645_v0 }
 0x88b   :  { %v7268_v9 = vpop.f32.mrf.mxu1 }
 0x88c   :  { %v3389_v43 = vadd.f32 %v7268_v9, %v6922_v47 }
 0x88d   :  { %v3383_v54 = vpop.f32.mrf.mxu1 }
 0x88e   :  { %v3384_v56 = vadd.f32 %v6922_v47, %v3383_v54  ;;  %v3393_v57 = vadd.f32 %v3389_v43, %v3200_v1  ;;  %v6935_v43 = vld [vmem:[%s8961_s1 + $0xa0] sm:$0xff]  ;;  %v6932_v54 = vld [vmem:[%s8961_s1 + $0x88] sm:$0xff] }
 0x890   :  { %v3399_v58 = vsel %vm140_vm0, %v3393_v57, 0.0  ;;  %v3392_v33 = vadd.f32 %v3384_v56, %v3199_v45  ;;  %v6938_v45 = vld [vmem:[%s8961_s1 + $0xb8] sm:$0xff] }
 0x891   :  { %3400 = vadd.xlane.f32.xlu0 %v3399_v58  ;;  %7269 = vmatprep.subr.mxu0 %v6938_v45  ;;  %v3452_v58 = vld [vmem:[#allocation5 + $0x3] sm:$0x7] }
 0x892   :  { %v3396_v59 = vsel %vm140_vm0, %v3392_v33, 0.0 }
 0x893   :  { %3397 = vadd.xlane.f32.xlu1 %v3396_v59 }
 0x91a   :  { %v3401_v60 = vpop.xlane.xlu0 %3400 }
 0x91b   :  { %v3403_v61 = vmul.f32 0.03125, %v3401_v60 }
 0x91c   :  { %v3398_v62 = vpop.xlane.xlu1 %3397 }
 0x91d   :  { %v3405_v63 = vsub.f32 %v3393_v57, %v3403_v61  ;;  %v3402_v40 = vmul.f32 0.03125, %v3398_v62  ;;  %v6929_v57 = vld [vmem:[%s8961_s1 + $0x70] sm:$0xff]  ;;  %v3461_v61 = vrot.slane %v3452_v58, %v131_v20 }
 0x91f   :  { %v3404_v41 = vsub.f32 %v3392_v33, %v3402_v40  ;;  %v3407_v2 = vmul.f32 %v3405_v63, %v3405_v63  ;;  %v3457_v33 = vrot.slane %v3452_v58, %v127_v17 }
 0x921   :  { %v3411_v35 = vsel %vm140_vm0, %v3407_v2, 0.0  ;;  %v3406_v3 = vmul.f32 %v3404_v41, %v3404_v41 }
 0x922   :  { %3412 = vadd.xlane.f32.xlu0 %v3411_v35 }
 0x923   :  { %v3408_v4 = vsel %vm140_vm0, %v3406_v3, 0.0 }
 0x924   :  { %3409 = vadd.xlane.f32.xlu1 %v3408_v4 }
 0x9ab   :  { %v3413_v55 = vpop.xlane.xlu0 %3412 }
 0x9ac   :  { %v3415_v1 = vmul.f32 0.03125, %v3413_v55 }
 0x9ad   :  { %v3410_v19 = vpop.xlane.xlu1 %3409 }
 0x9ae   :  { %v3417_v22 = vadd.f32 1e-05, %v3415_v1  ;;  %v3414_v14 = vmul.f32 0.03125, %v3410_v19 }
 0x9b0   :  { %7457 = vrsqrt.f32 %v3417_v22  ;;  %v3416_v27 = vadd.f32 1e-05, %v3414_v14 }
 0x9b2   :  { %7459 = vrsqrt.f32 %v3416_v27 }
 0x9bd   :  { %v7458_v31 = vpop.eup %7457 }
 0x9be   :  { %v3421_v39 = vmul.f32 %v7458_v31, %v3405_v63 }
 0x9bf   :  { %v7460_v32 = vpop.eup %7459 }
 0x9c0   :  { %v3420_v34 = vmul.f32 %v7460_v32, %v3404_v41  ;;  %v3429_v9 = vmul.f32 %v6925_v36, %v3421_v39  ;;  %v3465_v41 = vrot.slane %v3452_v58, %v135_v30 }
 0x9c2   :  { %v3428_v37 = vmul.f32 %v6925_v36, %v3420_v34  ;;  %v8354_v56 = vadd.f32 %v6926_v29, %v3429_v9 }
 0x9c4   :  { %v8343_v47 = vadd.f32 %v6926_v29, %v3428_v37 }
 0x9c6   :  { %6939 = vmatmul.mubr.msk.f32.vlgmr.msra.gmra.mxu0 %vm140_vm0, %v8343_v47 }
 0x9c7   :  { %7270 = vmatpush3.msra.mxu0 %v6938_v45  ;;  %3545 = vmatprep.mubr.f32.mxu0 %v7645_v0 }
 0x9c8   :  { %7271 = vmatprep.subr.mxu0 %v6935_v43 }
 0x9c9   :  { %7272 = vmatpush3.msra.mxu0 %v6935_v43 }
 0x9ca   :  { %6940 = vmatmul.mubr.msk.f32.gmra.mxu0 %vm140_vm0, %v8354_v56  ;;  %7273 = vmatprep.subr.mxu0 %v6932_v54 }
 0x9cb   :  { %7274 = vmatpush3.msra.mxu0 %v6932_v54  ;;  %7277 = vmatprep.mubr.msk.f32.mxu0 %vm140_vm0, %v8343_v47 }
 0x9cc   :  { %7275 = vmatprep.subr.mxu0 %v6929_v57 }
 0x9cd   :  { %7276 = vmatpush3.msra.mxu0 %v6929_v57 }
 0x9ce   :  { %7278 = vmatmul.mubr.msk.f32.vlgmr.msra.gmra.mxu0 %vm140_vm0, %v8354_v56  ;;  %7285 = vmatprep.subr.mxu0 %v7645_v0 }
 0x9cf   :  { %7287 = vmatprep.mubr.msk.f32.mxu0 %vm7649_vm1, %v7645_v0 }
 0xa86   :  { %v3541_v59 = vpop.f32.mrf.mxu0 }
 0xa87   :  { %v3542_v60 = vadd.f32 %v3541_v59, %v3457_v33 }
 0xa88   :  { %v3543_v62 = vpop.f32.mrf.mxu0 }
 0xa89   :  { %3635 = vrot.lane.b32.xlu0 %v3542_v60, %s7646_s22  ;;  %3629 = vrot.lane.b32.xlu1 %v3542_v60, %s7647_s23  ;;  %v3544_v40 = vadd.f32 %v3543_v62, %v3461_v61 }
 0xa8a   :  { %v3547_v63 = vpop.f32.mrf.mxu0 }
 0xa8b   :  { %v8388_v16 = vadd.f32 %v3547_v63, %v3457_v33 }
 0xa8c   :  { %v3549_v2 = vpop.f32.mrf.mxu0 }
 0xa8d   :  { %3927 = vrot.lane.b32.xlu0 %v3544_v40, %s7646_s22  ;;  %3641 = vrot.lane.b32.xlu1 %v3542_v60, %s7648_s24  ;;  %v8378_v35 = vadd.f32 %v3549_v2, %v3461_v61 }
 0xa8e   :  { %v7279_v17 = vpop.f32.mrf.mxu0 }
 0xa8f   :  { %v8380_v3 = vadd.f32 %v7279_v17, %v3465_v41 }
 0xa90   :  { %v3618_v20 = vpop.f32.mrf.mxu0 }
 0xa91   :  { %3923 = vrot.lane.b32.xlu0 %v8378_v35, %s7647_s23  ;;  %3921 = vrot.lane.b32.xlu1 %v3544_v40, %s7647_s23  ;;  %v8398_v30 = vadd.f32 %v3618_v20, %v3465_v41 }
 0xa95   :  { %3935 = vrot.lane.b32.xlu0 %v8378_v35, %s7648_s24  ;;  %3933 = vrot.lane.b32.xlu1 %v3544_v40, %s7648_s24 }
 0xa99   :  { %3637 = vrot.lane.b32.xlu0 %v8388_v16, %s7646_s22  ;;  %3631 = vrot.lane.b32.xlu1 %v8388_v16, %s7647_s23 }
 0xa9d   :  { %3929 = vrot.lane.b32.xlu1 %v8378_v35, %s7646_s22 }
 0xaa1   :  { %3643 = vrot.lane.b32.xlu1 %v8388_v16, %s7648_s24 }
 0xaa5   :  { %4213 = vrot.lane.b32.xlu1 %v8398_v30, %s7647_s23 }
 0xafb   :  { %v3636_v4 = vpop.permute.xlu0 %3635  ;;  %v3630_v7 = vpop.permute.xlu1 %3629 }
 0xafc   :  { %v3647_v10 = vcombine.low %v3542_v60, %v3636_v4  ;;  %v3648_v11 = vcombine.high %v3542_v60, %v3636_v4 }
 0xafe   :  { %v3655_v42 = vrot.slane %v3647_v10, %v7851_v44  ;;  %v3662_v45 = vrot.slane %v3648_v11, %v7851_v44 }
 0xaff   :  { %v3928_v12 = vpop.permute.xlu0 %3927  ;;  %v3642_v28 = vpop.permute.xlu1 %3641 }
 0xb00   :  { %v3663_v15 = vcombine.low %v3630_v7, %v3642_v28  ;;  %v3664_v38 = vcombine.high %v3630_v7, %v3642_v28  ;;  %v3939_v19 = vcombine.low %v3544_v40, %v3928_v12  ;;  %v3940_v9 = vcombine.high %v3544_v40, %v3928_v12 }
 0xb02   :  { %v3671_v55 = vrot.slane %v3663_v15, %v7851_v44  ;;  %v3678_v1 = vrot.slane %v3664_v38, %v7851_v44  ;;  %v3947_v43 = vrot.slane %v3939_v19, %v7851_v44  ;;  %v3954_v4 = vrot.slane %v3940_v9, %v7851_v44 }
 0xb03   :  { %v3924_v22 = vpop.permute.xlu0 %3923  ;;  %v3922_v14 = vpop.permute.xlu1 %3921 }
 0xb04   :  { %v3679_v27 = vcombine.low %v3655_v42, %v3671_v55  ;;  %v3680_v31 = vcombine.high %v3655_v42, %v3671_v55  ;;  %v3695_v32 = vcombine.low %v3662_v45, %v3678_v1  ;;  %v3696_v34 = vcombine.high %v3662_v45, %v3678_v1 }
 0xb06   :  { %v3687_v39 = vrot.slane %v3679_v27, %v7854_v51  ;;  %v3694_v36 = vrot.slane %v3680_v31, %v7854_v51  ;;  %v3703_v37 = vrot.slane %v3695_v32, %v7854_v51  ;;  %v3710_v29 = vrot.slane %v3696_v34, %v7854_v51 }
 0xb07   :  { %v3936_v54 = vpop.permute.xlu0 %3935  ;;  %v3934_v57 = vpop.permute.xlu1 %3933 }
 0xb08   :  { %v3783_v58 = vcombine.low %v3687_v39, %v3694_v36  ;;  %v6943_v33 = vcombine.high %v3687_v39, %v3694_v36  ;;  %v3799_v59 = vcombine.low %v3703_v37, %v3710_v29  ;;  %v6944_v60 = vcombine.high %v3703_v37, %v3710_v29 }
 0xb09   :  { %v4023_v61 = vcombine.low %v3924_v22, %v3936_v54  ;;  %v4024_v62 = vcombine.high %v3924_v22, %v3936_v54  ;;  %v3955_v63 = vcombine.low %v3922_v14, %v3934_v57  ;;  %v3956_v41 = vcombine.high %v3922_v14, %v3934_v57 }
 0xb0a   :  { %v8412_v2 = vrot.slane %v3783_v58, %v7851_v44  ;;  %v8415_v17 = vrot.slane %v6943_v33, %v7851_v44  ;;  %v8418_v40 = vrot.slane %v3799_v59, %v7851_v44  ;;  %v8421_v20 = vrot.slane %v6944_v60, %v7851_v44 }
 0xb0b   :  { %v4031_v7 = vrot.slane %v4023_v61, %v7851_v44  ;;  %v3963_v10 = vrot.slane %v3955_v63, %v7851_v44  ;;  %v3970_v11 = vrot.slane %v3956_v41, %v7851_v44  ;;  %v3638_v12 = vpop.permute.xlu0 %3637  ;;  %v3632_v28 = vpop.permute.xlu1 %3631  ;;  %v4038_v45 = vrot.slane %v4024_v62, %v7851_v44 }
 0xb0c   :  { %v3815_v15 = vcombine.low %v8412_v2, %v8415_v17  ;;  %v3816_v38 = vcombine.high %v8412_v2, %v8415_v17  ;;  %v3831_v42 = vcombine.low %v8418_v40, %v8421_v20  ;;  %v3715_v14 = vcombine.low %v8388_v16, %v3638_v12 }
 0xb0d   :  { %v3971_v55 = vcombine.low %v3947_v43, %v3963_v10  ;;  %v3972_v1 = vcombine.high %v3947_v43, %v3963_v10  ;;  %v3987_v19 = vcombine.low %v3954_v4, %v3970_v11  ;;  %v3988_v22 = vcombine.high %v3954_v4, %v3970_v11 }
 0xb0e   :  { %v3716_v27 = vcombine.high %v8388_v16, %v3638_v12  ;;  %v8437_v31 = vrot.slane %v3815_v15, %v7854_v51  ;;  %v8440_v32 = vrot.slane %v3831_v42, %v7854_v51  ;;  %v3832_v9 = vcombine.high %v8418_v40, %v8421_v20 }
 0xb0f   :  { %v3979_v34 = vrot.slane %v3971_v55, %v7854_v51  ;;  %v3986_v39 = vrot.slane %v3972_v1, %v7854_v51  ;;  %v3995_v36 = vrot.slane %v3987_v19, %v7854_v51  ;;  %v4002_v37 = vrot.slane %v3988_v22, %v7854_v51  ;;  %v3930_v29 = vpop.permute.xlu1 %3929 }
 0xb10   :  { %v3723_v16 = vrot.slane %v3715_v14, %v7851_v44  ;;  %v4007_v43 = vcombine.low %v8378_v35, %v3930_v29  ;;  %v4008_v54 = vcombine.high %v8378_v35, %v3930_v29  ;;  %v3730_v60 = vrot.slane %v3716_v27, %v7851_v44 }
 0xb11   :  { %v4075_v57 = vcombine.low %v3979_v34, %v3986_v39  ;;  %v6947_v58 = vcombine.high %v3979_v34, %v3986_v39  ;;  %v4091_v33 = vcombine.low %v3995_v36, %v4002_v37  ;;  %v6948_v59 = vcombine.high %v3995_v36, %v4002_v37 }
 0xb12   :  { %v4015_v61 = vrot.slane %v4007_v43, %v7851_v44  ;;  %v4022_v62 = vrot.slane %v4008_v54, %v7851_v44  ;;  %v3847_v63 = vcombine.low %v8437_v31, %v8440_v32  ;;  %v3846_v2 = vrot.slane %v3832_v9, %v7854_v51 }
 0xb13   :  { %v4082_v41 = vrot.slane %v4075_v57, %v7851_v44  ;;  %v4090_v4 = vrot.slane %v6947_v58, %v7851_v44  ;;  %v4098_v10 = vrot.slane %v4091_v33, %v7851_v44  ;;  %v4106_v35 = vrot.slane %v6948_v59, %v7851_v44  ;;  %v3644_v55 = vpop.permute.xlu1 %3643 }
 0xb14   :  { %v4039_v11 = vcombine.low %v4015_v61, %v4031_v7  ;;  %v4040_v12 = vcombine.high %v4015_v61, %v4031_v7  ;;  %v4055_v15 = vcombine.low %v4022_v62, %v4038_v45  ;;  %v4056_v42 = vcombine.high %v4022_v62, %v4038_v45 }
 0xb15   :  { %v4107_v1 = vcombine.low %v4082_v41, %v4090_v4  ;;  %v4108_v19 = vcombine.high %v4082_v41, %v4090_v4  ;;  %v4123_v22 = vcombine.low %v4098_v10, %v4106_v35  ;;  %v4124_v14 = vcombine.high %v4098_v10, %v4106_v35 }
 0xb16   :  { %v4047_v27 = vrot.slane %v4039_v11, %v7854_v51  ;;  %v4054_v34 = vrot.slane %v4040_v12, %v7854_v51  ;;  %v4063_v39 = vrot.slane %v4055_v15, %v7854_v51  ;;  %v4070_v36 = vrot.slane %v4056_v42, %v7854_v51 }
 0xb17   :  { %v3731_v37 = vcombine.low %v3632_v28, %v3644_v55  ;;  %v3732_v29 = vcombine.high %v3632_v28, %v3644_v55  ;;  %v4115_v43 = vrot.slane %v4107_v1, %v7854_v51  ;;  %v4131_v7 = vrot.slane %v4123_v22, %v7854_v51 }
 0xb18   :  { %v4143_v45 = vcombine.low %v4047_v27, %v4054_v34  ;;  %v6949_v54 = vcombine.high %v4047_v27, %v4054_v34  ;;  %v4159_v57 = vcombine.low %v4063_v39, %v4070_v36  ;;  %v6950_v58 = vcombine.high %v4063_v39, %v4070_v36 }
 0xb19   :  { %v3739_v33 = vrot.slane %v3731_v37, %v7851_v44  ;;  %v3746_v59 = vrot.slane %v3732_v29, %v7851_v44  ;;  %v4139_v61 = vcombine.low %v4115_v43, %v4131_v7  ;;  %v4140_v62 = vcombine.high %v4115_v43, %v4131_v7 }
 0xb1a   :  { %v4150_v41 = vrot.slane %v4143_v45, %v7851_v44  ;;  %v4158_v4 = vrot.slane %v6949_v54, %v7851_v44  ;;  %v4166_v28 = vrot.slane %v4159_v57, %v7851_v44  ;;  %v4174_v10 = vrot.slane %v6950_v58, %v7851_v44 }
 0xb1b   :  { %v3747_v35 = vcombine.low %v3723_v16, %v3739_v33  ;;  %v3748_v11 = vcombine.high %v3723_v16, %v3739_v33  ;;  %v3763_v12 = vcombine.low %v3730_v60, %v3746_v59  ;;  %v3764_v15 = vcombine.high %v3730_v60, %v3746_v59  ;;  %7281 = vmatpush3.xpose.msk.msra.mxu1 %vm1175_vm2, %v4139_v61 }
 0xb1c   :  { %v4175_v42 = vcombine.low %v4150_v41, %v4158_v4  ;;  %v4176_v55 = vcombine.high %v4150_v41, %v4158_v4  ;;  %v4191_v1 = vcombine.low %v4166_v28, %v4174_v10  ;;  %7286 = vmatpush3.xpose.msk.msra.mxu0 %vm1175_vm2, %v4140_v62  ;;  %v3848_v22 = vcombine.high %v8437_v31, %v8440_v32 }
 0xb1d   :  { %v3755_v27 = vrot.slane %v3747_v35, %v7854_v51  ;;  %v3762_v34 = vrot.slane %v3748_v11, %v7854_v51  ;;  %v3771_v39 = vrot.slane %v3763_v12, %v7854_v51  ;;  %v3778_v16 = vrot.slane %v3764_v15, %v7854_v51  ;;  %7290 = vmatprep.subr.mxu1 %v7645_v0 }
 0xb1e   :  { %7283 = vmatmul.mubr.msk.f32.vlgmr.msra.gmra.mxu1 %vm1175_vm2, %v3847_v63  ;;  %7295 = vmatprep.subr.mxu0 %v7645_v0  ;;  %v4122_v60 = vrot.slane %v4108_v19, %v7854_v51  ;;  %v4138_v36 = vrot.slane %v4124_v14, %v7854_v51  ;;  %v3830_v31 = vrot.slane %v3816_v38, %v7854_v51 }
 0xb1f   :  { %v3851_v32 = vcombine.low %v3755_v27, %v3762_v34  ;;  %v6945_v37 = vcombine.high %v3755_v27, %v3762_v34  ;;  %v3867_v29 = vcombine.low %v3771_v39, %v3778_v16  ;;  %v6946_v43 = vcombine.high %v3771_v39, %v3778_v16  ;;  %7288 = vmatmul.mubr.msk.f32.vlgmr.msra.gmra.mxu0 %vm1175_vm2, %v3848_v22 }
 0xb20   :  { %v4141_v7 = vcombine.low %v4122_v60, %v4138_v36  ;;  %v4142_v45 = vcombine.high %v4122_v60, %v4138_v36  ;;  %7292 = vmatprep.mubr.msk.f32.mxu1 %vm7649_vm1, %v7645_v0  ;;  %7297 = vmatprep.mubr.msk.f32.mxu0 %vm7649_vm1, %v7645_v0  ;;  %v4192_v14 = vcombine.high %v4166_v28, %v4174_v10 }
 0xb21   :  { %v3858_v17 = vrot.slane %v3851_v32, %v7851_v44  ;;  %v3866_v38 = vrot.slane %v6945_v37, %v7851_v44  ;;  %v3874_v63 = vrot.slane %v3867_v29, %v7851_v44  ;;  %v3882_v19 = vrot.slane %v6946_v43, %v7851_v44 }
 0xb22   :  { %7291 = vmatpush3.xpose.msk.msra.mxu1 %vm1175_vm2, %v4141_v7  ;;  %7296 = vmatpush3.xpose.msk.msra.mxu0 %vm1175_vm2, %v4142_v45  ;;  %v4183_v54 = vrot.slane %v4175_v42, %v7854_v51  ;;  %v3849_v33 = vcombine.low %v3830_v31, %v3846_v2  ;;  %v3850_v40 = vcombine.high %v3830_v31, %v3846_v2 }
 0xb23   :  { %v3883_v57 = vcombine.low %v3858_v17, %v3866_v38  ;;  %v3899_v58 = vcombine.low %v3874_v63, %v3882_v19  ;;  %7300 = vmatprep.subr.mxu1 %v7645_v0  ;;  %v3884_v20 = vcombine.high %v3858_v17, %v3866_v38  ;;  %v3900_v9 = vcombine.high %v3874_v63, %v3882_v19 }
 0xb24   :  { %7305 = vmatprep.subr.mxu0 %v7645_v0  ;;  %v4199_v59 = vrot.slane %v4191_v1, %v7854_v51  ;;  %v4190_v41 = vrot.slane %v4176_v55, %v7854_v51  ;;  %v4206_v10 = vrot.slane %v4192_v14, %v7854_v51 }
 0xb25   :  { %7293 = vmatmul.mubr.msk.f32.vlgmr.msra.gmra.mxu1 %vm1175_vm2, %v3849_v33  ;;  %7298 = vmatmul.mubr.msk.f32.vlgmr.msra.gmra.mxu0 %vm1175_vm2, %v3850_v40  ;;  %v3891_v61 = vrot.slane %v3883_v57, %v7854_v51  ;;  %v3907_v62 = vrot.slane %v3899_v58, %v7854_v51  ;;  %v3898_v12 = vrot.slane %v3884_v20, %v7854_v51  ;;  %v4214_v20 = vpop.permute.xlu1 %4213 }
 0xb26   :  { %v4207_v4 = vcombine.low %v4183_v54, %v4199_v59  ;;  %v4208_v28 = vcombine.high %v4183_v54, %v4199_v59  ;;  %7302 = vmatprep.mubr.msk.f32.mxu1 %vm7649_vm1, %v7645_v0  ;;  %7307 = vmatprep.mubr.msk.f32.mxu0 %vm7649_vm1, %v7645_v0  ;;  %v3914_v15 = vrot.slane %v3900_v9, %v7854_v51 }
 0xb27   :  { %v3915_v35 = vcombine.low %v3891_v61, %v3907_v62  ;;  %v3916_v11 = vcombine.high %v3891_v61, %v3907_v62  ;;  %v4209_v42 = vcombine.low %v4190_v41, %v4206_v10  ;;  %v4210_v55 = vcombine.high %v4190_v41, %v4206_v10 }
 0xb28   :  { %7301 = vmatpush3.xpose.msk.msra.mxu1 %vm1175_vm2, %v4207_v4  ;;  %7306 = vmatpush3.xpose.msk.msra.mxu0 %vm1175_vm2, %v4208_v28  ;;  %v3917_v1 = vcombine.low %v3898_v12, %v3914_v15  ;;  %v3918_v22 = vcombine.high %v3898_v12, %v3914_v15 }
 0xb29   :  { %7310 = vmatprep.subr.mxu1 %v7645_v0  ;;  %7315 = vmatprep.subr.mxu0 %v7645_v0 }
 0xb2b   :  { %7303 = vmatmul.mubr.msk.f32.vlgmr.msra.gmra.mxu1 %vm1175_vm2, %v3915_v35  ;;  %7308 = vmatmul.mubr.msk.f32.vlgmr.msra.gmra.mxu0 %vm1175_vm2, %v3916_v11 }
 0xb2c   :  { %7311 = vmatpush3.xpose.msk.msra.mxu1 %vm1175_vm2, %v4209_v42  ;;  %7316 = vmatpush3.xpose.msk.msra.mxu0 %vm1175_vm2, %v4210_v55 }
 0xb2d   :  { %7312 = vmatprep.mubr.msk.f32.mxu1 %vm7649_vm1, %v7645_v0  ;;  %7317 = vmatprep.mubr.msk.f32.mxu0 %vm7649_vm1, %v7645_v0 }
 0xb2e   :  { %7320 = vmatprep.subr.mxu1 %v7645_v0  ;;  %7325 = vmatprep.subr.mxu0 %v7645_v0 }
 0xb2f   :  { %7313 = vmatmul.mubr.msk.f32.vlgmr.msra.gmra.mxu1 %vm1175_vm2, %v3917_v1  ;;  %7318 = vmatmul.mubr.msk.f32.vlgmr.msra.gmra.mxu0 %vm1175_vm2, %v3918_v22 }
 0xb30   :  { %7322 = vmatprep.mubr.msk.f32.mxu1 %vm7649_vm1, %v7645_v0  ;;  %7327 = vmatprep.mubr.msk.f32.mxu0 %vm7649_vm1, %v7645_v0 }
 0xbde   :  { %v4575_v27 = vpop.f32.mrf.mxu1 }
 0xbdf   :  { %v4651_v34 = vpop.f32.mrf.mxu0  ;;  %v5111_v39 = vsel %vm1175_vm2, %v4575_v27, -inf }
 0xbe0   :  { %v5114_v16 = vsel %vm1175_vm2, %v4651_v34, -inf  ;;  %5112 = vmax.xlane.f32.xlu0 %v5111_v39  ;;  %v7284_v60 = vpop.f32.mrf.mxu1 }
 0xbe1   :  { %5115 = vmax.xlane.f32.xlu1 %v5114_v16  ;;  %v7289_v36 = vpop.f32.mrf.mxu0 }
 0xbe5   :  { %v4727_v31 = vpop.f32.mrf.mxu1  ;;  %v4803_v32 = vpop.f32.mrf.mxu0 }
 0xbe6   :  { %v5117_v37 = vsel %vm1175_vm2, %v4727_v31, -inf  ;;  %v5120_v7 = vsel %vm1175_vm2, %v4803_v32, -inf }
 0xbe7   :  { %v7299_v29 = vpop.f32.mrf.mxu0  ;;  %5118 = vmax.xlane.f32.xlu0 %v5117_v37  ;;  %v7294_v43 = vpop.f32.mrf.mxu1 }
 0xbeb   :  { %v4879_v45 = vpop.f32.mrf.mxu1  ;;  %v4955_v2 = vpop.f32.mrf.mxu0  ;;  %5121 = vmax.xlane.f32.xlu0 %v5120_v7 }
 0xbec   :  { %v5123_v17 = vsel %vm1175_vm2, %v4879_v45, -inf  ;;  %v5126_v19 = vsel %vm1175_vm2, %v4955_v2, -inf }
 0xbed   :  { %v7309_v38 = vpop.f32.mrf.mxu0  ;;  %5124 = vmax.xlane.f32.xlu1 %v5123_v17  ;;  %v7304_v63 = vpop.f32.mrf.mxu1 }
 0xbef   :  { %v5031_v14 = vpop.f32.mrf.mxu1  ;;  %v5107_v54 = vpop.f32.mrf.mxu0  ;;  %5127 = vmax.xlane.f32.xlu0 %v5126_v19 }
 0xbf0   :  { %v5129_v57 = vsel %vm1175_vm2, %v5031_v14, -inf  ;;  %v5132_v40 = vsel %vm1175_vm2, %v5107_v54, -inf }
 0xbf1   :  { %v7319_v58 = vpop.f32.mrf.mxu0  ;;  %5130 = vmax.xlane.f32.xlu1 %v5129_v57  ;;  %v7314_v33 = vpop.f32.mrf.mxu1 }
 0xbf3   :  { %5133 = vmax.xlane.f32.xlu0 %v5132_v40 }
 0xc02   :  { %4225 = vrot.lane.b32.xlu1 %v8398_v30, %s7648_s24 }
 0xc09   :  { %4219 = vrot.lane.b32.xlu0 %v8398_v30, %s7646_s22 }
 0xc69   :  { %v5113_v9 = vpop.xlane.xlu0 %5112 }
 0xc6a   :  { %v5135_v59 = vsub.f32 %v4575_v27, %v5113_v9  ;;  %v5116_v61 = vpop.xlane.xlu1 %5115 }
 0xc6b   :  { %v5136_v62 = vsub.f32 %v4651_v34, %v5116_v61 }
 0xc6c   :  { %v5143_v41 = vmul.f32 1.442695, %v5135_v59 }
 0xc6d   :  { %v5145_v4 = vmul.f32 1.442695, %v5136_v62 }
 0xc6e   :  { %7461 = vpow2.f32 %v5143_v41 }
 0xc6f   :  { %7463 = vpow2.f32 %v5145_v4 }
 0xc70   :  { %v5119_v28 = vpop.xlane.xlu0 %5118 }
 0xc71   :  { %v5137_v10 = vsub.f32 %v4727_v31, %v5119_v28 }
 0xc73   :  { %v5147_v35 = vmul.f32 1.442695, %v5137_v10 }
 0xc74   :  { %v5122_v11 = vpop.xlane.xlu0 %5121 }
 0xc75   :  { %7465 = vpow2.f32 %v5147_v35  ;;  %v5138_v12 = vsub.f32 %v4803_v32, %v5122_v11 }
 0xc76   :  { %v5125_v15 = vpop.xlane.xlu1 %5124 }
 0xc77   :  { %v5149_v42 = vmul.f32 1.442695, %v5138_v12  ;;  %v5139_v55 = vsub.f32 %v4879_v45, %v5125_v15 }
 0xc78   :  { %v5128_v1 = vpop.xlane.xlu0 %5127 }
 0xc79   :  { %7467 = vpow2.f32 %v5149_v42  ;;  %v5151_v22 = vmul.f32 1.442695, %v5139_v55  ;;  %v5140_v39 = vsub.f32 %v4955_v2, %v5128_v1 }
 0xc7a   :  { %v5131_v27 = vpop.xlane.xlu1 %5130 }
 0xc7b   :  { %v8552_v16 = vpop.eup %7461  ;;  %7469 = vpow2.f32 %v5151_v22  ;;  %v5153_v34 = vmul.f32 1.442695, %v5140_v39  ;;  %v5141_v60 = vsub.f32 %v5031_v14, %v5131_v27 }
 0xc7c   :  { %v8554_v36 = vpop.eup %7463  ;;  %v5134_v31 = vpop.xlane.xlu0 %5133  ;;  %v5159_v37 = vsel %vm1175_vm2, %v8552_v16, 0.0 }
 0xc7d   :  { %7471 = vpow2.f32 %v5153_v34  ;;  %v5155_v32 = vmul.f32 1.442695, %v5141_v60  ;;  %v5142_v29 = vsub.f32 %v5107_v54, %v5134_v31  ;;  %5160 = vadd.xlane.f32.xlu1 %v5159_v37  ;;  %v5162_v43 = vsel %vm1175_vm2, %v8554_v36, 0.0 }
 0xc7e   :  { %v4226_v7 = vpop.permute.xlu1 %4225  ;;  %5163 = vadd.xlane.f32.xlu0 %v5162_v43 }
 0xc7f   :  { %7473 = vpow2.f32 %v5155_v32  ;;  %v5157_v45 = vmul.f32 1.442695, %v5142_v29  ;;  %v4247_v2 = vcombine.low %v4214_v20, %v4226_v7  ;;  %v4248_v17 = vcombine.high %v4214_v20, %v4226_v7 }
 0xc80   :  { %v4220_v38 = vpop.permute.xlu0 %4219 }
 0xc81   :  { %7475 = vpow2.f32 %v5157_v45  ;;  %v4231_v63 = vcombine.low %v8398_v30, %v4220_v38  ;;  %v4232_v14 = vcombine.high %v8398_v30, %v4220_v38  ;;  %v4255_v54 = vrot.slane %v4247_v2, %v7851_v44 }
 0xc82   :  { %v8561_v19 = vpop.eup %7465  ;;  %v4262_v33 = vrot.slane %v4248_v17, %v7851_v44 }
 0xc83   :  { %v4239_v57 = vrot.slane %v4231_v63, %v7851_v44  ;;  %v5165_v58 = vsel %vm1175_vm2, %v8561_v19, 0.0  ;;  %v4246_v40 = vrot.slane %v4232_v14, %v7851_v44 }
 0xc84   :  { %5166 = vadd.xlane.f32.xlu1 %v5165_v58 }
 0xc85   :  { %v4263_v20 = vcombine.low %v4239_v57, %v4255_v54  ;;  %v4264_v9 = vcombine.high %v4239_v57, %v4255_v54  ;;  %v4279_v61 = vcombine.low %v4246_v40, %v4262_v33  ;;  %v4280_v62 = vcombine.high %v4246_v40, %v4262_v33 }
 0xc86   :  { %v8570_v59 = vpop.eup %7467 }
 0xc87   :  { %v4271_v30 = vrot.slane %v4263_v20, %v7854_v51  ;;  %v4278_v41 = vrot.slane %v4264_v9, %v7854_v51  ;;  %v5168_v4 = vsel %vm1175_vm2, %v8570_v59, 0.0  ;;  %v4287_v10 = vrot.slane %v4279_v61, %v7854_v51 }
 0xc88   :  { %v8576_v28 = vpop.eup %7469  ;;  %v4294_v35 = vrot.slane %v4280_v62, %v7854_v51  ;;  %5169 = vadd.xlane.f32.xlu0 %v5168_v4 }
 0xc89   :  { %v4367_v11 = vcombine.low %v4271_v30, %v4278_v41  ;;  %v6951_v12 = vcombine.high %v4271_v30, %v4278_v41  ;;  %v5171_v15 = vsel %vm1175_vm2, %v8576_v28, 0.0 }
 0xc8a   :  { %v8582_v42 = vpop.eup %7471  ;;  %v4383_v55 = vcombine.low %v4287_v10, %v4294_v35  ;;  %v6952_v1 = vcombine.high %v4287_v10, %v4294_v35  ;;  %5172 = vadd.xlane.f32.xlu1 %v5171_v15 }
 0xc8b   :  { %v4374_v22 = vrot.slane %v4367_v11, %v7851_v44  ;;  %v4382_v39 = vrot.slane %v6951_v12, %v7851_v44  ;;  %v5174_v27 = vsel %vm1175_vm2, %v8582_v42, 0.0 }
 0xc8c   :  { %v8588_v34 = vpop.eup %7473  ;;  %v4390_v60 = vrot.slane %v4383_v55, %v7851_v44  ;;  %v4398_v31 = vrot.slane %v6952_v1, %v7851_v44  ;;  %5175 = vadd.xlane.f32.xlu0 %v5174_v27 }
 0xc8d   :  { %v5177_v37 = vsel %vm1175_vm2, %v8588_v34, 0.0  ;;  %v4399_v32 = vcombine.low %v4374_v22, %v4382_v39  ;;  %v4400_v29 = vcombine.high %v4374_v22, %v4382_v39 }
 0xc8e   :  { %v8594_v43 = vpop.eup %7475  ;;  %5178 = vadd.xlane.f32.xlu1 %v5177_v37  ;;  %v4415_v7 = vcombine.low %v4390_v60, %v4398_v31  ;;  %v4416_v45 = vcombine.high %v4390_v60, %v4398_v31 }
 0xc8f   :  { %v5180_v2 = vsel %vm1175_vm2, %v8594_v43, 0.0  ;;  %v4407_v17 = vrot.slane %v4399_v32, %v7854_v51  ;;  %v4414_v38 = vrot.slane %v4400_v29, %v7854_v51 }
 0xc90   :  { %5181 = vadd.xlane.f32.xlu0 %v5180_v2  ;;  %v4423_v63 = vrot.slane %v4415_v7, %v7854_v51  ;;  %v4430_v14 = vrot.slane %v4416_v45, %v7854_v51 }
 0xc92   :  { %v4431_v54 = vcombine.low %v4407_v17, %v4423_v63  ;;  %v4432_v57 = vcombine.high %v4407_v17, %v4423_v63  ;;  %v4433_v58 = vcombine.low %v4414_v38, %v4430_v14  ;;  %v4434_v33 = vcombine.high %v4414_v38, %v4430_v14 }
 0xc94   :  { %7321 = vmatpush3.msra.mxu1 %v4431_v54  ;;  %7326 = vmatpush3.msra.mxu0 %v4432_v57 }
 0xc95   :  { %7330 = vmatprep.subr.mxu1 %v7645_v0  ;;  %7335 = vmatprep.subr.mxu0 %v7645_v0 }
 0xc9f   :  { %4221 = vrot.lane.b32.xlu1 %v8380_v3, %s7646_s22 }
 0xca3   :  { %4227 = vrot.lane.b32.xlu1 %v8380_v3, %s7648_s24 }
 0xca6   :  { %4215 = vrot.lane.b32.xlu0 %v8380_v3, %s7647_s23 }
 0xd06   :  { %v5161_v40 = vpop.xlane.xlu1 %5160 }
 0xd07   :  { %v5164_v20 = vpop.xlane.xlu0 %5163  ;;  %7477 = vrcp.f32 %v5161_v40 }
 0xd08   :  { %7479 = vrcp.f32 %v5164_v20 }
 0xd0d   :  { %v5167_v9 = vpop.xlane.xlu1 %5166 }
 0xd0e   :  { %7481 = vrcp.f32 %v5167_v9 }
 0xd11   :  { %v5170_v61 = vpop.xlane.xlu0 %5169 }
 0xd12   :  { %7483 = vrcp.f32 %v5170_v61 }
 0xd13   :  { %v5173_v62 = vpop.xlane.xlu1 %5172 }
 0xd14   :  { %v7478_v30 = vpop.eup %7477  ;;  %7485 = vrcp.f32 %v5173_v62 }
 0xd15   :  { %v7480_v41 = vpop.eup %7479  ;;  %v5176_v4 = vpop.xlane.xlu0 %5175  ;;  %v5184_v10 = vmul.f32 %v7478_v30, %v8552_v16 }
 0xd16   :  { %7487 = vrcp.f32 %v5176_v4  ;;  %v5186_v35 = vmul.f32 %v7480_v41, %v8554_v36 }
 0xd17   :  { %v5179_v11 = vpop.xlane.xlu1 %5178  ;;  %7323 = vmatmul.mubr.msk.f32.vlgmr.msra.gmra.mxu1 %vm1175_vm2, %v5184_v10 }
 0xd18   :  { %7489 = vrcp.f32 %v5179_v11  ;;  %7328 = vmatmul.mubr.msk.f32.vlgmr.msra.gmra.mxu0 %vm1175_vm2, %v5186_v35  ;;  %7331 = vmatpush3.msra.mxu1 %v4433_v58 }
 0xd19   :  { %v5182_v12 = vpop.xlane.xlu0 %5181  ;;  %7336 = vmatpush3.msra.mxu0 %v4434_v33  ;;  %7332 = vmatprep.mubr.msk.f32.mxu1 %vm7649_vm1, %v7645_v0 }
 0xd1a   :  { %7491 = vrcp.f32 %v5182_v12  ;;  %7337 = vmatprep.mubr.msk.f32.mxu0 %vm7649_vm1, %v7645_v0  ;;  %7340 = vmatprep.subr.mxu1 %v7645_v0 }
 0xd1b   :  { %v7482_v16 = vpop.eup %7481  ;;  %v4222_v36 = vpop.permute.xlu1 %4221  ;;  %7345 = vmatprep.subr.mxu0 %v7645_v0 }
 0xd1c   :  { %v5188_v15 = vmul.f32 %v7482_v16, %v8561_v19  ;;  %v4299_v55 = vcombine.low %v8380_v3, %v4222_v36  ;;  %v4300_v1 = vcombine.high %v8380_v3, %v4222_v36 }
 0xd1d   :  { %v4216_v22 = vpop.permute.xlu0 %4215 }
 0xd1e   :  { %v5199_v39 = vcombine.low %v5184_v10, %v5188_v15  ;;  %v5200_v27 = vcombine.high %v5184_v10, %v5188_v15  ;;  %7333 = vmatmul.mubr.msk.f32.vlgmr.msra.gmra.mxu1 %vm1175_vm2, %v5188_v15  ;;  %v4307_v19 = vrot.slane %v4299_v55, %v7851_v44  ;;  %v4314_v7 = vrot.slane %v4300_v1, %v7851_v44 }
 0xd1f   :  { %v7484_v60 = vpop.eup %7483  ;;  %v4228_v31 = vpop.permute.xlu1 %4227  ;;  %7342 = vmatprep.mubr.msk.f32.mxu1 %vm7649_vm1, %v7645_v0 }
 0xd20   :  { %v4315_v37 = vcombine.low %v4216_v22, %v4228_v31  ;;  %v4316_v32 = vcombine.high %v4216_v22, %v4228_v31  ;;  %v5190_v29 = vmul.f32 %v7484_v60, %v8570_v59  ;;  %v5207_v14 = vrot.slane %v5199_v39, %v7851_v44 }
 0xd21   :  { %v7486_v45 = vpop.eup %7485  ;;  %v5214_v59 = vrot.slane %v5200_v27, %v7851_v44 }
 0xd22   :  { %v4323_v3 = vrot.slane %v4315_v37, %v7851_v44  ;;  %v4330_v2 = vrot.slane %v4316_v32, %v7851_v44  ;;  %v5215_v17 = vcombine.low %v5186_v35, %v5190_v29  ;;  %v5216_v38 = vcombine.high %v5186_v35, %v5190_v29  ;;  %7338 = vmatmul.mubr.msk.f32.vlgmr.msra.gmra.mxu0 %vm1175_vm2, %v5190_v29 }
 0xd23   :  { %v7488_v63 = vpop.eup %7487  ;;  %7347 = vmatprep.mubr.msk.f32.mxu0 %vm7649_vm1, %v7645_v0  ;;  %v5192_v20 = vmul.f32 %v7486_v45, %v8576_v28 }
 0xd24   :  { %v4331_v54 = vcombine.low %v4307_v19, %v4323_v3  ;;  %v4332_v57 = vcombine.high %v4307_v19, %v4323_v3  ;;  %v4347_v58 = vcombine.low %v4314_v7, %v4330_v2  ;;  %v4348_v33 = vcombine.high %v4314_v7, %v4330_v2 }
 0xd25   :  { %v7490_v40 = vpop.eup %7489  ;;  %v8638_v9 = vmul.f32 %v7488_v63, %v8582_v42  ;;  %v5223_v61 = vrot.slane %v5215_v17, %v7851_v44  ;;  %v5230_v62 = vrot.slane %v5216_v38, %v7851_v44 }
 0xd26   :  { %v4339_v30 = vrot.slane %v4331_v54, %v7854_v51  ;;  %v4346_v41 = vrot.slane %v4332_v57, %v7854_v51  ;;  %v4355_v4 = vrot.slane %v4347_v58, %v7854_v51  ;;  %v4362_v10 = vrot.slane %v4348_v33, %v7854_v51 }
 0xd27   :  { %v7492_v35 = vpop.eup %7491  ;;  %v8647_v11 = vmul.f32 %v7490_v40, %v8588_v34  ;;  %v5231_v28 = vcombine.low %v5207_v14, %v5223_v61  ;;  %v5232_v12 = vcombine.high %v5207_v14, %v5223_v61  ;;  %v5247_v42 = vcombine.low %v5214_v59, %v5230_v62 }
 0xd28   :  { %v4435_v16 = vcombine.low %v4339_v30, %v4346_v41  ;;  %v6953_v36 = vcombine.high %v4339_v30, %v4346_v41  ;;  %v4451_v15 = vcombine.low %v4355_v4, %v4362_v10  ;;  %v6954_v55 = vcombine.high %v4355_v4, %v4362_v10 }
 0xd29   :  { %v5267_v1 = vcombine.low %v5192_v20, %v8647_v11  ;;  %v5268_v22 = vcombine.high %v5192_v20, %v8647_v11  ;;  %v5198_v39 = vmul.f32 %v7492_v35, %v8594_v43  ;;  %v5239_v27 = vrot.slane %v5231_v28, %v7854_v51 }
 0xd2a   :  { %v4442_v60 = vrot.slane %v4435_v16, %v7851_v44  ;;  %v4450_v34 = vrot.slane %v6953_v36, %v7851_v44  ;;  %v4458_v31 = vrot.slane %v4451_v15, %v7851_v44  ;;  %v4466_v37 = vrot.slane %v6954_v55, %v7851_v44 }
 0xd2b   :  { %v5283_v32 = vcombine.low %v8638_v9, %v5198_v39  ;;  %v5284_v29 = vcombine.high %v8638_v9, %v5198_v39  ;;  %v5246_v19 = vrot.slane %v5232_v12, %v7854_v51  ;;  %v5248_v7 = vcombine.high %v5214_v59, %v5230_v62 }
 0xd2c   :  { %v4467_v45 = vcombine.low %v4442_v60, %v4450_v34  ;;  %v4483_v3 = vcombine.low %v4458_v31, %v4466_v37  ;;  %v4468_v43 = vcombine.high %v4442_v60, %v4450_v34  ;;  %v4484_v2 = vcombine.high %v4458_v31, %v4466_v37 }
 0xd2d   :  { %v5255_v17 = vrot.slane %v5247_v42, %v7854_v51  ;;  %v5262_v38 = vrot.slane %v5248_v7, %v7854_v51  ;;  %v5335_v63 = vcombine.low %v5239_v27, %v5246_v19  ;;  %v6971_v14 = vcombine.high %v5239_v27, %v5246_v19 }
 0xd2e   :  { %v4475_v54 = vrot.slane %v4467_v45, %v7854_v51  ;;  %v4491_v57 = vrot.slane %v4483_v3, %v7854_v51  ;;  %v4482_v58 = vrot.slane %v4468_v43, %v7854_v51  ;;  %v4498_v33 = vrot.slane %v4484_v2, %v7854_v51 }
 0xd2f   :  { %v5342_v59 = vrot.slane %v5335_v63, %v7851_v44  ;;  %v5350_v40 = vrot.slane %v6971_v14, %v7851_v44  ;;  %v5351_v61 = vcombine.low %v5255_v17, %v5262_v38  ;;  %v6972_v62 = vcombine.high %v5255_v17, %v5262_v38 }
 0xd30   :  { %v4499_v30 = vcombine.low %v4475_v54, %v4491_v57  ;;  %v4500_v41 = vcombine.high %v4475_v54, %v4491_v57  ;;  %v4501_v4 = vcombine.low %v4482_v58, %v4498_v33  ;;  %v4502_v10 = vcombine.high %v4482_v58, %v4498_v33 }
 0xd31   :  { %v5358_v35 = vrot.slane %v5351_v61, %v7851_v44  ;;  %v5366_v28 = vrot.slane %v6972_v62, %v7851_v44  ;;  %v5367_v12 = vcombine.low %v5342_v59, %v5350_v40  ;;  %v5368_v42 = vcombine.high %v5342_v59, %v5350_v40 }
 0xd32   :  { %7341 = vmatpush3.msra.mxu1 %v4499_v30  ;;  %7346 = vmatpush3.msra.mxu0 %v4500_v41  ;;  %v5275_v16 = vrot.slane %v5267_v1, %v7851_v44  ;;  %v5282_v36 = vrot.slane %v5268_v22, %v7851_v44  ;;  %v5291_v15 = vrot.slane %v5283_v32, %v7851_v44 }
 0xd33   :  { %7343 = vmatmul.mubr.msk.f32.vlgmr.msra.gmra.mxu1 %vm1175_vm2, %v5192_v20  ;;  %7348 = vmatmul.mubr.msk.f32.vlgmr.msra.gmra.mxu0 %vm1175_vm2, %v8638_v9  ;;  %v8677_v55 = vrot.slane %v5367_v12, %v7854_v51  ;;  %v5383_v27 = vcombine.low %v5358_v35, %v5366_v28  ;;  %v5384_v60 = vcombine.high %v5358_v35, %v5366_v28 }
 0xd34   :  { %7350 = vmatprep.subr.mxu1 %v7645_v0  ;;  %7355 = vmatprep.subr.mxu0 %v7645_v0  ;;  %v5298_v1 = vrot.slane %v5284_v29, %v7851_v44  ;;  %v5299_v34 = vcombine.low %v5275_v16, %v5291_v15  ;;  %v5300_v22 = vcombine.high %v5275_v16, %v5291_v15 }
 0xd35   :  { %7351 = vmatpush3.msra.mxu1 %v4501_v4  ;;  %7356 = vmatpush3.msra.mxu0 %v4502_v10  ;;  %v8683_v20 = vrot.slane %v5383_v27, %v7854_v51  ;;  %v8686_v9 = vrot.slane %v5368_v42, %v7854_v51  ;;  %v8689_v31 = vrot.slane %v5384_v60, %v7854_v51 }
 0xd36   :  { %7352 = vmatprep.mubr.msk.f32.mxu1 %vm7649_vm1, %v7645_v0  ;;  %7357 = vmatprep.mubr.msk.f32.mxu0 %vm7649_vm1, %v7645_v0  ;;  %v5307_v37 = vrot.slane %v5299_v34, %v7854_v51  ;;  %v5314_v32 = vrot.slane %v5300_v22, %v7854_v51  ;;  %v5315_v29 = vcombine.low %v5282_v36, %v5298_v1 }
 0xd37   :  { %7353 = vmatmul.mubr.msk.f32.vlgmr.msra.gmra.mxu1 %vm1175_vm2, %v8647_v11  ;;  %7358 = vmatmul.mubr.msk.f32.vlgmr.msra.gmra.mxu0 %vm1175_vm2, %v5198_v39  ;;  %v5399_v19 = vcombine.low %v8677_v55, %v8683_v20  ;;  %v5400_v7 = vcombine.high %v8677_v55, %v8683_v20  ;;  %v5316_v45 = vcombine.high %v5282_v36, %v5298_v1 }
 0xd38   :  { %v5323_v3 = vrot.slane %v5315_v29, %v7854_v51  ;;  %v5403_v0 = vcombine.low %v5307_v37, %v5314_v32  ;;  %v6973_v43 = vcombine.high %v5307_v37, %v5314_v32  ;;  %v5401_v2 = vcombine.low %v8686_v9, %v8689_v31 }
 0xd39   :  { %v5330_v17 = vrot.slane %v5316_v45, %v7854_v51  ;;  %v5402_v11 = vcombine.high %v8686_v9, %v8689_v31 }
 0xd3a   :  { %v5410_v39 = vrot.slane %v5403_v0, %v7851_v44  ;;  %v5418_v38 = vrot.slane %v6973_v43, %v7851_v44 }
 0xd3b   :  { %v5419_v63 = vcombine.low %v5323_v3, %v5330_v17  ;;  %v6974_v14 = vcombine.high %v5323_v3, %v5330_v17 }
 0xd3c   :  { %v5435_v54 = vcombine.low %v5410_v39, %v5418_v38  ;;  %v5436_v57 = vcombine.high %v5410_v39, %v5418_v38 }
 0xd3d   :  { %v5426_v58 = vrot.slane %v5419_v63, %v7851_v44  ;;  %v5434_v33 = vrot.slane %v6974_v14, %v7851_v44 }
 0xd3e   :  { %v8715_v59 = vrot.slane %v5435_v54, %v7854_v51  ;;  %v8718_v61 = vrot.slane %v5436_v57, %v7854_v51 }
 0xd3f   :  { %v5451_v40 = vcombine.low %v5426_v58, %v5434_v33  ;;  %v5452_v62 = vcombine.high %v5426_v58, %v5434_v33 }
 0xd41   :  { %v8721_v30 = vrot.slane %v5451_v40, %v7854_v51  ;;  %v8724_v41 = vrot.slane %v5452_v62, %v7854_v51 }
 0xd43   :  { %v5468_v4 = vcombine.high %v8715_v59, %v8721_v30  ;;  %v5469_v10 = vcombine.low %v8718_v61, %v8724_v41  ;;  %v5470_v35 = vcombine.high %v8718_v61, %v8724_v41  ;;  %v5467_v28 = vcombine.low %v8715_v59, %v8721_v30 }
 0xdd7   :  { %v5570_v12 = vpop.f32.mrf.mxu1 }
 0xdd8   :  { %v5643_v42 = vpop.f32.mrf.mxu0 }
 0xdd9   :  { %v7324_v16 = vpop.f32.mrf.mxu1 }
 0xdda   :  { %v7329_v36 = vpop.f32.mrf.mxu0 }
 0xdde   :  { %v5716_v15 = vpop.f32.mrf.mxu1 }
 0xddf   :  { %v6085_v60 = vcombine.low %v5570_v12, %v5716_v15  ;;  %v6086_v1 = vcombine.high %v5570_v12, %v5716_v15 }
 0xde0   :  { %v7334_v27 = vpop.f32.mrf.mxu1 }
 0xde1   :  { %v6093_v29 = vrot.slane %v6085_v60, %v7851_v44  ;;  %v6100_v45 = vrot.slane %v6086_v1, %v7851_v44 }
 0xde2   :  { %v5789_v34 = vpop.f32.mrf.mxu0 }
 0xde3   :  { %v6101_v22 = vcombine.low %v5643_v42, %v5789_v34  ;;  %v6102_v37 = vcombine.high %v5643_v42, %v5789_v34 }
 0xde4   :  { %v7339_v32 = vpop.f32.mrf.mxu0 }
 0xde5   :  { %v6109_v3 = vrot.slane %v6101_v22, %v7851_v44  ;;  %v6116_v0 = vrot.slane %v6102_v37, %v7851_v44 }
 0xde7   :  { %v6117_v43 = vcombine.low %v6093_v29, %v6109_v3  ;;  %v6118_v17 = vcombine.high %v6093_v29, %v6109_v3  ;;  %v6133_v39 = vcombine.low %v6100_v45, %v6116_v0  ;;  %v6134_v38 = vcombine.high %v6100_v45, %v6116_v0 }
 0xde9   :  { %v6125_v63 = vrot.slane %v6117_v43, %v7854_v51  ;;  %v6132_v14 = vrot.slane %v6118_v17, %v7854_v51  ;;  %v6141_v54 = vrot.slane %v6133_v39, %v7854_v51  ;;  %v6148_v57 = vrot.slane %v6134_v38, %v7854_v51 }
 0xdeb   :  { %v6221_v58 = vcombine.low %v6125_v63, %v6132_v14  ;;  %v6983_v33 = vcombine.high %v6125_v63, %v6132_v14  ;;  %v6237_v40 = vcombine.low %v6141_v54, %v6148_v57  ;;  %v6984_v62 = vcombine.high %v6141_v54, %v6148_v57 }
 0xded   :  { %v6228_v12 = vrot.slane %v6221_v58, %v7851_v44  ;;  %v6236_v42 = vrot.slane %v6983_v33, %v7851_v44  ;;  %v6244_v16 = vrot.slane %v6237_v40, %v7851_v44  ;;  %v6252_v36 = vrot.slane %v6984_v62, %v7851_v44 }
 0xdef   :  { %v6253_v15 = vcombine.low %v6228_v12, %v6236_v42  ;;  %v6269_v27 = vcombine.low %v6244_v16, %v6252_v36  ;;  %v6254_v60 = vcombine.high %v6228_v12, %v6236_v42  ;;  %v6270_v1 = vcombine.high %v6244_v16, %v6252_v36 }
 0xdf1   :  { %v8747_v34 = vrot.slane %v6253_v15, %v7854_v51  ;;  %v8750_v22 = vrot.slane %v6269_v27, %v7854_v51  ;;  %v6268_v3 = vrot.slane %v6254_v60, %v7854_v51  ;;  %v6284_v0 = vrot.slane %v6270_v1, %v7854_v51 }
 0xdf3   :  { %v5862_v37 = vpop.f32.mrf.mxu1  ;;  %v5935_v32 = vpop.f32.mrf.mxu0  ;;  %v6286_v29 = vcombine.high %v8747_v34, %v8750_v22  ;;  %v6285_v45 = vcombine.low %v8747_v34, %v8750_v22  ;;  %v6287_v63 = vcombine.low %v6268_v3, %v6284_v0  ;;  %v6288_v36 = vcombine.high %v6268_v3, %v6284_v0  ;;  %v6988_v34 = vld [vmem:[%s8964_s4 + $0x1] ss:$0 sm:$0xff] }
 0xdf5   :  { %v7344_v43 = vpop.f32.mrf.mxu1  ;;  %v7349_v17 = vpop.f32.mrf.mxu0  ;;  %6359 = vrot.lane.b32.xlu0 %v6286_v29, %s7642_s17 }
 0xdf7   :  { %v6008_v39 = vpop.f32.mrf.mxu1  ;;  %v6081_v38 = vpop.f32.mrf.mxu0 }
 0xdf8   :  { %v6153_v14 = vcombine.low %v5862_v37, %v6008_v39  ;;  %v6154_v54 = vcombine.high %v5862_v37, %v6008_v39  ;;  %v6169_v57 = vcombine.low %v5935_v32, %v6081_v38  ;;  %v6170_v58 = vcombine.high %v5935_v32, %v6081_v38  ;;  %v6391_v37 = vld [vmem:[#allocation7 + $0x38] sm:$0xff]  ;;  %v6390_v32 = vld [vmem:[#allocation7 + $0x30] sm:$0xff] }
 0xdf9   :  { %v7354_v33 = vpop.f32.mrf.mxu1  ;;  %v7359_v40 = vpop.f32.mrf.mxu0  ;;  %6367 = vrot.lane.b32.xlu0 %v6287_v63, %s7652_s25  ;;  %7360 = vmatprep.subr.mxu1 %v6391_v37 }
 0xdfa   :  { %v6161_v62 = vrot.slane %v6153_v14, %v7851_v44  ;;  %v6168_v12 = vrot.slane %v6154_v54, %v7851_v44  ;;  %v6177_v42 = vrot.slane %v6169_v57, %v7851_v44  ;;  %v6184_v16 = vrot.slane %v6170_v58, %v7851_v44  ;;  %7361 = vmatpush3.msra.mxu1 %v6391_v37  ;;  %v6389_v14 = vld [vmem:[#allocation7 + $0x28] sm:$0xff]  ;;  %v6388_v54 = vld [vmem:[#allocation7 + $0x20] sm:$0xff] }
 0xdfb   :  { %7362 = vmatprep.subr.mxu1 %v6390_v32 }
 0xdfc   :  { %v6185_v15 = vcombine.low %v6161_v62, %v6177_v42  ;;  %v6186_v27 = vcombine.high %v6161_v62, %v6177_v42  ;;  %v6201_v60 = vcombine.low %v6168_v12, %v6184_v16  ;;  %v6202_v1 = vcombine.high %v6168_v12, %v6184_v16  ;;  %7363 = vmatpush3.msra.mxu1 %v6390_v32 }
 0xdfd   :  { %6375 = vrot.lane.b32.xlu0 %v6288_v36, %s7653_s26  ;;  %7364 = vmatprep.subr.mxu1 %v6389_v14 }
 0xdfe   :  { %v6193_v29 = vrot.slane %v6185_v15, %v7854_v51  ;;  %v6200_v43 = vrot.slane %v6186_v27, %v7854_v51  ;;  %v6209_v17 = vrot.slane %v6201_v60, %v7854_v51  ;;  %v6216_v39 = vrot.slane %v6202_v1, %v7854_v51  ;;  %7365 = vmatpush3.msra.mxu1 %v6389_v14 }
 0xdff   :  { %7366 = vmatprep.subr.mxu1 %v6388_v54 }
 0xe00   :  { %v6289_v38 = vcombine.low %v6193_v29, %v6200_v43  ;;  %v6985_v3 = vcombine.high %v6193_v29, %v6200_v43  ;;  %v6305_v0 = vcombine.low %v6209_v17, %v6216_v39  ;;  %v6986_v63 = vcombine.high %v6209_v17, %v6216_v39  ;;  %7367 = vmatpush3.msra.mxu1 %v6388_v54 }
 0xe02   :  { %v6296_v57 = vrot.slane %v6289_v38, %v7851_v44  ;;  %v6304_v58 = vrot.slane %v6985_v3, %v7851_v44  ;;  %v6312_v33 = vrot.slane %v6305_v0, %v7851_v44  ;;  %v6320_v40 = vrot.slane %v6986_v63, %v7851_v44 }
 0xe04   :  { %v6321_v62 = vcombine.low %v6296_v57, %v6304_v58  ;;  %v6337_v12 = vcombine.low %v6312_v33, %v6320_v40  ;;  %v6322_v42 = vcombine.high %v6296_v57, %v6304_v58  ;;  %v6338_v16 = vcombine.high %v6312_v33, %v6320_v40 }
 0xe06   :  { %v6329_v36 = vrot.slane %v6321_v62, %v7854_v51  ;;  %v6345_v15 = vrot.slane %v6337_v12, %v7854_v51  ;;  %v6336_v1 = vrot.slane %v6322_v42, %v7854_v51  ;;  %v6352_v37 = vrot.slane %v6338_v16, %v7854_v51 }
 0xe08   :  { %v6354_v27 = vcombine.high %v6329_v36, %v6345_v15  ;;  %v6353_v60 = vcombine.low %v6329_v36, %v6345_v15  ;;  %v6355_v44 = vcombine.low %v6336_v1, %v6352_v37  ;;  %v6356_v32 = vcombine.high %v6336_v1, %v6352_v37 }
 0xe0a   :  { %6361 = vrot.lane.b32.xlu1 %v6354_v27, %s7642_s17 }
 0xe0e   :  { %6369 = vrot.lane.b32.xlu1 %v6355_v44, %s7652_s25 }
 0xe12   :  { %6377 = vrot.lane.b32.xlu1 %v6356_v32, %s7653_s26 }
 0xe67   :  { %v6360_v29 = vpop.permute.xlu0 %6359 }
 0xe68   :  { %v6381_v17 = vsel %vm1175_vm2, %v6285_v45, %v6360_v29  ;;  %v6533_v29 = vld [vmem:[#allocation8 + $0x38] sm:$0xff] }
 0xe69   :  { %7371 = vmatprep.subr.mxu0 %v6533_v29 }
 0xe6a   :  { %7372 = vmatpush3.msra.mxu0 %v6533_v29 }
 0xe6b   :  { %v6368_v43 = vpop.permute.xlu0 %6367 }
 0xe6c   :  { %v6383_v39 = vsel %vm2170_vm3, %v6381_v17, %v6368_v43  ;;  %v6531_v43 = vld [vmem:[#allocation8 + $0x28] sm:$0xff]  ;;  %v6530_v17 = vld [vmem:[#allocation8 + $0x20] sm:$0xff] }
 0xe6f   :  { %v6376_v38 = vpop.permute.xlu0 %6375 }
 0xe70   :  { %v6385_v51 = vsel %vm2173_vm4, %v6383_v39, %v6376_v38  ;;  %v7006_v39 = vld [vmem:[%s8969_s9 + $0x78] sm:$0xff]  ;;  %v7005_v38 = vld [vmem:[%s8969_s9 + $0x70] sm:$0xff] }
 0xe71   :  { %7368 = vmatprep.mubr.msk.f32.mxu1 %vm140_vm0, %v6385_v51  ;;  %7382 = vmatprep.subr.mxu1 %v7006_v39  ;;  %v7004_v51 = vld [vmem:[%s8969_s9 + $0x68] sm:$0xff] }
 0xe7c   :  { %v6362_v3 = vpop.permute.xlu1 %6361 }
 0xe7d   :  { %v6382_v63 = vsel %vm1175_vm2, %v6353_v60, %v6362_v3  ;;  %v7003_v3 = vld [vmem:[%s8969_s9 + $0x60] sm:$0xff] }
 0xe80   :  { %v6370_v0 = vpop.permute.xlu1 %6369 }
 0xe81   :  { %v6384_v14 = vsel %vm2170_vm3, %v6382_v63, %v6370_v0 }
 0xe84   :  { %v6378_v54 = vpop.permute.xlu1 %6377 }
 0xe85   :  { %v6386_v57 = vsel %vm2173_vm4, %v6384_v14, %v6378_v54 }
 0xe86   :  { %7369 = vmatmul.mubr.msk.f32.vlgmr.msra.gmra.mxu1 %vm140_vm0, %v6386_v57 }
 0xe87   :  { %7383 = vmatpush3.msra.mxu1 %v7006_v39 }
 0xe88   :  { %7384 = vmatprep.subr.mxu1 %v7005_v38 }
 0xe89   :  { %7385 = vmatpush3.msra.mxu1 %v7005_v38 }
 0xe8a   :  { %7386 = vmatprep.subr.mxu1 %v7004_v51 }
 0xe8b   :  { %7387 = vmatpush3.msra.mxu1 %v7004_v51 }
 0xe8c   :  { %7388 = vmatprep.subr.mxu1 %v7003_v3 }
 0xe8d   :  { %7389 = vmatpush3.msra.mxu1 %v7003_v3 }
 0xf46   :  { %v7370_v22 = vpop.f32.mrf.mxu1 }
 0xf47   :  { %v6478_v45 = vadd.f32 %v7370_v22, %v6988_v34 }
 0xf48   :  { %v6472_v58 = vpop.f32.mrf.mxu1 }
 0xf49   :  { %v6473_v33 = vadd.f32 %v6988_v34, %v6472_v58  ;;  %v6482_v40 = vadd.f32 %v6478_v45, %v8354_v56  ;;  %v6993_v45 = vld [vmem:[%s8965_s5 + $0x1] ss:$0 sm:$0xff] }
 0xf4b   :  { %v6490_v62 = vsel %vm140_vm0, %v6482_v40, 0.0  ;;  %v6481_v12 = vadd.f32 %v6473_v33, %v8343_v47  ;;  %v6532_v47 = vld [vmem:[#allocation8 + $0x30] sm:$0xff]  ;;  %v6994_v33 = vld [vmem:[%s8966_s6 + $0x1] ss:$0 sm:$0xff] }
 0xf4c   :  { %6491 = vadd.xlane.f32.xlu1 %v6490_v62  ;;  %7373 = vmatprep.subr.mxu0 %v6532_v47 }
 0xf4d   :  { %v6487_v42 = vsel %vm140_vm0, %v6481_v12, 0.0  ;;  %7374 = vmatpush3.msra.mxu0 %v6532_v47 }
 0xf4e   :  { %6488 = vadd.xlane.f32.xlu0 %v6487_v42  ;;  %7375 = vmatprep.subr.mxu0 %v6531_v43 }
 0xf4f   :  { %7376 = vmatpush3.msra.mxu0 %v6531_v43 }
 0xf50   :  { %7377 = vmatprep.subr.mxu0 %v6530_v17 }
 0xf51   :  { %7378 = vmatpush3.msra.mxu0 %v6530_v17  ;;  %v7008_v17 = vld [vmem:[%s8970_s10 + $0x1] ss:$0 sm:$0xff] }
 0xfd5   :  { %v6492_v16 = vpop.xlane.xlu1 %6491 }
 0xfd6   :  { %v6494_v36 = vmul.f32 0.03125, %v6492_v16 }
 0xfd7   :  { %v6489_v15 = vpop.xlane.xlu0 %6488 }
 0xfd8   :  { %v6493_v27 = vmul.f32 0.03125, %v6489_v15  ;;  %v6496_v60 = vsub.f32 %v6482_v40, %v6494_v36  ;;  %v7002_v15 = vld [vmem:[%s8969_s9 + $0x58] sm:$0xff] }
 0xfd9   :  { %7390 = vmatprep.subr.mxu1 %v7002_v15 }
 0xfda   :  { %v6495_v1 = vsub.f32 %v6481_v12, %v6493_v27  ;;  %v6498_v32 = vmul.f32 %v6496_v60, %v6496_v60  ;;  %7391 = vmatpush3.msra.mxu1 %v7002_v15  ;;  %v7001_v27 = vld [vmem:[%s8969_s9 + $0x50] sm:$0xff] }
 0xfdb   :  { %7392 = vmatprep.subr.mxu1 %v7001_v27 }
 0xfdc   :  { %v6497_v37 = vmul.f32 %v6495_v1, %v6495_v1  ;;  %v6502_v56 = vsel %vm140_vm0, %v6498_v32, 0.0  ;;  %7393 = vmatpush3.msra.mxu1 %v7001_v27 }
 0xfde   :  { %v6499_v44 = vsel %vm140_vm0, %v6497_v37, 0.0  ;;  %v6996_v37 = vld [vmem:[%s8968_s8 + $0x1] ss:$0 sm:$0xff] }
 0xfdf   :  { %6500 = vadd.xlane.f32.xlu0 %v6499_v44 }
 0xfe3   :  { %6503 = vadd.xlane.f32.xlu0 %v6502_v56 }
0x1068   :  { %v6501_v0 = vpop.xlane.xlu0 %6500 }
0x1069   :  { %v6505_v63 = vmul.f32 0.03125, %v6501_v0 }
0x106b   :  { %v6507_v14 = vadd.f32 1e-05, %v6505_v63 }
0x106c   :  { %v6504_v54 = vpop.xlane.xlu0 %6503 }
0x106d   :  { %7493 = vrsqrt.f32 %v6507_v14  ;;  %v6506_v57 = vmul.f32 0.03125, %v6504_v54 }
0x106f   :  { %v6508_v34 = vadd.f32 1e-05, %v6506_v57 }
0x1071   :  { %7495 = vrsqrt.f32 %v6508_v34 }
0x107a   :  { %v7494_v22 = vpop.eup %7493 }
0x107b   :  { %v6511_v58 = vmul.f32 %v7494_v22, %v6495_v1  ;;  %v6999_v1 = vld [vmem:[%s8969_s9 + $0x40] sm:$0xff] }
0x107d   :  { %v6519_v40 = vmul.f32 %v6993_v45, %v6511_v58 }
0x107e   :  { %v7496_v62 = vpop.eup %7495 }
0x107f   :  { %v6512_v12 = vmul.f32 %v7496_v62, %v6496_v60  ;;  %v6527_v42 = vadd.f32 %v6994_v33, %v6519_v40  ;;  %v7000_v60 = vld [vmem:[%s8969_s9 + $0x48] sm:$0xff] }
0x1080   :  { %7394 = vmatprep.subr.mxu1 %v7000_v60 }
0x1081   :  { %v6520_v16 = vmul.f32 %v6993_v45, %v6512_v12  ;;  %7379 = vmatprep.mubr.msk.f32.mxu0 %vm140_vm0, %v6527_v42  ;;  %7395 = vmatpush3.msra.mxu1 %v7000_v60 }
0x1082   :  { %7396 = vmatprep.subr.mxu1 %v6999_v1 }
0x1083   :  { %v6528_v36 = vadd.f32 %v6994_v33, %v6520_v16  ;;  %7397 = vmatpush3.msra.mxu1 %v6999_v1 }
0x1085   :  { %7380 = vmatmul.mubr.msk.f32.vlgmr.msra.gmra.mxu0 %vm140_vm0, %v6528_v36 }
0x1145   :  { %v7381_v44 = vpop.f32.mrf.mxu0 }
0x1146   :  { %v6620_v32 = vadd.f32 %v7381_v44, %v6996_v37  ;;  %v7013_v44 = vld [vmem:[%s8971_s11 + $0x1] ss:$0 sm:$0xff]  ;;  %s7654_s11 = smov 32  }
0x1147   :  { %v6614_v56 = vpop.f32.mrf.mxu0 }
0x1148   :  { %v6615_v29 = vadd.f32 %v6996_v37, %v6614_v56  ;;  %v6624_v43 = vmax.f32 %v6620_v32, 0.0 }
0x114a   :  { %v6623_v47 = vmax.f32 %v6615_v29, 0.0  ;;  %v7014_v29 = vld [vmem:[%s8972_s12 + $0x1] ss:$0 sm:$0xff]  ;;  %s7655_s12 = smov [#allocation11]  }
0x114c   :  { %7398 = vmatprep.mubr.msk.f32.mxu1 %vm3310_vm5, %v6623_v47 }
0x114d   :  { %7399 = vmatmul.mubr.msk.f32.vlgmr.msra.gmra.mxu1 %vm3310_vm5, %v6624_v43 }
0x120d   :  { %v7400_v39 = vpop.f32.mrf.mxu1 }
0x120e   :  { %v6720_v38 = vadd.f32 %v7400_v39, %v7008_v17 }
0x120f   :  { %v6714_v51 = vpop.f32.mrf.mxu1 }
0x1210   :  { %v6715_v3 = vadd.f32 %v7008_v17, %v6714_v51  ;;  %v6724_v0 = vadd.f32 %v6720_v38, %v6528_v36 }
0x1212   :  { %v6732_v63 = vsel %vm140_vm0, %v6724_v0, 0.0  ;;  %v6723_v14 = vadd.f32 %v6715_v3, %v6527_v42 }
0x1213   :  { %6733 = vadd.xlane.f32.xlu0 %v6732_v63 }
0x1214   :  { %v6729_v54 = vsel %vm140_vm0, %v6723_v14, 0.0 }
0x1215   :  { %6730 = vadd.xlane.f32.xlu1 %v6729_v54 }
0x129c   :  { %v6734_v57 = vpop.xlane.xlu0 %6733 }
0x129d   :  { %v6736_v34 = vmul.f32 0.03125, %v6734_v57 }
0x129e   :  { %v6731_v22 = vpop.xlane.xlu1 %6730 }
0x129f   :  { %v6738_v45 = vsub.f32 %v6724_v0, %v6736_v34  ;;  %v6735_v58 = vmul.f32 0.03125, %v6731_v22 }
0x12a1   :  { %v6737_v33 = vsub.f32 %v6723_v14, %v6735_v58  ;;  %v6740_v40 = vmul.f32 %v6738_v45, %v6738_v45 }
0x12a3   :  { %v6744_v62 = vsel %vm140_vm0, %v6740_v40, 0.0  ;;  %v6739_v12 = vmul.f32 %v6737_v33, %v6737_v33 }
0x12a4   :  { %6745 = vadd.xlane.f32.xlu0 %v6744_v62 }
0x12a5   :  { %v6741_v16 = vsel %vm140_vm0, %v6739_v12, 0.0 }
0x12a6   :  { %6742 = vadd.xlane.f32.xlu1 %v6741_v16 }
0x132d   :  { %v6746_v36 = vpop.xlane.xlu0 %6745 }
0x132e   :  { %v6748_v42 = vmul.f32 0.03125, %v6746_v36 }
0x132f   :  { %v6743_v15 = vpop.xlane.xlu1 %6742 }
0x1330   :  { %v6750_v27 = vadd.f32 1e-05, %v6748_v42  ;;  %v6747_v60 = vmul.f32 0.03125, %v6743_v15 }
0x1332   :  { %7497 = vrsqrt.f32 %v6750_v27  ;;  %v6749_v1 = vadd.f32 1e-05, %v6747_v60 }
0x1334   :  { %7499 = vrsqrt.f32 %v6749_v1 }
0x133f   :  { %v7498_v37 = vpop.eup %7497 }
0x1340   :  { %v6754_v32 = vmul.f32 %v7498_v37, %v6738_v45 }
0x1341   :  { %v7500_v56 = vpop.eup %7499 }
0x1342   :  { %v6762_v47 = vmul.f32 %v7013_v44, %v6754_v32  ;;  %v6753_v43 = vmul.f32 %v7500_v56, %v6737_v33 }
0x1344   :  { %v6770_v17 = vadd.f32 %v7014_v29, %v6762_v47  ;;  %v6761_v39 = vmul.f32 %v7013_v44, %v6753_v43 }
0x1346   :  { %v6776_v38 = vsel %vm140_vm0, %v6770_v17, 0.0  ;;  %v6769_v51 = vadd.f32 %v7014_v29, %v6761_v39 }
0x1347   :  { %6777 = vadd.xlane.f32.xlu0 %v6776_v38 }
0x1348   :  { %v6773_v3 = vsel %vm140_vm0, %v6769_v51, 0.0 }
0x1349   :  { %6774 = vadd.xlane.f32.xlu1 %v6773_v3 }
0x135a   :  { %5473 = vrot.lane.b32.xlu1 %v5400_v7, %s7642_s17 }
0x135d   :  { %5475 = vrot.lane.b32.xlu0 %v5468_v4, %s7642_s17 }
0x135e   :  { %5481 = vrot.lane.b32.xlu1 %v5401_v2, %s7652_s25 }
0x1361   :  { %5489 = vrot.lane.b32.xlu0 %v5402_v11, %s7653_s26 }
0x1362   :  { %5483 = vrot.lane.b32.xlu1 %v5469_v10, %s7652_s25 }
0x1365   :  { %2146 = vrot.lane.b32.xlu0 %v2073_v18, %s7642_s17 }
0x1366   :  { %5491 = vrot.lane.b32.xlu1 %v5470_v35, %s7653_s26 }
0x1369   :  { %2154 = vrot.lane.b32.xlu0 %v2074_v21, %s7652_s25 }
0x136a   :  { %2148 = vrot.lane.b32.xlu1 %v2141_v49, %s7642_s17 }
0x136e   :  { %2156 = vrot.lane.b32.xlu1 %v2142_v50, %s7652_s25  ;;  %s6848_s25 = sshll.u32 %s7655_s12, 4  ;;  %s6849_s25 = int_to_ptr.vmem [resolvable:$true] %s6848_s25 }
0x136f   :  { %p7592_p7 = scmp.lt.s32.totalorder %s6849_s25, %s6849_s25 }
0x13d0   :  { %v6778_v18 = vpop.xlane.xlu0 %6777 }
0x13d1   :  { %v6780_v9 = vmul.f32 0.03125, %v6778_v18 }
0x13d2   :  { %v6775_v31 = vpop.xlane.xlu1 %6774 }
0x13d3   :  { %v8892_v7 = vsub.f32 %v6770_v17, %v6780_v9  ;;  %v6779_v2 = vmul.f32 0.03125, %v6775_v31 }
0x13d4   :  { %v5476_v35 = vpop.permute.xlu0 %5475 }
0x13d5   :  { %v8894_v11 = vsub.f32 %v6769_v51, %v6779_v2  ;;  %v6784_v21 = vmul.f32 %v8892_v7, %v8892_v7  ;;  %v5496_v63 = vsel %vm1175_vm2, %v5467_v28, %v5476_v35 }
0x13d6   :  { %v5474_v61 = vpop.permute.xlu1 %5473 }
0x13d7   :  { %v6788_v41 = vsel %vm140_vm0, %v6784_v21, 0.0  ;;  %v6783_v49 = vmul.f32 %v8894_v11, %v8894_v11  ;;  %v5495_v57 = vsel %vm1175_vm2, %v5399_v19, %v5474_v61 }
0x13d8   :  { %6789 = vadd.xlane.f32.xlu1 %v6788_v41  ;;  %v5490_v48 = vpop.permute.xlu0 %5489 }
0x13d9   :  { %v6785_v50 = vsel %vm140_vm0, %v6783_v49, 0.0 }
0x13da   :  { %6786 = vadd.xlane.f32.xlu0 %v6785_v50  ;;  %v5482_v4 = vpop.permute.xlu1 %5481 }
0x13db   :  { %v5497_v34 = vsel %vm2170_vm3, %v5495_v57, %v5482_v4 }
0x13dc   :  { %v5499_v26 = vsel %vm2173_vm4, %v5497_v34, %v5490_v48  ;;  %v2147_v59 = vpop.permute.xlu0 %2146 }
0x13dd   :  { %v2168_v40 = vsel %vm1175_vm2, %v2072_v23, %v2147_v59 }
0x13de   :  { %v5484_v10 = vpop.permute.xlu1 %5483 }
0x13df   :  { %v5498_v14 = vsel %vm2170_vm3, %v5496_v63, %v5484_v10 }
0x13e0   :  { %v2155_v28 = vpop.permute.xlu0 %2154 }
0x13e1   :  { %v2171_v16 = vsel %vm2170_vm3, %v2168_v40, %v2155_v28 }
0x13e2   :  { %v5492_v0 = vpop.permute.xlu1 %5491 }
0x13e3   :  { %v5500_v54 = vsel %vm2173_vm4, %v5498_v14, %v5492_v0 }
0x13e9   :  { %2164 = vrot.lane.b32.xlu1 %v2143_v53, %s7653_s26  ;;  %v2149_v53 = vpop.permute.xlu1 %2148 }
0x13ea   :  { %v2169_v8 = vsel %vm1175_vm2, %v2140_v52, %v2149_v53 }
0x13ed   :  { %6821 = vrot.lane.b32.xlu1 %v5500_v54, %s7654_s11  ;;  %v2157_v30 = vpop.permute.xlu1 %2156 }
0x13f0   :  { %2162 = vrot.lane.b32.xlu0 %v2075_v25, %s7653_s26  ;;  %v2172_v25 = vsel %vm2170_vm3, %v2169_v8, %v2157_v30  ;;  %s7587_s26 = scalar_lea.vmem %s6849_s25, 256 }
0x13f1   :  { %p7588_p6 = scmp.ne.s32.totalorder %s6849_s25, %s7587_s26  ;;  %p7593_p8 = scmp.lt.s32.totalorder %s7587_s26, %s7587_s26 }
0x13f3   :  { %p7594_p9 = por %p7593_p8, %p7592_p7 }
0x13f4   :  { %6819 = vrot.lane.b32.xlu0 %v5499_v26, %s7654_s11 }
0x13f5   :  { %p7595_p10 = pnand %p7594_p9, %p7588_p6 }
0x1461   :  { %v6790_v22 = vpop.xlane.xlu1 %6789 }
0x1462   :  { %v6792_v45 = vmul.f32 0.03125, %v6790_v22 }
0x1463   :  { %v6787_v55 = vpop.xlane.xlu0 %6786 }
0x1464   :  { %v6794_v20 = vadd.f32 1e-05, %v6792_v45  ;;  %v6791_v19 = vmul.f32 0.03125, %v6787_v55 }
0x1465   :  { %v2165_v58 = vpop.permute.xlu1 %2164 }
0x1466   :  { %7501 = vrsqrt.f32 %v6794_v20  ;;  %v6793_v33 = vadd.f32 1e-05, %v6791_v19  ;;  %v2175_v62 = vsel %vm2173_vm4, %v2172_v25, %v2165_v58 }
0x1467   :  { %v2163_v13 = vpop.permute.xlu0 %2162 }
0x1468   :  { %7503 = vrsqrt.f32 %v6793_v33  ;;  %v2174_v24 = vsel %vm2173_vm4, %v2171_v16, %v2163_v13 }
0x1469   :  { %v6822_v12 = vpop.permute.xlu1 %6821 }
0x146a   :  { %v6826_v46 = vsel %vm140_vm0, %v2175_v62, %v6822_v12 }
0x146b   :  { %v6828_v52 = vsel %vm3310_vm5, %v6826_v46, 0.0  ;;  %v6820_v36 = vpop.permute.xlu0 %6819 }
0x146c   :  { %6830 = vst [vmem:[#allocation11 + $0x8] sm:$0xff] %v6828_v52  ;;  %v6825_v42 = vsel %vm140_vm0, %v2174_v24, %v6820_v36 }
0x146d   :  { %v6827_v5 = vsel %vm3310_vm5, %v6825_v42, 0.0 }
0x146e   :  { %6829 = vst [vmem:[#allocation11] sm:$0xff] %v6827_v5 }
0x146f   :  { %7598 = shalt.err (!%p7595_p10)
}
0x1470   :  { %6854 = dma.vmem_to_hbm [thread:$0]  %s6849_s25, 256, %s8976_s16, [#allocation12], %s7641_s0, %s7641_s0, %s7642_s17  }
0x1471   :  { %v7015_v23 = vld [vmem:[%s8973_s13] ss:$0 sm:$0xff]  ;;  %s7656_s2 = smov [#allocation10]  }
0x1472   :  { %v7016_v60 = vld [vmem:[%s8974_s14] ss:$0 sm:$0xff]  ;;  %s6836_s5 = sshll.u32 %s7656_s2, 4  ;;  %s6837_s5 = int_to_ptr.vmem [resolvable:$true] %s6836_s5 }
0x1473   :  { %v7502_v6 = vpop.eup %7501  ;;  %s7607_s13 = scalar_lea.vmem %s6837_s5, 256  ;;  %p7612_p12 = scmp.lt.s32.totalorder %s6837_s5, %s6837_s5 }
0x1474   :  { %v6798_v15 = vmul.f32 %v7502_v6, %v8892_v7  ;;  %p7608_p11 = scmp.ne.s32.totalorder %s6837_s5, %s7607_s13  ;;  %p7613_p13 = scmp.lt.s32.totalorder %s7607_s13, %s7607_s13 }
0x1475   :  { %v7504_v27 = vpop.eup %7503 }
0x1476   :  { %v6797_v1 = vmul.f32 %v7504_v27, %v8894_v11  ;;  %v6806_v37 = vmul.f32 %v7015_v23, %v6798_v15  ;;  %p7614_p0 = por %p7613_p13, %p7612_p12 }
0x1478   :  { %v6805_v44 = vmul.f32 %v7015_v23, %v6797_v1  ;;  %v6814_v32 = vadd.f32 %v7016_v60, %v6806_v37  ;;  %p7615_p1 = pnand %p7614_p0, %p7608_p11 }
0x147a   :  { %v6813_v56 = vadd.f32 %v7016_v60, %v6805_v44  ;;  %6816 = vst.msk [vmem:[#allocation10 + $0x8] sm:$0xff] %vm140_vm0, %v6814_v32 }
0x147c   :  { %6815 = vst.msk [vmem:[#allocation10] sm:$0xff] %vm140_vm0, %v6813_v56 }
0x147d   :  { %7618 = shalt.err (!%p7615_p1)
}
0x147e   :  { %6842 = dma.vmem_to_hbm [thread:$0]  %s6837_s5, 256, %s8975_s15, [#allocation4], %s7641_s0, %s7641_s0, %s7642_s17  }
0x147f   :  { %7633 = dma.done.wait [#allocation4], 256  }
0x1480   :  { %7634 = vsyncadd [#allocation4], 4294967040 }
0x1481   :  { %7635 = dma.done.wait [#allocation12], 256  }
0x1482   :  { %7636 = vsyncadd [#allocation12], 4294967040 }
0x1483   :  { %6861 = vsyncpa [#allocation3], 1 }
0x1484   :  { %6862 = vsyncpa [#allocation6], 1 }
0x1485   :  { %6863 = vsyncpa [#allocation9], 1 }
0x1486   :  { %6864 = vsyncpa [#allocation4], 1 }
0x1487   :  { %6865 = vsyncpa [#allocation12], 1 }

</bundles_post_ra>
